<compile_context>
chip_gen: v7x
topology: tpu7x:2x2x1
jax: 0.10.0
libtpu: 0.0.40
codegen_flags: <defaults>
</compile_context>

<pallas_src>
import functools

import jax
import jax.numpy as jnp
import numpy as np
from jax import lax
from jax.experimental import pallas as pl
from jax.experimental.pallas import tpu as pltpu

_LANE = 128


def _round_up(x, m):
    return (x + m - 1) // m * m


# -------------- fused conv(5x5, pad=2) + bias + ReLU + maxpool(2x2) --------------

def _conv_block_kernel(xe_ref, xo_ref, w_ref, b_ref, o_ref, acc0_ref, acc1_ref,
                       *, m, half, half_pad):
    """One batch-block per grid step.

    xe_ref / xo_ref : (1, m + 8, Wp*Cin) even / odd padded-row slabs (bf16).
                      Row b*Hp2 + q of slab `a` holds padded row 2q+a of image
                      b, flattened as [x'*Cin + c]; trailing 8 rows are zero.
    w_ref           : (5, Wp*Cin, 2*half_pad) banded weights (bf16); columns
                      laid out [col-parity s, pooled-x xp, cout].
    b_ref           : (1, half) f32 bias tiled over pooled-x.
    o_ref           : (1, m, half) bf16; row b*Hp2 + yp = pooled row yp of
                      image b (rows yp >= Ho are garbage, dropped by wrapper).
    acc{0,1}_ref    : (m, 2*half_pad) f32 scratch, one per output-row parity.
    """
    slabs = (xe_ref, xo_ref)
    accs = (acc0_ref, acc1_ref)
    for r in (0, 1):                       # conv-output row parity
        for di in range(5):                # kernel row tap
            a = (r + di) % 2               # padded-row parity -> slab
            uo = (r + di) // 2             # row offset inside the slab
            lhs = slabs[a][0, uo:uo + m, :]
            prod = jnp.dot(lhs, w_ref[di], preferred_element_type=jnp.float32)
            if di == 0:
                accs[r][...] = prod
            else:
                accs[r][...] += prod
    # 2x2 max-pool: rows via the two parities, columns via the two 128-aligned
    # column-parity halves.  Bias + ReLU applied once (max commutes with the
    # monotonic +bias / ReLU).
    rowmax = jnp.maximum(acc0_ref[...], acc1_ref[...])
    pooled = jnp.maximum(rowmax[:, :half], rowmax[:, half_pad:half_pad + half])
    o_ref[0] = jnp.maximum(pooled + b_ref[...], 0.0).astype(o_ref.dtype)


def _banded_weights(w_oihw, w_spatial, half_pad):
    """Wb[di, x'*cin + c, (s*P + xp)*cout + o] = w[o, c, di, x' - (2*xp + s)]."""
    cout, cin, kh, kw = w_oihw.shape
    wp = w_spatial + 4
    wo = w_spatial // 2
    p = half_pad // cout                       # column slots per parity half
    xprime = np.arange(wp)[:, None, None]
    slot = np.arange(2 * p)[None, :, None]
    s, xp_ = slot // p, slot % p
    dj = np.arange(kw)[None, None, :]
    sel = ((xp_ < wo) & (xprime - (2 * xp_ + s) == dj)).astype(np.float32)
    wb = jnp.einsum("xpj,ocij->ixcpo", jnp.asarray(sel),
                    w_oihw.astype(jnp.float32))
    return wb.reshape(kh, wp * cin, 2 * p * cout)


def conv_relu_pool(x_nhwc, w_oihw, b, *, batch_block):
    """Fused Conv2d(k=5, stride=1, pad=2) + bias + ReLU + MaxPool2d(2)."""
    n, h, w, cin = x_nhwc.shape
    cout = w_oihw.shape[0]
    assert n % batch_block == 0 and h % 2 == 0 and w % 2 == 0
    ho, wo = h // 2, w // 2
    hp2 = (h + 4) // 2                      # rows per parity slab (per image)
    wpc = (w + 4) * cin                     # flattened padded-row width
    half = wo * cout                        # valid output columns per parity
    half_pad = _round_up(half, _LANE)       # 128-aligned column-parity stride
    ncols = 2 * half_pad
    g = n // batch_block                    # grid size
    m = batch_block * hp2                   # matmul M per grid step
    rows = m + 8                            # slab rows (slack for row taps)

    x = x_nhwc.astype(jnp.bfloat16)
    xpad = jnp.pad(x, ((0, 0), (2, 2), (2, 2), (0, 0)))
    xflat = xpad.reshape(n, hp2, 2, wpc)    # split padded rows by parity

    def blockify(t):                        # (n, hp2, wpc) -> (g, rows, wpc)
        t = t.reshape(g, m, wpc)
        return jnp.pad(t, ((0, 0), (0, rows - m), (0, 0)))

    xe = blockify(xflat[:, :, 0, :])
    xo = blockify(xflat[:, :, 1, :])
    wb = _banded_weights(w_oihw, w, half_pad).astype(jnp.bfloat16)
    bias = jnp.tile(b.astype(jnp.float32), wo).reshape(1, half)

    kernel = functools.partial(_conv_block_kernel, m=m, half=half,
                               half_pad=half_pad)
    flops = 2 * g * 10 * m * wpc * ncols
    bytes_accessed = (2 * (2 * g * rows * wpc + 5 * wpc * ncols + g * m * half)
                      + 4 * half)

    out = pl.pallas_call(
        kernel,
        grid=(g,),
        in_specs=[pl.BlockSpec((1, rows, wpc), lambda i: (i, 0, 0)),
                  pl.BlockSpec((1, rows, wpc), lambda i: (i, 0, 0)),
                  pl.BlockSpec((5, wpc, ncols), lambda i: (0, 0, 0)),
                  pl.BlockSpec((1, half), lambda i: (0, 0))],
        out_specs=pl.BlockSpec((1, m, half), lambda i: (i, 0, 0)),
        out_shape=jax.ShapeDtypeStruct((g, m, half), jnp.bfloat16),
        scratch_shapes=[pltpu.VMEM((m, ncols), jnp.float32),
                        pltpu.VMEM((m, ncols), jnp.float32)],
        compiler_params=pltpu.CompilerParams(
            dimension_semantics=("parallel",)),
        cost_estimate=pl.CostEstimate(flops=int(flops), transcendentals=0,
                                      bytes_accessed=int(bytes_accessed)),
    )(xe, xo, wb, bias)

    # Drop the 2 garbage pooled rows per image and unflatten the columns.
    out = out.reshape(n, hp2, half)[:, :ho, :]
    return out.reshape(n, ho, wo, cout)


# ---------------------------- tiled linear (x @ w + b) ----------------------------

def _matmul_bias_kernel(x_ref, w_ref, b_ref, o_ref):
    acc = jnp.dot(x_ref[...], w_ref[...], preferred_element_type=jnp.float32)
    o_ref[...] = (acc + b_ref[...]).astype(o_ref.dtype)


def linear(x, w, b, *, block_m=256):
    """y = x @ w + b; bf16 MXU operands, f32 accumulation, M-tiled grid."""
    m, k = x.shape
    _, nn = w.shape
    half_m = _round_up(max(1, (m + 1) // 2), 8)   # aim for >= 2 grid steps
    tm = max(8, min(block_m, half_m))
    mp = _round_up(m, tm)
    if mp != m:
        x = jnp.pad(x, ((0, mp - m), (0, 0)))
    out = pl.pallas_call(
        _matmul_bias_kernel,
        grid=(mp // tm,),
        in_specs=[pl.BlockSpec((tm, k), lambda i: (i, 0)),
                  pl.BlockSpec((k, nn), lambda i: (0, 0)),
                  pl.BlockSpec((1, nn), lambda i: (0, 0))],
        out_specs=pl.BlockSpec((tm, nn), lambda i: (i, 0)),
        out_shape=jax.ShapeDtypeStruct((mp, nn), jnp.float32),
        compiler_params=pltpu.CompilerParams(
            dimension_semantics=("parallel",)),
        cost_estimate=pl.CostEstimate(
            flops=2 * mp * k * nn, transcendentals=0,
            bytes_accessed=2 * (mp * k + k * nn) + 4 * (nn + mp * nn)),
    )(x.astype(jnp.bfloat16), w.astype(jnp.bfloat16),
      b.reshape(1, nn).astype(jnp.float32))
    return out[:m]


# --------------------------------- forward pass -----------------------------------

def _nhwc_to_nchw_row_perm(h, w, c):
    """perm[i_nhwc] = i_nchw so that flat_nhwc @ wl[perm] == flat_nchw @ wl."""
    hh, ww, cc = np.meshgrid(np.arange(h), np.arange(w), np.arange(c),
                             indexing="ij")
    return (cc * (h * w) + hh * w + ww).reshape(-1)


def cnn_forward(x_nchw, params):
    w1, b1, w2, b2, wl, bl = params
    n = x_nchw.shape[0]
    bblk = min(8, max(1, n // 2))            # >=2 grid steps whenever n >= 2
    n_pad = _round_up(n, bblk)

    x = jnp.transpose(x_nchw, (0, 2, 3, 1))              # NCHW -> NHWC
    if n_pad != n:
        x = jnp.pad(x, ((0, n_pad - n), (0, 0), (0, 0), (0, 0)))
    x = conv_relu_pool(x, w1, b1, batch_block=bblk)      # (n_pad, 14, 14, 16)
    # Remaining inter-layer glue is a single cheap XLA pad/reshape pass.
    x = conv_relu_pool(x, w2, b2, batch_block=bblk)      # (n_pad, 7, 7, 32)
    nb, h, w, c = x.shape
    flat = x.reshape(nb, h * w * c)                      # NHWC flatten

    # Match PyTorch's x.view(N, -1) (NCHW order) by permuting the weight rows
    # once, and pad the 10-wide output to a lane-dense 128 columns.
    perm = _nhwc_to_nchw_row_perm(h, w, c)
    wl_nhwc = wl[perm, :]
    n_out = wl.shape[1]
    pad_n = _round_up(n_out, _LANE) - n_out
    wl_pad = jnp.pad(wl_nhwc, ((0, 0), (0, pad_n)))
    bl_pad = jnp.pad(bl, ((0, pad_n),))
    out = linear(flat, wl_pad, bl_pad)                   # (n_pad, 128) f32
    return out[:n, :n_out]                               # (N, 10)


# ------------------------------- pure-JAX reference --------------------------------

def cnn_reference(x_nchw, params):
    w1, b1, w2, b2, wl, bl = params

    def block(x, w, b):
        y = lax.conv_general_dilated(
            x, w, (1, 1), [(2, 2), (2, 2)],
            dimension_numbers=("NCHW", "OIHW", "NCHW"),
            precision=lax.Precision.HIGHEST)
        y = jnp.maximum(y + b.reshape(1, -1, 1, 1), 0.0)
        n, c, hh, ww = y.shape
        return y.reshape(n, c, hh // 2, 2, ww // 2, 2).max(axis=(3, 5))

    x = block(x_nchw, w1, b1)
    x = block(x, w2, b2)
    flat = x.reshape(x.shape[0], -1)
    return jnp.dot(flat, wl, precision=lax.Precision.HIGHEST) + bl


# -------------------------------------- params --------------------------------------

def init_params(key):
    k1, k2, k3, k4, k5, k6 = jax.random.split(key, 6)
    w1 = jax.random.normal(k1, (16, 1, 5, 5), jnp.float32) * 0.10     # conv1 OIHW
    b1 = jax.random.normal(k2, (16,), jnp.float32) * 0.10
    w2 = jax.random.normal(k3, (32, 16, 5, 5), jnp.float32) * 0.05    # conv2 OIHW
    b2 = jax.random.normal(k4, (32,), jnp.float32) * 0.05
    wl = jax.random.normal(k5, (32 * 7 * 7, 10), jnp.float32) * 0.02  # linear (K, N)
    bl = jax.random.normal(k6, (10,), jnp.float32) * 0.02
    return (w1, b1, w2, b2, wl, bl)


# --------------------------------------- main ---------------------------------------

if __name__ == "__main__":
    key = jax.random.PRNGKey(0)
    kx, kp = jax.random.split(key)

    # Input must be 1x28x28 so the flatten matches nn.Linear(32*7*7, 10).
    x = jax.random.normal(kx, (2, 1, 28, 28), jnp.float32)
    params = init_params(kp)

    out = jax.jit(cnn_forward)(x, params)
    out = jax.block_until_ready(out)
    assert out.shape == (2, 10), out.shape

    ref = jax.block_until_ready(jax.jit(cnn_reference)(x, params))
    # bf16 MXU operands (f32 accumulation / epilogue) vs an all-f32 reference.
    np.testing.assert_allclose(np.asarray(out), np.asarray(ref),
                               rtol=2e-2, atol=2e-2)

    print("KERNEL_OK")
</pallas_src>

<mosaic_0001>
module attributes {stable_mosaic.version = 11 : i64} {
  func.func @_conv_block_kernel(%arg0: i32, %arg1: memref<1x24x32xbf16, #tpu.memory_space<vmem>>, %arg2: memref<1x24x32xbf16, #tpu.memory_space<vmem>>, %arg3: memref<5x32x512xbf16, #tpu.memory_space<vmem>>, %arg4: memref<1x224xf32, #tpu.memory_space<vmem>>, %arg5: memref<1x16x224xbf16, #tpu.memory_space<vmem>>, %arg6: memref<16x512xf32, #tpu.memory_space<vmem>>, %arg7: memref<16x512xf32, #tpu.memory_space<vmem>>) attributes {dimension_semantics = [#tpu.dimension_semantics<parallel>], iteration_bounds = array<i64: 2>, scalar_prefetch = 0 : i64, scratch_operands = 2 : i64, tpu.core_type = #tpu.core_type<tc>, window_params = [{transform_indices = @transform_0, window_bounds = array<i64: 1, 24, 32>}, {transform_indices = @transform_1, window_bounds = array<i64: 1, 24, 32>}, {pipeline_mode = #tpu.pipeline_mode<synchronous>, transform_indices = @transform_2, window_bounds = array<i64: 5, 32, 512>}, {pipeline_mode = #tpu.pipeline_mode<synchronous>, transform_indices = @transform_3, window_bounds = array<i64: 1, 224>}, {transform_indices = @transform_4, window_bounds = array<i64: 1, 16, 224>}]} {
    %c0 = arith.constant 0 : index
    %c0_0 = arith.constant 0 : index
    %c0_1 = arith.constant 0 : index
    %0 = vector.load %arg1[%c0, %c0_0, %c0_1] : memref<1x24x32xbf16, #tpu.memory_space<vmem>>, vector<1x16x32xbf16>
    %1 = vector.shape_cast %0 : vector<1x16x32xbf16> to vector<16x32xbf16>
    %c0_2 = arith.constant 0 : index
    %c0_3 = arith.constant 0 : index
    %c0_4 = arith.constant 0 : index
    %2 = vector.load %arg3[%c0_2, %c0_3, %c0_4] : memref<5x32x512xbf16, #tpu.memory_space<vmem>>, vector<1x32x512xbf16>
    %3 = vector.shape_cast %2 : vector<1x32x512xbf16> to vector<32x512xbf16>
    %cst = arith.constant dense<0.000000e+00> : vector<16x512xf32>
    %4 = tpu.matmul %1, %3, %cst {dimension_numbers = #tpu.dot_dimension_numbers<[1], [0], [0], [1], [0, 0, 1, 1], [], []>} : vector<16x32xbf16>, vector<32x512xbf16>, vector<16x512xf32> -> vector<16x512xf32>
    %c0_5 = arith.constant 0 : index
    %c0_6 = arith.constant 0 : index
    %5 = vector.load %arg6[%c0_5, %c0_6] : memref<16x512xf32, #tpu.memory_space<vmem>>, vector<16x512xf32>
    tpu.vector_store %arg6[%c0_5, %c0_6], %4 {strides = array<i32>} : memref<16x512xf32, #tpu.memory_space<vmem>>, vector<16x512xf32>,
    %c0_7 = arith.constant 0 : index
    %c0_8 = arith.constant 0 : index
    %c0_9 = arith.constant 0 : index
    %6 = vector.load %arg2[%c0_7, %c0_8, %c0_9] : memref<1x24x32xbf16, #tpu.memory_space<vmem>>, vector<1x16x32xbf16>
    %7 = vector.shape_cast %6 : vector<1x16x32xbf16> to vector<16x32xbf16>
    %c1 = arith.constant 1 : index
    %c0_10 = arith.constant 0 : index
    %c0_11 = arith.constant 0 : index
    %8 = vector.load %arg3[%c1, %c0_10, %c0_11] : memref<5x32x512xbf16, #tpu.memory_space<vmem>>, vector<1x32x512xbf16>
    %9 = vector.shape_cast %8 : vector<1x32x512xbf16> to vector<32x512xbf16>
    %cst_12 = arith.constant dense<0.000000e+00> : vector<16x512xf32>
    %10 = tpu.matmul %7, %9, %cst_12 {dimension_numbers = #tpu.dot_dimension_numbers<[1], [0], [0], [1], [0, 0, 1, 1], [], []>} : vector<16x32xbf16>, vector<32x512xbf16>, vector<16x512xf32> -> vector<16x512xf32>
    %c0_13 = arith.constant 0 : index
    %c0_14 = arith.constant 0 : index
    %11 = vector.load %arg6[%c0_13, %c0_14] : memref<16x512xf32, #tpu.memory_space<vmem>>, vector<16x512xf32>
    %12 = arith.addf %11, %10 : vector<16x512xf32>
    %c0_15 = arith.constant 0 : index
    %c0_16 = arith.constant 0 : index
    %13 = vector.load %arg6[%c0_15, %c0_16] : memref<16x512xf32, #tpu.memory_space<vmem>>, vector<16x512xf32>
    tpu.vector_store %arg6[%c0_15, %c0_16], %12 {strides = array<i32>} : memref<16x512xf32, #tpu.memory_space<vmem>>, vector<16x512xf32>,
    %c0_17 = arith.constant 0 : index
    %c1_18 = arith.constant 1 : index
    %c0_19 = arith.constant 0 : index
    %14 = vector.load %arg1[%c0_17, %c1_18, %c0_19] : memref<1x24x32xbf16, #tpu.memory_space<vmem>>, vector<1x16x32xbf16>
    %15 = vector.shape_cast %14 : vector<1x16x32xbf16> to vector<16x32xbf16>
    %c2 = arith.constant 2 : index
    %c0_20 = arith.constant 0 : index
    %c0_21 = arith.constant 0 : index
    %16 = vector.load %arg3[%c2, %c0_20, %c0_21] : memref<5x32x512xbf16, #tpu.memory_space<vmem>>, vector<1x32x512xbf16>
    %17 = vector.shape_cast %16 : vector<1x32x512xbf16> to vector<32x512xbf16>
    %cst_22 = arith.constant dense<0.000000e+00> : vector<16x512xf32>
    %18 = tpu.matmul %15, %17, %cst_22 {dimension_numbers = #tpu.dot_dimension_numbers<[1], [0], [0], [1], [0, 0, 1, 1], [], []>} : vector<16x32xbf16>, vector<32x512xbf16>, vector<16x512xf32> -> vector<16x512xf32>
    %c0_23 = arith.constant 0 : index
    %c0_24 = arith.constant 0 : index
    %19 = vector.load %arg6[%c0_23, %c0_24] : memref<16x512xf32, #tpu.memory_space<vmem>>, vector<16x512xf32>
    %20 = arith.addf %19, %18 : vector<16x512xf32>
    %c0_25 = arith.constant 0 : index
    %c0_26 = arith.constant 0 : index
    %21 = vector.load %arg6[%c0_25, %c0_26] : memref<16x512xf32, #tpu.memory_space<vmem>>, vector<16x512xf32>
    tpu.vector_store %arg6[%c0_25, %c0_26], %20 {strides = array<i32>} : memref<16x512xf32, #tpu.memory_space<vmem>>, vector<16x512xf32>,
    %c0_27 = arith.constant 0 : index
    %c1_28 = arith.constant 1 : index
    %c0_29 = arith.constant 0 : index
    %22 = vector.load %arg2[%c0_27, %c1_28, %c0_29] : memref<1x24x32xbf16, #tpu.memory_space<vmem>>, vector<1x16x32xbf16>
    %23 = vector.shape_cast %22 : vector<1x16x32xbf16> to vector<16x32xbf16>
    %c3 = arith.constant 3 : index
    %c0_30 = arith.constant 0 : index
    %c0_31 = arith.constant 0 : index
    %24 = vector.load %arg3[%c3, %c0_30, %c0_31] : memref<5x32x512xbf16, #tpu.memory_space<vmem>>, vector<1x32x512xbf16>
    %25 = vector.shape_cast %24 : vector<1x32x512xbf16> to vector<32x512xbf16>
    %cst_32 = arith.constant dense<0.000000e+00> : vector<16x512xf32>
    %26 = tpu.matmul %23, %25, %cst_32 {dimension_numbers = #tpu.dot_dimension_numbers<[1], [0], [0], [1], [0, 0, 1, 1], [], []>} : vector<16x32xbf16>, vector<32x512xbf16>, vector<16x512xf32> -> vector<16x512xf32>
    %c0_33 = arith.constant 0 : index
    %c0_34 = arith.constant 0 : index
    %27 = vector.load %arg6[%c0_33, %c0_34] : memref<16x512xf32, #tpu.memory_space<vmem>>, vector<16x512xf32>
    %28 = arith.addf %27, %26 : vector<16x512xf32>
    %c0_35 = arith.constant 0 : index
    %c0_36 = arith.constant 0 : index
    %29 = vector.load %arg6[%c0_35, %c0_36] : memref<16x512xf32, #tpu.memory_space<vmem>>, vector<16x512xf32>
    tpu.vector_store %arg6[%c0_35, %c0_36], %28 {strides = array<i32>} : memref<16x512xf32, #tpu.memory_space<vmem>>, vector<16x512xf32>,
    %c0_37 = arith.constant 0 : index
    %c2_38 = arith.constant 2 : index
    %c0_39 = arith.constant 0 : index
    %30 = vector.load %arg1[%c0_37, %c2_38, %c0_39] : memref<1x24x32xbf16, #tpu.memory_space<vmem>>, vector<1x16x32xbf16>
    %31 = vector.shape_cast %30 : vector<1x16x32xbf16> to vector<16x32xbf16>
    %c4 = arith.constant 4 : index
    %c0_40 = arith.constant 0 : index
    %c0_41 = arith.constant 0 : index
    %32 = vector.load %arg3[%c4, %c0_40, %c0_41] : memref<5x32x512xbf16, #tpu.memory_space<vmem>>, vector<1x32x512xbf16>
    %33 = vector.shape_cast %32 : vector<1x32x512xbf16> to vector<32x512xbf16>
    %cst_42 = arith.constant dense<0.000000e+00> : vector<16x512xf32>
    %34 = tpu.matmul %31, %33, %cst_42 {dimension_numbers = #tpu.dot_dimension_numbers<[1], [0], [0], [1], [0, 0, 1, 1], [], []>} : vector<16x32xbf16>, vector<32x512xbf16>, vector<16x512xf32> -> vector<16x512xf32>
    %c0_43 = arith.constant 0 : index
    %c0_44 = arith.constant 0 : index
    %35 = vector.load %arg6[%c0_43, %c0_44] : memref<16x512xf32, #tpu.memory_space<vmem>>, vector<16x512xf32>
    %36 = arith.addf %35, %34 : vector<16x512xf32>
    %c0_45 = arith.constant 0 : index
    %c0_46 = arith.constant 0 : index
    %37 = vector.load %arg6[%c0_45, %c0_46] : memref<16x512xf32, #tpu.memory_space<vmem>>, vector<16x512xf32>
    tpu.vector_store %arg6[%c0_45, %c0_46], %36 {strides = array<i32>} : memref<16x512xf32, #tpu.memory_space<vmem>>, vector<16x512xf32>,
    %c0_47 = arith.constant 0 : index
    %c0_48 = arith.constant 0 : index
    %c0_49 = arith.constant 0 : index
    %38 = vector.load %arg2[%c0_47, %c0_48, %c0_49] : memref<1x24x32xbf16, #tpu.memory_space<vmem>>, vector<1x16x32xbf16>
    %39 = vector.shape_cast %38 : vector<1x16x32xbf16> to vector<16x32xbf16>
    %c0_50 = arith.constant 0 : index
    %c0_51 = arith.constant 0 : index
    %c0_52 = arith.constant 0 : index
    %40 = vector.load %arg3[%c0_50, %c0_51, %c0_52] : memref<5x32x512xbf16, #tpu.memory_space<vmem>>, vector<1x32x512xbf16>
    %41 = vector.shape_cast %40 : vector<1x32x512xbf16> to vector<32x512xbf16>
    %cst_53 = arith.constant dense<0.000000e+00> : vector<16x512xf32>
    %42 = tpu.matmul %39, %41, %cst_53 {dimension_numbers = #tpu.dot_dimension_numbers<[1], [0], [0], [1], [0, 0, 1, 1], [], []>} : vector<16x32xbf16>, vector<32x512xbf16>, vector<16x512xf32> -> vector<16x512xf32>
    %c0_54 = arith.constant 0 : index
    %c0_55 = arith.constant 0 : index
    %43 = vector.load %arg7[%c0_54, %c0_55] : memref<16x512xf32, #tpu.memory_space<vmem>>, vector<16x512xf32>
    tpu.vector_store %arg7[%c0_54, %c0_55], %42 {strides = array<i32>} : memref<16x512xf32, #tpu.memory_space<vmem>>, vector<16x512xf32>,
    %c0_56 = arith.constant 0 : index
    %c1_57 = arith.constant 1 : index
    %c0_58 = arith.constant 0 : index
    %44 = vector.load %arg1[%c0_56, %c1_57, %c0_58] : memref<1x24x32xbf16, #tpu.memory_space<vmem>>, vector<1x16x32xbf16>
    %45 = vector.shape_cast %44 : vector<1x16x32xbf16> to vector<16x32xbf16>
    %c1_59 = arith.constant 1 : index
    %c0_60 = arith.constant 0 : index
    %c0_61 = arith.constant 0 : index
    %46 = vector.load %arg3[%c1_59, %c0_60, %c0_61] : memref<5x32x512xbf16, #tpu.memory_space<vmem>>, vector<1x32x512xbf16>
    %47 = vector.shape_cast %46 : vector<1x32x512xbf16> to vector<32x512xbf16>
    %cst_62 = arith.constant dense<0.000000e+00> : vector<16x512xf32>
    %48 = tpu.matmul %45, %47, %cst_62 {dimension_numbers = #tpu.dot_dimension_numbers<[1], [0], [0], [1], [0, 0, 1, 1], [], []>} : vector<16x32xbf16>, vector<32x512xbf16>, vector<16x512xf32> -> vector<16x512xf32>
    %c0_63 = arith.constant 0 : index
    %c0_64 = arith.constant 0 : index
    %49 = vector.load %arg7[%c0_63, %c0_64] : memref<16x512xf32, #tpu.memory_space<vmem>>, vector<16x512xf32>
    %50 = arith.addf %49, %48 : vector<16x512xf32>
    %c0_65 = arith.constant 0 : index
    %c0_66 = arith.constant 0 : index
    %51 = vector.load %arg7[%c0_65, %c0_66] : memref<16x512xf32, #tpu.memory_space<vmem>>, vector<16x512xf32>
    tpu.vector_store %arg7[%c0_65, %c0_66], %50 {strides = array<i32>} : memref<16x512xf32, #tpu.memory_space<vmem>>, vector<16x512xf32>,
    %c0_67 = arith.constant 0 : index
    %c1_68 = arith.constant 1 : index
    %c0_69 = arith.constant 0 : index
    %52 = vector.load %arg2[%c0_67, %c1_68, %c0_69] : memref<1x24x32xbf16, #tpu.memory_space<vmem>>, vector<1x16x32xbf16>
    %53 = vector.shape_cast %52 : vector<1x16x32xbf16> to vector<16x32xbf16>
    %c2_70 = arith.constant 2 : index
    %c0_71 = arith.constant 0 : index
    %c0_72 = arith.constant 0 : index
    %54 = vector.load %arg3[%c2_70, %c0_71, %c0_72] : memref<5x32x512xbf16, #tpu.memory_space<vmem>>, vector<1x32x512xbf16>
    %55 = vector.shape_cast %54 : vector<1x32x512xbf16> to vector<32x512xbf16>
    %cst_73 = arith.constant dense<0.000000e+00> : vector<16x512xf32>
    %56 = tpu.matmul %53, %55, %cst_73 {dimension_numbers = #tpu.dot_dimension_numbers<[1], [0], [0], [1], [0, 0, 1, 1], [], []>} : vector<16x32xbf16>, vector<32x512xbf16>, vector<16x512xf32> -> vector<16x512xf32>
    %c0_74 = arith.constant 0 : index
    %c0_75 = arith.constant 0 : index
    %57 = vector.load %arg7[%c0_74, %c0_75] : memref<16x512xf32, #tpu.memory_space<vmem>>, vector<16x512xf32>
    %58 = arith.addf %57, %56 : vector<16x512xf32>
    %c0_76 = arith.constant 0 : index
    %c0_77 = arith.constant 0 : index
    %59 = vector.load %arg7[%c0_76, %c0_77] : memref<16x512xf32, #tpu.memory_space<vmem>>, vector<16x512xf32>
    tpu.vector_store %arg7[%c0_76, %c0_77], %58 {strides = array<i32>} : memref<16x512xf32, #tpu.memory_space<vmem>>, vector<16x512xf32>,
    %c0_78 = arith.constant 0 : index
    %c2_79 = arith.constant 2 : index
    %c0_80 = arith.constant 0 : index
    %60 = vector.load %arg1[%c0_78, %c2_79, %c0_80] : memref<1x24x32xbf16, #tpu.memory_space<vmem>>, vector<1x16x32xbf16>
    %61 = vector.shape_cast %60 : vector<1x16x32xbf16> to vector<16x32xbf16>
    %c3_81 = arith.constant 3 : index
    %c0_82 = arith.constant 0 : index
    %c0_83 = arith.constant 0 : index
    %62 = vector.load %arg3[%c3_81, %c0_82, %c0_83] : memref<5x32x512xbf16, #tpu.memory_space<vmem>>, vector<1x32x512xbf16>
    %63 = vector.shape_cast %62 : vector<1x32x512xbf16> to vector<32x512xbf16>
    %cst_84 = arith.constant dense<0.000000e+00> : vector<16x512xf32>
    %64 = tpu.matmul %61, %63, %cst_84 {dimension_numbers = #tpu.dot_dimension_numbers<[1], [0], [0], [1], [0, 0, 1, 1], [], []>} : vector<16x32xbf16>, vector<32x512xbf16>, vector<16x512xf32> -> vector<16x512xf32>
    %c0_85 = arith.constant 0 : index
    %c0_86 = arith.constant 0 : index
    %65 = vector.load %arg7[%c0_85, %c0_86] : memref<16x512xf32, #tpu.memory_space<vmem>>, vector<16x512xf32>
    %66 = arith.addf %65, %64 : vector<16x512xf32>
    %c0_87 = arith.constant 0 : index
    %c0_88 = arith.constant 0 : index
    %67 = vector.load %arg7[%c0_87, %c0_88] : memref<16x512xf32, #tpu.memory_space<vmem>>, vector<16x512xf32>
    tpu.vector_store %arg7[%c0_87, %c0_88], %66 {strides = array<i32>} : memref<16x512xf32, #tpu.memory_space<vmem>>, vector<16x512xf32>,
    %c0_89 = arith.constant 0 : index
    %c2_90 = arith.constant 2 : index
    %c0_91 = arith.constant 0 : index
    %68 = vector.load %arg2[%c0_89, %c2_90, %c0_91] : memref<1x24x32xbf16, #tpu.memory_space<vmem>>, vector<1x16x32xbf16>
    %69 = vector.shape_cast %68 : vector<1x16x32xbf16> to vector<16x32xbf16>
    %c4_92 = arith.constant 4 : index
    %c0_93 = arith.constant 0 : index
    %c0_94 = arith.constant 0 : index
    %70 = vector.load %arg3[%c4_92, %c0_93, %c0_94] : memref<5x32x512xbf16, #tpu.memory_space<vmem>>, vector<1x32x512xbf16>
    %71 = vector.shape_cast %70 : vector<1x32x512xbf16> to vector<32x512xbf16>
    %cst_95 = arith.constant dense<0.000000e+00> : vector<16x512xf32>
    %72 = tpu.matmul %69, %71, %cst_95 {dimension_numbers = #tpu.dot_dimension_numbers<[1], [0], [0], [1], [0, 0, 1, 1], [], []>} : vector<16x32xbf16>, vector<32x512xbf16>, vector<16x512xf32> -> vector<16x512xf32>
    %c0_96 = arith.constant 0 : index
    %c0_97 = arith.constant 0 : index
    %73 = vector.load %arg7[%c0_96, %c0_97] : memref<16x512xf32, #tpu.memory_space<vmem>>, vector<16x512xf32>
    %74 = arith.addf %73, %72 : vector<16x512xf32>
    %c0_98 = arith.constant 0 : index
    %c0_99 = arith.constant 0 : index
    %75 = vector.load %arg7[%c0_98, %c0_99] : memref<16x512xf32, #tpu.memory_space<vmem>>, vector<16x512xf32>
    tpu.vector_store %arg7[%c0_98, %c0_99], %74 {strides = array<i32>} : memref<16x512xf32, #tpu.memory_space<vmem>>, vector<16x512xf32>,
    %c0_100 = arith.constant 0 : index
    %c0_101 = arith.constant 0 : index
    %76 = vector.load %arg6[%c0_100, %c0_101] : memref<16x512xf32, #tpu.memory_space<vmem>>, vector<16x512xf32>
    %c0_102 = arith.constant 0 : index
    %c0_103 = arith.constant 0 : index
    %77 = vector.load %arg7[%c0_102, %c0_103] : memref<16x512xf32, #tpu.memory_space<vmem>>, vector<16x512xf32>
    %78 = arith.maximumf %76, %77 : vector<16x512xf32>
    %79 = vector.extract_strided_slice %78 {offsets = [0, 0], sizes = [16, 224], strides = [1, 1]} : vector<16x512xf32> to vector<16x224xf32>
    %80 = vector.extract_strided_slice %78 {offsets = [0, 256], sizes = [16, 224], strides = [1, 1]} : vector<16x512xf32> to vector<16x224xf32>
    %81 = arith.maximumf %79, %80 : vector<16x224xf32>
    %c0_104 = arith.constant 0 : index
    %c0_105 = arith.constant 0 : index
    %82 = vector.load %arg4[%c0_104, %c0_105] : memref<1x224xf32, #tpu.memory_space<vmem>>, vector<1x224xf32>
    %83 = vector.broadcast %82 : vector<1x224xf32> to vector<16x224xf32>
    %84 = arith.addf %81, %83 : vector<16x224xf32>
    %cst_106 = arith.constant 0.000000e+00 : f32
    %85 = vector.broadcast %cst_106 : f32 to vector<16x224xf32>
    %86 = arith.maximumf %84, %85 : vector<16x224xf32>
    %87 = arith.truncf %86 : vector<16x224xf32> to vector<16x224xbf16>
    %c0_107 = arith.constant 0 : index
    %c0_108 = arith.constant 0 : index
    %c0_109 = arith.constant 0 : index
    %88 = vector.load %arg5[%c0_107, %c0_108, %c0_109] : memref<1x16x224xbf16, #tpu.memory_space<vmem>>, vector<1x16x224xbf16>
    %89 = vector.shape_cast %88 : vector<1x16x224xbf16> to vector<16x224xbf16>
    %90 = vector.shape_cast %87 : vector<16x224xbf16> to vector<1x16x224xbf16>
    tpu.vector_store %arg5[%c0_107, %c0_108, %c0_109], %90 {strides = array<i32>} : memref<1x16x224xbf16, #tpu.memory_space<vmem>>, vector<1x16x224xbf16>,
    return
  }
  func.func @transform_0(%arg0: i32) -> (i32, i32, i32) {
    %c0_i32 = arith.constant 0 : i32
    %c0_i32_0 = arith.constant 0 : i32
    %c0_i32_1 = arith.constant 0 : i32
    return %arg0, %c0_i32, %c0_i32_0 : i32, i32, i32
  }
  func.func @transform_1(%arg0: i32) -> (i32, i32, i32) {
    %c0_i32 = arith.constant 0 : i32
    %c0_i32_0 = arith.constant 0 : i32
    %c0_i32_1 = arith.constant 0 : i32
    return %arg0, %c0_i32, %c0_i32_0 : i32, i32, i32
  }
  func.func @transform_2(%arg0: i32) -> (i32, i32, i32) {
    %c0_i32 = arith.constant 0 : i32
    %c0_i32_0 = arith.constant 0 : i32
    %c0_i32_1 = arith.constant 0 : i32
    %c0_i32_2 = arith.constant 0 : i32
    return %c0_i32, %c0_i32_0, %c0_i32_1 : i32, i32, i32
  }
  func.func @transform_3(%arg0: i32) -> (i32, i32) {
    %c0_i32 = arith.constant 0 : i32
    %c0_i32_0 = arith.constant 0 : i32
    %c0_i32_1 = arith.constant 0 : i32
    return %c0_i32, %c0_i32_0 : i32, i32
  }
  func.func @transform_4(%arg0: i32) -> (i32, i32, i32) {
    %c0_i32 = arith.constant 0 : i32
    %c0_i32_0 = arith.constant 0 : i32
    %c0_i32_1 = arith.constant 0 : i32
    return %arg0, %c0_i32, %c0_i32_0 : i32, i32, i32
  }
}

module attributes {stable_mosaic.version = 11 : i64} {
  func.func @_conv_block_kernel(%arg0: i32, %arg1: memref<1x17x288xbf16, #tpu.memory_space<vmem>>, %arg2: memref<1x17x288xbf16, #tpu.memory_space<vmem>>, %arg3: memref<5x288x512xbf16, #tpu.memory_space<vmem>>, %arg4: memref<1x224xf32, #tpu.memory_space<vmem>>, %arg5: memref<1x9x224xbf16, #tpu.memory_space<vmem>>, %arg6: memref<9x512xf32, #tpu.memory_space<vmem>>, %arg7: memref<9x512xf32, #tpu.memory_space<vmem>>) attributes {dimension_semantics = [#tpu.dimension_semantics<parallel>], iteration_bounds = array<i64: 2>, scalar_prefetch = 0 : i64, scratch_operands = 2 : i64, tpu.core_type = #tpu.core_type<tc>, window_params = [{transform_indices = @transform_0, window_bounds = array<i64: 1, 17, 288>}, {transform_indices = @transform_1, window_bounds = array<i64: 1, 17, 288>}, {pipeline_mode = #tpu.pipeline_mode<synchronous>, transform_indices = @transform_2, window_bounds = array<i64: 5, 288, 512>}, {pipeline_mode = #tpu.pipeline_mode<synchronous>, transform_indices = @transform_3, window_bounds = array<i64: 1, 224>}, {transform_indices = @transform_4, window_bounds = array<i64: 1, 9, 224>}]} {
    %c0 = arith.constant 0 : index
    %c0_0 = arith.constant 0 : index
    %c0_1 = arith.constant 0 : index
    %0 = vector.load %arg1[%c0, %c0_0, %c0_1] : memref<1x17x288xbf16, #tpu.memory_space<vmem>>, vector<1x9x288xbf16>
    %1 = vector.shape_cast %0 : vector<1x9x288xbf16> to vector<9x288xbf16>
    %c0_2 = arith.constant 0 : index
    %c0_3 = arith.constant 0 : index
    %c0_4 = arith.constant 0 : index
    %2 = vector.load %arg3[%c0_2, %c0_3, %c0_4] : memref<5x288x512xbf16, #tpu.memory_space<vmem>>, vector<1x288x512xbf16>
    %3 = vector.shape_cast %2 : vector<1x288x512xbf16> to vector<288x512xbf16>
    %cst = arith.constant dense<0.000000e+00> : vector<9x512xf32>
    %4 = tpu.matmul %1, %3, %cst {dimension_numbers = #tpu.dot_dimension_numbers<[1], [0], [0], [1], [0, 0, 1, 1], [], []>} : vector<9x288xbf16>, vector<288x512xbf16>, vector<9x512xf32> -> vector<9x512xf32>
    %c0_5 = arith.constant 0 : index
    %c0_6 = arith.constant 0 : index
    %5 = vector.load %arg6[%c0_5, %c0_6] : memref<9x512xf32, #tpu.memory_space<vmem>>, vector<9x512xf32>
    tpu.vector_store %arg6[%c0_5, %c0_6], %4 {strides = array<i32>} : memref<9x512xf32, #tpu.memory_space<vmem>>, vector<9x512xf32>,
    %c0_7 = arith.constant 0 : index
    %c0_8 = arith.constant 0 : index
    %c0_9 = arith.constant 0 : index
    %6 = vector.load %arg2[%c0_7, %c0_8, %c0_9] : memref<1x17x288xbf16, #tpu.memory_space<vmem>>, vector<1x9x288xbf16>
    %7 = vector.shape_cast %6 : vector<1x9x288xbf16> to vector<9x288xbf16>
    %c1 = arith.constant 1 : index
    %c0_10 = arith.constant 0 : index
    %c0_11 = arith.constant 0 : index
    %8 = vector.load %arg3[%c1, %c0_10, %c0_11] : memref<5x288x512xbf16, #tpu.memory_space<vmem>>, vector<1x288x512xbf16>
    %9 = vector.shape_cast %8 : vector<1x288x512xbf16> to vector<288x512xbf16>
    %cst_12 = arith.constant dense<0.000000e+00> : vector<9x512xf32>
    %10 = tpu.matmul %7, %9, %cst_12 {dimension_numbers = #tpu.dot_dimension_numbers<[1], [0], [0], [1], [0, 0, 1, 1], [], []>} : vector<9x288xbf16>, vector<288x512xbf16>, vector<9x512xf32> -> vector<9x512xf32>
    %c0_13 = arith.constant 0 : index
    %c0_14 = arith.constant 0 : index
    %11 = vector.load %arg6[%c0_13, %c0_14] : memref<9x512xf32, #tpu.memory_space<vmem>>, vector<9x512xf32>
    %12 = arith.addf %11, %10 : vector<9x512xf32>
    %c0_15 = arith.constant 0 : index
    %c0_16 = arith.constant 0 : index
    %13 = vector.load %arg6[%c0_15, %c0_16] : memref<9x512xf32, #tpu.memory_space<vmem>>, vector<9x512xf32>
    tpu.vector_store %arg6[%c0_15, %c0_16], %12 {strides = array<i32>} : memref<9x512xf32, #tpu.memory_space<vmem>>, vector<9x512xf32>,
    %c0_17 = arith.constant 0 : index
    %c1_18 = arith.constant 1 : index
    %c0_19 = arith.constant 0 : index
    %14 = vector.load %arg1[%c0_17, %c1_18, %c0_19] : memref<1x17x288xbf16, #tpu.memory_space<vmem>>, vector<1x9x288xbf16>
    %15 = vector.shape_cast %14 : vector<1x9x288xbf16> to vector<9x288xbf16>
    %c2 = arith.constant 2 : index
    %c0_20 = arith.constant 0 : index
    %c0_21 = arith.constant 0 : index
    %16 = vector.load %arg3[%c2, %c0_20, %c0_21] : memref<5x288x512xbf16, #tpu.memory_space<vmem>>, vector<1x288x512xbf16>
    %17 = vector.shape_cast %16 : vector<1x288x512xbf16> to vector<288x512xbf16>
    %cst_22 = arith.constant dense<0.000000e+00> : vector<9x512xf32>
    %18 = tpu.matmul %15, %17, %cst_22 {dimension_numbers = #tpu.dot_dimension_numbers<[1], [0], [0], [1], [0, 0, 1, 1], [], []>} : vector<9x288xbf16>, vector<288x512xbf16>, vector<9x512xf32> -> vector<9x512xf32>
    %c0_23 = arith.constant 0 : index
    %c0_24 = arith.constant 0 : index
    %19 = vector.load %arg6[%c0_23, %c0_24] : memref<9x512xf32, #tpu.memory_space<vmem>>, vector<9x512xf32>
    %20 = arith.addf %19, %18 : vector<9x512xf32>
    %c0_25 = arith.constant 0 : index
    %c0_26 = arith.constant 0 : index
    %21 = vector.load %arg6[%c0_25, %c0_26] : memref<9x512xf32, #tpu.memory_space<vmem>>, vector<9x512xf32>
    tpu.vector_store %arg6[%c0_25, %c0_26], %20 {strides = array<i32>} : memref<9x512xf32, #tpu.memory_space<vmem>>, vector<9x512xf32>,
    %c0_27 = arith.constant 0 : index
    %c1_28 = arith.constant 1 : index
    %c0_29 = arith.constant 0 : index
    %22 = vector.load %arg2[%c0_27, %c1_28, %c0_29] : memref<1x17x288xbf16, #tpu.memory_space<vmem>>, vector<1x9x288xbf16>
    %23 = vector.shape_cast %22 : vector<1x9x288xbf16> to vector<9x288xbf16>
    %c3 = arith.constant 3 : index
    %c0_30 = arith.constant 0 : index
    %c0_31 = arith.constant 0 : index
    %24 = vector.load %arg3[%c3, %c0_30, %c0_31] : memref<5x288x512xbf16, #tpu.memory_space<vmem>>, vector<1x288x512xbf16>
    %25 = vector.shape_cast %24 : vector<1x288x512xbf16> to vector<288x512xbf16>
    %cst_32 = arith.constant dense<0.000000e+00> : vector<9x512xf32>
    %26 = tpu.matmul %23, %25, %cst_32 {dimension_numbers = #tpu.dot_dimension_numbers<[1], [0], [0], [1], [0, 0, 1, 1], [], []>} : vector<9x288xbf16>, vector<288x512xbf16>, vector<9x512xf32> -> vector<9x512xf32>
    %c0_33 = arith.constant 0 : index
    %c0_34 = arith.constant 0 : index
    %27 = vector.load %arg6[%c0_33, %c0_34] : memref<9x512xf32, #tpu.memory_space<vmem>>, vector<9x512xf32>
    %28 = arith.addf %27, %26 : vector<9x512xf32>
    %c0_35 = arith.constant 0 : index
    %c0_36 = arith.constant 0 : index
    %29 = vector.load %arg6[%c0_35, %c0_36] : memref<9x512xf32, #tpu.memory_space<vmem>>, vector<9x512xf32>
    tpu.vector_store %arg6[%c0_35, %c0_36], %28 {strides = array<i32>} : memref<9x512xf32, #tpu.memory_space<vmem>>, vector<9x512xf32>,
    %c0_37 = arith.constant 0 : index
    %c2_38 = arith.constant 2 : index
    %c0_39 = arith.constant 0 : index
    %30 = vector.load %arg1[%c0_37, %c2_38, %c0_39] : memref<1x17x288xbf16, #tpu.memory_space<vmem>>, vector<1x9x288xbf16>
    %31 = vector.shape_cast %30 : vector<1x9x288xbf16> to vector<9x288xbf16>
    %c4 = arith.constant 4 : index
    %c0_40 = arith.constant 0 : index
    %c0_41 = arith.constant 0 : index
    %32 = vector.load %arg3[%c4, %c0_40, %c0_41] : memref<5x288x512xbf16, #tpu.memory_space<vmem>>, vector<1x288x512xbf16>
    %33 = vector.shape_cast %32 : vector<1x288x512xbf16> to vector<288x512xbf16>
    %cst_42 = arith.constant dense<0.000000e+00> : vector<9x512xf32>
    %34 = tpu.matmul %31, %33, %cst_42 {dimension_numbers = #tpu.dot_dimension_numbers<[1], [0], [0], [1], [0, 0, 1, 1], [], []>} : vector<9x288xbf16>, vector<288x512xbf16>, vector<9x512xf32> -> vector<9x512xf32>
    %c0_43 = arith.constant 0 : index
    %c0_44 = arith.constant 0 : index
    %35 = vector.load %arg6[%c0_43, %c0_44] : memref<9x512xf32, #tpu.memory_space<vmem>>, vector<9x512xf32>
    %36 = arith.addf %35, %34 : vector<9x512xf32>
    %c0_45 = arith.constant 0 : index
    %c0_46 = arith.constant 0 : index
    %37 = vector.load %arg6[%c0_45, %c0_46] : memref<9x512xf32, #tpu.memory_space<vmem>>, vector<9x512xf32>
    tpu.vector_store %arg6[%c0_45, %c0_46], %36 {strides = array<i32>} : memref<9x512xf32, #tpu.memory_space<vmem>>, vector<9x512xf32>,
    %c0_47 = arith.constant 0 : index
    %c0_48 = arith.constant 0 : index
    %c0_49 = arith.constant 0 : index
    %38 = vector.load %arg2[%c0_47, %c0_48, %c0_49] : memref<1x17x288xbf16, #tpu.memory_space<vmem>>, vector<1x9x288xbf16>
    %39 = vector.shape_cast %38 : vector<1x9x288xbf16> to vector<9x288xbf16>
    %c0_50 = arith.constant 0 : index
    %c0_51 = arith.constant 0 : index
    %c0_52 = arith.constant 0 : index
    %40 = vector.load %arg3[%c0_50, %c0_51, %c0_52] : memref<5x288x512xbf16, #tpu.memory_space<vmem>>, vector<1x288x512xbf16>
    %41 = vector.shape_cast %40 : vector<1x288x512xbf16> to vector<288x512xbf16>
    %cst_53 = arith.constant dense<0.000000e+00> : vector<9x512xf32>
    %42 = tpu.matmul %39, %41, %cst_53 {dimension_numbers = #tpu.dot_dimension_numbers<[1], [0], [0], [1], [0, 0, 1, 1], [], []>} : vector<9x288xbf16>, vector<288x512xbf16>, vector<9x512xf32> -> vector<9x512xf32>
    %c0_54 = arith.constant 0 : index
    %c0_55 = arith.constant 0 : index
    %43 = vector.load %arg7[%c0_54, %c0_55] : memref<9x512xf32, #tpu.memory_space<vmem>>, vector<9x512xf32>
    tpu.vector_store %arg7[%c0_54, %c0_55], %42 {strides = array<i32>} : memref<9x512xf32, #tpu.memory_space<vmem>>, vector<9x512xf32>,
    %c0_56 = arith.constant 0 : index
    %c1_57 = arith.constant 1 : index
    %c0_58 = arith.constant 0 : index
    %44 = vector.load %arg1[%c0_56, %c1_57, %c0_58] : memref<1x17x288xbf16, #tpu.memory_space<vmem>>, vector<1x9x288xbf16>
    %45 = vector.shape_cast %44 : vector<1x9x288xbf16> to vector<9x288xbf16>
    %c1_59 = arith.constant 1 : index
    %c0_60 = arith.constant 0 : index
    %c0_61 = arith.constant 0 : index
    %46 = vector.load %arg3[%c1_59, %c0_60, %c0_61] : memref<5x288x512xbf16, #tpu.memory_space<vmem>>, vector<1x288x512xbf16>
    %47 = vector.shape_cast %46 : vector<1x288x512xbf16> to vector<288x512xbf16>
    %cst_62 = arith.constant dense<0.000000e+00> : vector<9x512xf32>
    %48 = tpu.matmul %45, %47, %cst_62 {dimension_numbers = #tpu.dot_dimension_numbers<[1], [0], [0], [1], [0, 0, 1, 1], [], []>} : vector<9x288xbf16>, vector<288x512xbf16>, vector<9x512xf32> -> vector<9x512xf32>
    %c0_63 = arith.constant 0 : index
    %c0_64 = arith.constant 0 : index
    %49 = vector.load %arg7[%c0_63, %c0_64] : memref<9x512xf32, #tpu.memory_space<vmem>>, vector<9x512xf32>
    %50 = arith.addf %49, %48 : vector<9x512xf32>
    %c0_65 = arith.constant 0 : index
    %c0_66 = arith.constant 0 : index
    %51 = vector.load %arg7[%c0_65, %c0_66] : memref<9x512xf32, #tpu.memory_space<vmem>>, vector<9x512xf32>
    tpu.vector_store %arg7[%c0_65, %c0_66], %50 {strides = array<i32>} : memref<9x512xf32, #tpu.memory_space<vmem>>, vector<9x512xf32>,
    %c0_67 = arith.constant 0 : index
    %c1_68 = arith.constant 1 : index
    %c0_69 = arith.constant 0 : index
    %52 = vector.load %arg2[%c0_67, %c1_68, %c0_69] : memref<1x17x288xbf16, #tpu.memory_space<vmem>>, vector<1x9x288xbf16>
    %53 = vector.shape_cast %52 : vector<1x9x288xbf16> to vector<9x288xbf16>
    %c2_70 = arith.constant 2 : index
    %c0_71 = arith.constant 0 : index
    %c0_72 = arith.constant 0 : index
    %54 = vector.load %arg3[%c2_70, %c0_71, %c0_72] : memref<5x288x512xbf16, #tpu.memory_space<vmem>>, vector<1x288x512xbf16>
    %55 = vector.shape_cast %54 : vector<1x288x512xbf16> to vector<288x512xbf16>
    %cst_73 = arith.constant dense<0.000000e+00> : vector<9x512xf32>
    %56 = tpu.matmul %53, %55, %cst_73 {dimension_numbers = #tpu.dot_dimension_numbers<[1], [0], [0], [1], [0, 0, 1, 1], [], []>} : vector<9x288xbf16>, vector<288x512xbf16>, vector<9x512xf32> -> vector<9x512xf32>
    %c0_74 = arith.constant 0 : index
    %c0_75 = arith.constant 0 : index
    %57 = vector.load %arg7[%c0_74, %c0_75] : memref<9x512xf32, #tpu.memory_space<vmem>>, vector<9x512xf32>
    %58 = arith.addf %57, %56 : vector<9x512xf32>
    %c0_76 = arith.constant 0 : index
    %c0_77 = arith.constant 0 : index
    %59 = vector.load %arg7[%c0_76, %c0_77] : memref<9x512xf32, #tpu.memory_space<vmem>>, vector<9x512xf32>
    tpu.vector_store %arg7[%c0_76, %c0_77], %58 {strides = array<i32>} : memref<9x512xf32, #tpu.memory_space<vmem>>, vector<9x512xf32>,
    %c0_78 = arith.constant 0 : index
    %c2_79 = arith.constant 2 : index
    %c0_80 = arith.constant 0 : index
    %60 = vector.load %arg1[%c0_78, %c2_79, %c0_80] : memref<1x17x288xbf16, #tpu.memory_space<vmem>>, vector<1x9x288xbf16>
    %61 = vector.shape_cast %60 : vector<1x9x288xbf16> to vector<9x288xbf16>
    %c3_81 = arith.constant 3 : index
    %c0_82 = arith.constant 0 : index
    %c0_83 = arith.constant 0 : index
    %62 = vector.load %arg3[%c3_81, %c0_82, %c0_83] : memref<5x288x512xbf16, #tpu.memory_space<vmem>>, vector<1x288x512xbf16>
    %63 = vector.shape_cast %62 : vector<1x288x512xbf16> to vector<288x512xbf16>
    %cst_84 = arith.constant dense<0.000000e+00> : vector<9x512xf32>
    %64 = tpu.matmul %61, %63, %cst_84 {dimension_numbers = #tpu.dot_dimension_numbers<[1], [0], [0], [1], [0, 0, 1, 1], [], []>} : vector<9x288xbf16>, vector<288x512xbf16>, vector<9x512xf32> -> vector<9x512xf32>
    %c0_85 = arith.constant 0 : index
    %c0_86 = arith.constant 0 : index
    %65 = vector.load %arg7[%c0_85, %c0_86] : memref<9x512xf32, #tpu.memory_space<vmem>>, vector<9x512xf32>
    %66 = arith.addf %65, %64 : vector<9x512xf32>
    %c0_87 = arith.constant 0 : index
    %c0_88 = arith.constant 0 : index
    %67 = vector.load %arg7[%c0_87, %c0_88] : memref<9x512xf32, #tpu.memory_space<vmem>>, vector<9x512xf32>
    tpu.vector_store %arg7[%c0_87, %c0_88], %66 {strides = array<i32>} : memref<9x512xf32, #tpu.memory_space<vmem>>, vector<9x512xf32>,
    %c0_89 = arith.constant 0 : index
    %c2_90 = arith.constant 2 : index
    %c0_91 = arith.constant 0 : index
    %68 = vector.load %arg2[%c0_89, %c2_90, %c0_91] : memref<1x17x288xbf16, #tpu.memory_space<vmem>>, vector<1x9x288xbf16>
    %69 = vector.shape_cast %68 : vector<1x9x288xbf16> to vector<9x288xbf16>
    %c4_92 = arith.constant 4 : index
    %c0_93 = arith.constant 0 : index
    %c0_94 = arith.constant 0 : index
    %70 = vector.load %arg3[%c4_92, %c0_93, %c0_94] : memref<5x288x512xbf16, #tpu.memory_space<vmem>>, vector<1x288x512xbf16>
    %71 = vector.shape_cast %70 : vector<1x288x512xbf16> to vector<288x512xbf16>
    %cst_95 = arith.constant dense<0.000000e+00> : vector<9x512xf32>
    %72 = tpu.matmul %69, %71, %cst_95 {dimension_numbers = #tpu.dot_dimension_numbers<[1], [0], [0], [1], [0, 0, 1, 1], [], []>} : vector<9x288xbf16>, vector<288x512xbf16>, vector<9x512xf32> -> vector<9x512xf32>
    %c0_96 = arith.constant 0 : index
    %c0_97 = arith.constant 0 : index
    %73 = vector.load %arg7[%c0_96, %c0_97] : memref<9x512xf32, #tpu.memory_space<vmem>>, vector<9x512xf32>
    %74 = arith.addf %73, %72 : vector<9x512xf32>
    %c0_98 = arith.constant 0 : index
    %c0_99 = arith.constant 0 : index
    %75 = vector.load %arg7[%c0_98, %c0_99] : memref<9x512xf32, #tpu.memory_space<vmem>>, vector<9x512xf32>
    tpu.vector_store %arg7[%c0_98, %c0_99], %74 {strides = array<i32>} : memref<9x512xf32, #tpu.memory_space<vmem>>, vector<9x512xf32>,
    %c0_100 = arith.constant 0 : index
    %c0_101 = arith.constant 0 : index
    %76 = vector.load %arg6[%c0_100, %c0_101] : memref<9x512xf32, #tpu.memory_space<vmem>>, vector<9x512xf32>
    %c0_102 = arith.constant 0 : index
    %c0_103 = arith.constant 0 : index
    %77 = vector.load %arg7[%c0_102, %c0_103] : memref<9x512xf32, #tpu.memory_space<vmem>>, vector<9x512xf32>
    %78 = arith.maximumf %76, %77 : vector<9x512xf32>
    %79 = vector.extract_strided_slice %78 {offsets = [0, 0], sizes = [9, 224], strides = [1, 1]} : vector<9x512xf32> to vector<9x224xf32>
    %80 = vector.extract_strided_slice %78 {offsets = [0, 256], sizes = [9, 224], strides = [1, 1]} : vector<9x512xf32> to vector<9x224xf32>
    %81 = arith.maximumf %79, %80 : vector<9x224xf32>
    %c0_104 = arith.constant 0 : index
    %c0_105 = arith.constant 0 : index
    %82 = vector.load %arg4[%c0_104, %c0_105] : memref<1x224xf32, #tpu.memory_space<vmem>>, vector<1x224xf32>
    %83 = vector.broadcast %82 : vector<1x224xf32> to vector<9x224xf32>
    %84 = arith.addf %81, %83 : vector<9x224xf32>
    %cst_106 = arith.constant 0.000000e+00 : f32
    %85 = vector.broadcast %cst_106 : f32 to vector<9x224xf32>
    %86 = arith.maximumf %84, %85 : vector<9x224xf32>
    %87 = arith.truncf %86 : vector<9x224xf32> to vector<9x224xbf16>
    %c0_107 = arith.constant 0 : index
    %c0_108 = arith.constant 0 : index
    %c0_109 = arith.constant 0 : index
    %88 = vector.load %arg5[%c0_107, %c0_108, %c0_109] : memref<1x9x224xbf16, #tpu.memory_space<vmem>>, vector<1x9x224xbf16>
    %89 = vector.shape_cast %88 : vector<1x9x224xbf16> to vector<9x224xbf16>
    %90 = vector.shape_cast %87 : vector<9x224xbf16> to vector<1x9x224xbf16>
    tpu.vector_store %arg5[%c0_107, %c0_108, %c0_109], %90 {strides = array<i32>} : memref<1x9x224xbf16, #tpu.memory_space<vmem>>, vector<1x9x224xbf16>,
    return
  }
  func.func @transform_0(%arg0: i32) -> (i32, i32, i32) {
    %c0_i32 = arith.constant 0 : i32
    %c0_i32_0 = arith.constant 0 : i32
    %c0_i32_1 = arith.constant 0 : i32
    return %arg0, %c0_i32, %c0_i32_0 : i32, i32, i32
  }
  func.func @transform_1(%arg0: i32) -> (i32, i32, i32) {
    %c0_i32 = arith.constant 0 : i32
    %c0_i32_0 = arith.constant 0 : i32
    %c0_i32_1 = arith.constant 0 : i32
    return %arg0, %c0_i32, %c0_i32_0 : i32, i32, i32
  }
  func.func @transform_2(%arg0: i32) -> (i32, i32, i32) {
    %c0_i32 = arith.constant 0 : i32
    %c0_i32_0 = arith.constant 0 : i32
    %c0_i32_1 = arith.constant 0 : i32
    %c0_i32_2 = arith.constant 0 : i32
    return %c0_i32, %c0_i32_0, %c0_i32_1 : i32, i32, i32
  }
  func.func @transform_3(%arg0: i32) -> (i32, i32) {
    %c0_i32 = arith.constant 0 : i32
    %c0_i32_0 = arith.constant 0 : i32
    %c0_i32_1 = arith.constant 0 : i32
    return %c0_i32, %c0_i32_0 : i32, i32
  }
  func.func @transform_4(%arg0: i32) -> (i32, i32, i32) {
    %c0_i32 = arith.constant 0 : i32
    %c0_i32_0 = arith.constant 0 : i32
    %c0_i32_1 = arith.constant 0 : i32
    return %arg0, %c0_i32, %c0_i32_0 : i32, i32, i32
  }
}

module attributes {stable_mosaic.version = 11 : i64} {
  func.func @_matmul_bias_kernel(%arg0: i32, %arg1: memref<8x1568xbf16, #tpu.memory_space<vmem>>, %arg2: memref<1568x128xbf16, #tpu.memory_space<vmem>>, %arg3: memref<1x128xf32, #tpu.memory_space<vmem>>, %arg4: memref<8x128xf32, #tpu.memory_space<vmem>>) attributes {dimension_semantics = [#tpu.dimension_semantics<parallel>], iteration_bounds = array<i64: 1>, scalar_prefetch = 0 : i64, scratch_operands = 0 : i64, tpu.core_type = #tpu.core_type<tc>, window_params = [{transform_indices = @transform_0, window_bounds = array<i64: 8, 1568>}, {pipeline_mode = #tpu.pipeline_mode<synchronous>, transform_indices = @transform_1, window_bounds = array<i64: 1568, 128>}, {pipeline_mode = #tpu.pipeline_mode<synchronous>, transform_indices = @transform_2, window_bounds = array<i64: 1, 128>}, {transform_indices = @transform_3, window_bounds = array<i64: 8, 128>}]} {
    %c0 = arith.constant 0 : index
    %c0_0 = arith.constant 0 : index
    %0 = vector.load %arg1[%c0, %c0_0] : memref<8x1568xbf16, #tpu.memory_space<vmem>>, vector<8x1568xbf16>
    %c0_1 = arith.constant 0 : index
    %c0_2 = arith.constant 0 : index
    %1 = vector.load %arg2[%c0_1, %c0_2] : memref<1568x128xbf16, #tpu.memory_space<vmem>>, vector<1568x128xbf16>
    %cst = arith.constant dense<0.000000e+00> : vector<8x128xf32>
    %2 = tpu.matmul %0, %1, %cst {dimension_numbers = #tpu.dot_dimension_numbers<[1], [0], [0], [1], [0, 0, 1, 1], [], []>} : vector<8x1568xbf16>, vector<1568x128xbf16>, vector<8x128xf32> -> vector<8x128xf32>
    %c0_3 = arith.constant 0 : index
    %c0_4 = arith.constant 0 : index
    %3 = vector.load %arg3[%c0_3, %c0_4] : memref<1x128xf32, #tpu.memory_space<vmem>>, vector<1x128xf32>
    %4 = vector.broadcast %3 : vector<1x128xf32> to vector<8x128xf32>
    %5 = arith.addf %2, %4 : vector<8x128xf32>
    %c0_5 = arith.constant 0 : index
    %c0_6 = arith.constant 0 : index
    %6 = vector.load %arg4[%c0_5, %c0_6] : memref<8x128xf32, #tpu.memory_space<vmem>>, vector<8x128xf32>
    tpu.vector_store %arg4[%c0_5, %c0_6], %5 {strides = array<i32>} : memref<8x128xf32, #tpu.memory_space<vmem>>, vector<8x128xf32>,
    return
  }
  func.func @transform_0(%arg0: i32) -> (i32, i32) {
    %c0_i32 = arith.constant 0 : i32
    %c0_i32_0 = arith.constant 0 : i32
    return %arg0, %c0_i32 : i32, i32
  }
  func.func @transform_1(%arg0: i32) -> (i32, i32) {
    %c0_i32 = arith.constant 0 : i32
    %c0_i32_0 = arith.constant 0 : i32
    %c0_i32_1 = arith.constant 0 : i32
    return %c0_i32, %c0_i32_0 : i32, i32
  }
  func.func @transform_2(%arg0: i32) -> (i32, i32) {
    %c0_i32 = arith.constant 0 : i32
    %c0_i32_0 = arith.constant 0 : i32
    %c0_i32_1 = arith.constant 0 : i32
    return %c0_i32, %c0_i32_0 : i32, i32
  }
  func.func @transform_3(%arg0: i32) -> (i32, i32) {
    %c0_i32 = arith.constant 0 : i32
    %c0_i32_0 = arith.constant 0 : i32
    return %arg0, %c0_i32 : i32, i32
  }
}

</mosaic_0001>

<bundles_post_ra>
// kernel: tile.13
= control target key start
LH: loop header
LB: loop body
LE: loop exit
PB: predicated region body
PF: predicated region fallthrough
CT: control target
= control target key end

     0   :  { %2 = vsyncpa [#allocation1], 0  ;;  %s47_s6 = smov [#allocation0]   ;;  %s76_s0 = inlined_call_operand.hbm [shape: f32[16], index: 0, kind: input, shape index: {}]   ;;  %s77_s1 = inlined_call_operand.vmem [shape: f32[14,16], index: 1, kind: output, shape index: {}]  }
   0x1   :  { %s9_s7 = sshll.u32 %s47_s6, 4  ;;  %s23_s10 = scalar_lea.hbm %s76_s0, 16  ;;  %s10_s7 = int_to_ptr.vmem [resolvable:$true] %s9_s7 }
   0x2   :  { %p24_p0 = scmp.ne.s32.totalorder %s76_s0, %s23_s10  ;;  %p27_p1 = scmp.lt.u32.totalorder %s23_s10, %s76_s0 }
   0x4   :  { %p29_p2 = pnand %p27_p1, %p24_p0 }
   0x6   :  { %32 = shalt.err (!%p29_p2)
}
   0x7   :  { %s33_s15 = scalar_lea.vmem %s10_s7, 16  ;;  %s37_s16 = scalar_lea.vmem %s10_s7, 32 }
   0x8   :  { %p34_p3 = scmp.ne.s32.totalorder %s10_s7, %s33_s15  ;;  %p38_p4 = scmp.lt.s32.totalorder %s10_s7, %s10_s7 }
   0x9   :  { %p39_p5 = scmp.lt.s32.totalorder %s37_s16, %s33_s15 }
   0xb   :  { %p40_p6 = por %p39_p5, %p38_p4 }
   0xd   :  { %p41_p7 = pnand %p40_p6, %p34_p3 }
   0xf   :  { %44 = shalt.err (!%p41_p7)
}
  0x10   :  { %12 = dma.hbm_to_vmem [thread:$0]  %s76_s0, 16, %s10_s7, [#allocation1]  }
  0x11   :  { %45 = dma.done.wait [#allocation1], 16  }
  0x12   :  { %46 = vsyncadd [#allocation1], 4294967280  ;;  %v16_v0 = vld [vmem:[#allocation0] ss:$0 sm:$0xff] }
  0x13   :  { %17 = vst [vmem:[%s77_s1] sm:$0xff] %v16_v0  ;;  %21 = vst [vmem:[%s77_s1 + $0x8] sm:$0xff] %v16_v0 }
  0x14   :  { %20 = vsyncpa [#allocation1], 1 }

// kernel: tile.14
= control target key start
LH: loop header
LB: loop body
LE: loop exit
PB: predicated region body
PF: predicated region fallthrough
CT: control target
= control target key end

     0   :  { %s19_s8 = smov 3  ;;  %s79_s9 = smov 112   ;;  %vm4_vm0 = vcmask 130048   ;;  %vm10_vm1 = vcmask 1048448   ;;  %vm16_vm2 = vcmask 917248   ;;  %vm23_vm3 = vcmask 786048   ;;  %s126_s0 = inlined_call_operand.vmem [shape: f32[14,16], index: 0, kind: input, shape index: {}]   ;;  %s127_s1 = inlined_call_operand.vmem [shape: f32[1,224], index: 1, kind: output, shape index: {}]  }
   0x1   :  { %v64_v0 = vld [vmem:[%s126_s0 + $0x7] sm:$0x1]   ;;  %v66_v1 = vld [vmem:[%s126_s0 + $0x5] ss:$8 sm:%s19_s8]   ;;  %s80_s12 = smov 80   ;;  %s26_s15 = smov 3 }
   0x2   :  { %8 = vrot.lane.b32.xlu0 %v64_v0, %s79_s9  ;;  %21 = vrot.lane.b32.xlu1 %v66_v1, %s80_s12  ;;  %v65_v2 = vld [vmem:[%s126_s0 + $0x6] sm:$0x1]   ;;  %s33_s18 = smov 3  ;;  %s40_s19 = smov 3  ;;  %vm30_vm4 = vcmask 654848   ;;  %vm37_vm5 = vcmask 523648  }
   0x3   :  { %v67_v3 = vld [vmem:[%s126_s0 + $0x4] ss:$8 sm:%s26_s15]   ;;  %s81_s20 = smov 96   ;;  %s82_s21 = smov 64   ;;  %v68_v4 = vld [vmem:[%s126_s0 + $0x3] ss:$8 sm:%s33_s18]  }
   0x4   :  { %s2_s24 = smov 3  ;;  %v69_v5 = vld [vmem:[%s126_s0 + $0x2] ss:$8 sm:%s40_s19]   ;;  %s47_s27 = smov 3  ;;  %vm44_vm6 = vcmask 392448   ;;  %vm51_vm7 = vcmask 261248  }
   0x5   :  { %v3_v6 = vld [vmem:[%s126_s0] ss:$8 sm:%s2_s24]   ;;  %s83_s30 = smov 48   ;;  %s84_s2 = smov 32   ;;  %v70_v7 = vld [vmem:[%s126_s0 + $0x1] ss:$8 sm:%s47_s27]  }
   0x6   :  { %14 = vrot.lane.b32.xlu0 %v65_v2, %s81_s20  ;;  %28 = vrot.lane.b32.xlu1 %v67_v3, %s82_s21  ;;  %5 = vst.msk [vmem:[#allocation0] ss:$8 sm:$0x3] %vm4_vm0, %v3_v6   ;;  %s85_s0 = smov 16  }
   0xa   :  { %35 = vrot.lane.b32.xlu0 %v68_v4, %s83_s30  ;;  %42 = vrot.lane.b32.xlu1 %v69_v5, %s84_s2 }
   0xe   :  { %49 = vrot.lane.b32.xlu0 %v70_v7, %s85_s0 }
  0x74   :  { %v9_v8 = vpop.permute.xlu0 %8   ;;  %v22_v9 = vpop.permute.xlu1 %21  }
  0x75   :  { %11 = vst.msk [vmem:[#allocation0] sm:$0x1] %vm10_vm1, %v9_v8  }
  0x78   :  { %v15_v10 = vpop.permute.xlu0 %14   ;;  %v29_v11 = vpop.permute.xlu1 %28  }
  0x79   :  { %17 = vst.msk [vmem:[#allocation0] sm:$0x1] %vm16_vm2, %v15_v10  }
  0x7a   :  { %24 = vst.msk [vmem:[#allocation0] ss:$8 sm:$0x3] %vm23_vm3, %v22_v9  }
  0x7b   :  { %31 = vst.msk [vmem:[#allocation0] ss:$8 sm:$0x3] %vm30_vm4, %v29_v11  }
  0x7c   :  { %v36_v12 = vpop.permute.xlu0 %35   ;;  %v43_v13 = vpop.permute.xlu1 %42  }
  0x7d   :  { %38 = vst.msk [vmem:[#allocation0] ss:$8 sm:$0x3] %vm37_vm5, %v36_v12  }
  0x7e   :  { %45 = vst.msk [vmem:[#allocation0] ss:$8 sm:$0x3] %vm44_vm6, %v43_v13  }
  0x80   :  { %v50_v14 = vpop.permute.xlu0 %49  }
  0x81   :  { %52 = vst.msk [vmem:[#allocation0] ss:$8 sm:$0x3] %vm51_vm7, %v50_v14  }
  0x88   :  { %v56_v15 = vld [vmem:[#allocation0] sm:$0x1]  ;;  %v60_v16 = vld [vmem:[#allocation0 + $0x8] sm:$0x1] }
  0x89   :  { %58 = vst [vmem:[%s127_s1] sm:$0x1] %v56_v15  ;;  %71 = vst [vmem:[%s127_s1 + $0x1] sm:$0x1] %v60_v16 }

// kernel: cnn_forward.3
= control target key start
LH: loop header
LB: loop body
LE: loop exit
PB: predicated region body
PF: predicated region fallthrough
CT: control target
= control target key end

     0   :  { %s2473_s15 = smov 0   ;;  %s2848_s0 = inlined_call_operand.vmem [shape: bf16[2,24,32], index: 0, kind: input, shape index: {}]   ;;  %s2849_s1 = inlined_call_operand.vmem [shape: bf16[2,24,32], index: 1, kind: input, shape index: {}]   ;;  %s2850_s2 = inlined_call_operand.vmem [shape: bf16[5,32,512], index: 2, kind: input, shape index: {}]   ;;  %s2851_s3 = inlined_call_operand.vmem [shape: f32[1,224], index: 3, kind: input, shape index: {}]   ;;  %s2852_s4 = inlined_call_operand.vmem [shape: bf16[2,16,224], index: 4, kind: output, shape index: {}]  }
   0x1 LB: > { %s2091_s16 = sadd.s32 4294967295, %s2445_s15   ;;  %p2095_p0 = scmp.ge.s32.totalorder %s2445_s15, 1  ;;  %s2445_s15 = sphi %s2473_s15, %s14_s15  }
   0x2   : > { %p172_p1 = scmp.lt.s32.totalorder %s2445_s15, 3 }
   0x4   : > { %p173_p2 = pnand %p2095_p0, %p172_p1 }
   0x5   : > { %v2484_v0 = vld [vmem:[%s2850_s2 + $0x4] ss:$16 sps:$4 sm:$0xff] (!%p173_p2)   ;;  %p203_p3 = scmp.lt.s32.totalorder (!%p173_p2), %s2091_s16, 1  ;;  %v2489_v1 = vld [vmem:[%s2850_s2 + $0xc] ss:$16 sps:$4 sm:$0xff] (!%p173_p2)   ;;  %v2447_v2 = vmov (!%p173_p2), 0  }
   0x6   : > { %176 = sbr.rel (%p173_p2) target bundleno = 348 (0x15c), region = 36  ;;  %310 = vmatprep.mubr.bf16.mxu0 (!%p173_p2), %v2447_v2  ;;  %353 = vmatprep.mubr.bf16.mxu1 (!%p173_p2), %v2447_v2  ;;  %v2497_v3 = vld [vmem:[%s2850_s2] ss:$16 sps:$4 sm:$0xff] (!%p173_p2)   ;;  %v2502_v4 = vld [vmem:[%s2850_s2 + $0x8] ss:$16 sps:$4 sm:$0xff] (!%p173_p2)   ;;  %vm274_vm0 = vcmask (!%p173_p2), 261120  }
   0x7   : > { %278 = vmatprep.subr.bf16.mxu0 (!%p173_p2), %v2484_v0  ;;  %321 = vmatprep.subr.bf16.mxu1 (!%p173_p2), %v2489_v1  ;;  %v2510_v5 = vld [vmem:[%s2850_s2 + $0x24] ss:$16 sps:$4 sm:$0xff] (!%p173_p2)   ;;  %v2517_v6 = vld [vmem:[%s2850_s2 + $0x2c] ss:$16 sps:$4 sm:$0xff] (!%p173_p2)   ;;  %v2522_v7 = vld [vmem:[%s2850_s2 + $0x20] ss:$16 sps:$4 sm:$0xff] (!%p173_p2)  }
   0x8   : > { %279 = vmatpush1.bf16.msra.mxu0 (!%p173_p2), %v2497_v3  ;;  %322 = vmatpush1.bf16.msra.mxu1 (!%p173_p2), %v2502_v4  ;;  %v2529_v8 = vld [vmem:[%s2850_s2 + $0x28] ss:$16 sps:$4 sm:$0xff] (!%p173_p2)   ;;  %v2540_v9 = vld [vmem:[%s2850_s2 + $0x40] ss:$16 sps:$4 sm:$0xff] (!%p173_p2)   ;;  %v2545_v10 = vld [vmem:[%s2850_s2 + $0x44] ss:$16 sps:$4 sm:$0xff] (!%p173_p2)  }
   0x9   : > { %280 = vmatprep.subr.bf16.mxu0 (!%p173_p2), %v2510_v5  ;;  %323 = vmatprep.subr.bf16.mxu1 (!%p173_p2), %v2517_v6  ;;  %v2553_v12 = vld [vmem:[%s2850_s2 + $0x48] ss:$16 sps:$4 sm:$0xff] (!%p173_p2)   ;;  %v2558_v13 = vld [vmem:[%s2850_s2 + $0x4c] ss:$16 sps:$4 sm:$0xff] (!%p173_p2)   ;;  %v2565_v14 = vld [vmem:[%s2850_s2 + $0x64] ss:$16 sps:$4 sm:$0xff] (!%p173_p2)  }
   0xa   : > { %v2577_v15 = vld [vmem:[%s2850_s2 + $0x60] ss:$16 sps:$4 sm:$0xff] (!%p173_p2)   ;;  %v2582_v16 = vld [vmem:[%s2850_s2 + $0x6c] ss:$16 sps:$4 sm:$0xff] (!%p173_p2)   ;;  %v2589_v17 = vld [vmem:[%s2850_s2 + $0x68] ss:$16 sps:$4 sm:$0xff] (!%p173_p2)  }
   0xb   : > { %v2596_v18 = vld [vmem:[%s2850_s2 + $0x84] ss:$16 sps:$4 sm:$0xff] (!%p173_p2)   ;;  %v2603_v19 = vld [vmem:[%s2850_s2 + $0x8c] ss:$16 sps:$4 sm:$0xff] (!%p173_p2)   ;;  %v2613_v21 = vld [vmem:[%s2850_s2 + $0x80] ss:$16 sps:$4 sm:$0xff] (!%p173_p2)  }
   0xc   : > { %281 = vmatpush1.bf16.msra.mxu0 (!%p173_p2), %v2522_v7  ;;  %324 = vmatpush1.bf16.msra.mxu1 (!%p173_p2), %v2529_v8  ;;  %v2618_v22 = vld [vmem:[%s2850_s2 + $0x88] ss:$16 sps:$4 sm:$0xff] (!%p173_p2)   ;;  %v2623_v23 = vld [vmem:[%s2850_s2 + $0xa4] ss:$16 sps:$4 sm:$0xff] (!%p173_p2)   ;;  %v2629_v25 = vld [vmem:[%s2850_s2 + $0xac] ss:$16 sps:$4 sm:$0xff] (!%p173_p2)  }
   0xd   : > { %s2854_s16 = smov (!%p203_p3, %s2091_s16), 1  ;;  %431 = vmatprep.subr.bf16.mxu0 %v2545_v10  ;;  %474 = vmatprep.subr.bf16.mxu1 %v2558_v13  ;;  %v2637_v28 = vld [vmem:[%s2850_s2 + $0xa0] ss:$16 sps:$4 sm:$0xff]   ;;  %v2642_v29 = vld [vmem:[%s2850_s2 + $0xa8] ss:$16 sps:$4 sm:$0xff]   ;;  %vm932_vm2 = vcmask 1046528  }
   0xe   : > { %s2352_s5 = smul.u32 12, %s2854_s16  ;;  %v2647_v30 = vld [vmem:[%s2850_s2 + $0xc4] ss:$16 sps:$4 sm:$0xff]   ;;  %v2656_v34 = vld [vmem:[%s2850_s2 + $0xcc] ss:$16 sps:$4 sm:$0xff]   ;;  %s2285_s11 = sshll.u32 %s2854_s16, 4 }
   0xf   : > { %vm561_vm1 = vsmask.f32 7424  ;;  %v2668_v38 = vld [vmem:[%s2850_s2 + $0xc0] ss:$16 sps:$4 sm:$0xff]   ;;  %v2673_v39 = vld [vmem:[%s2850_s2 + $0xc8] ss:$16 sps:$4 sm:$0xff]   ;;  %s217_s14 = scalar_lea.vmem %s2852_s4, %s2285_s11 }
  0x10   : > { %s2535_s10 = scalar_lea.vmem %s2848_s0, %s2352_s5  ;;  %s2570_s25 = scalar_lea.vmem %s2849_s1, %s2352_s5  ;;  %v2678_v40 = vld [vmem:[%s2850_s2 + $0xe4] ss:$16 sps:$4 sm:$0xff]   ;;  %v2685_v44 = vld [vmem:[%s2850_s2 + $0xec] ss:$16 sps:$4 sm:$0xff]   ;;  %v2690_v45 = vld [vmem:[%s2850_s2 + $0xe0] ss:$16 sps:$4 sm:$0xff]  }
  0x11   : > { %v2374_v11 = vld [vmem:[%s2535_s10] sm:$0xff]   ;;  %v2401_v26 = vld [vmem:[%s2535_s10 + $0x8] ss:$0 sps:$4 sm:$0x11]   ;;  %v2711_v51 = vld [vmem:[%s2850_s2 + $0x10c] ss:$16 sps:$4 sm:$0xff]  }
  0x12   : > { %2109 = vmatmul.mubr.msk.bf16.vlgmr.msra.gmra.mrb[0].mxu0 %vm274_vm0, %v2374_v11  ;;  %2110 = vmatmul.mubr.msk.bf16.vlgmr.msra.gmra.mrb[0].mxu1 %vm274_vm0, %v2374_v11  ;;  %v2387_v20 = vld [vmem:[%s2570_s25] sm:$0xff]   ;;  %v570_v33 = vshll.u32 %v2401_v26, 16  ;;  %v2415_v42 = vld [vmem:[%s2570_s25 + $0x8] ss:$0 sps:$4 sm:$0x11]   ;;  %vm2019_vm3 = vcmask 1043456  }
  0x13   : > { %432 = vmatpush1.bf16.msra.mxu0 %v2540_v9  ;;  %475 = vmatpush1.bf16.msra.mxu1 %v2553_v12  ;;  %v2400_v24 = vld [vmem:[%s2535_s10] sm:$0xff]   ;;  %v2695_v46 = vld [vmem:[%s2850_s2 + $0xe8] ss:$16 sps:$4 sm:$0xff]   ;;  %v755_v49 = vshll.u32 %v2415_v42, 16  ;;  %v2738_v58 = vld [vmem:[%s2850_s2 + $0x12c] ss:$16 sps:$4 sm:$0xff]  }
  0x14   : > { %433 = vmatprep.subr.bf16.mxu0 %v2565_v14  ;;  %476 = vmatprep.subr.bf16.mxu1 %v2582_v16  ;;  %v565_v27 = vshll.u32 %v2400_v24, 16  ;;  %v563_v31 = vshrl.u32 %v2400_v24, 16  ;;  %v572_v36 = vrot.slane %v570_v33, 1  ;;  %v2414_v37 = vld [vmem:[%s2570_s25] sm:$0xff]   ;;  %v2728_v56 = vld [vmem:[%s2850_s2 + $0x108] ss:$16 sps:$4 sm:$0xff]  }
  0x15   : > { %463 = vmatprep.mubr.bf16.mxu0 %v2447_v2  ;;  %506 = vmatprep.mubr.bf16.mxu1 %v2447_v2  ;;  %v750_v43 = vshll.u32 %v2414_v37, 16  ;;  %v748_v47 = vshrl.u32 %v2414_v37, 16  ;;  %v2706_v50 = vld [vmem:[%s2850_s2 + $0x104] ss:$16 sps:$4 sm:$0xff]   ;;  %v757_v53 = vrot.slane %v755_v49, 1  ;;  %vm2020_vm4 = vcmask 785412  }
  0x16   : > { %v567_v32 = vrot.slane %v565_v27, 1  ;;  %v2723_v55 = vld [vmem:[%s2850_s2 + $0x100] ss:$16 sps:$4 sm:$0xff]   ;;  %v2733_v57 = vld [vmem:[%s2850_s2 + $0x124] ss:$16 sps:$4 sm:$0xff]   ;;  %vm2021_vm5 = vmor %vm2020_vm4, %vm2019_vm3 }
  0x17   : > { %434 = vmatpush1.bf16.msra.mxu0 %v2577_v15  ;;  %477 = vmatpush1.bf16.msra.mxu1 %v2589_v17  ;;  %v752_v48 = vrot.slane %v750_v43, 1  ;;  %v2745_v59 = vld [vmem:[%s2850_s2 + $0x120] ss:$16 sps:$4 sm:$0xff]   ;;  %v2750_v60 = vld [vmem:[%s2850_s2 + $0x128] ss:$16 sps:$4 sm:$0xff]  }
  0x18   : > { %617 = vmatprep.subr.bf16.mxu0 %v2596_v18  ;;  %660 = vmatprep.subr.bf16.mxu1 %v2603_v19  ;;  %v568_v35 = vor.u32 %v567_v32, %v563_v31  ;;  %v2428_v61 = vld [vmem:[%s2535_s10] sm:$0xfe]   ;;  %v2429_v62 = vld [vmem:[%s2535_s10 + $0x8] ss:$0 sps:$4 sm:$0x11]  }
  0x19   : > { %v753_v52 = vor.u32 %v752_v48, %v748_v47  ;;  %v933_v63 = vrot.slane %v2428_v61, 1  ;;  %v934_v11 = vrot.slane %v2429_v62, 1  ;;  %v2431_v24 = vld [vmem:[%s2535_s10] sm:$0xff]  }
  0x1a   : > { %v573_v41 = vsel %vm561_vm1, %v568_v35, %v572_v36  ;;  %v1263_v26 = vshll.u32 %v2431_v24, 16  ;;  %v2437_v27 = vld [vmem:[%s2570_s25] sm:$0xfe]  }
  0x1b   : > { %v758_v54 = vsel %vm561_vm1, %v753_v52, %v757_v53  ;;  %v1987_v42 = vld [vmem:[%s2851_s3] sm:$0x3] }
  0x1e   : > { %2128 = vmatmul.mubr.msk.bf16.vlgmr.msra.gmra.mrb[0].mxu0 %vm274_vm0, %v2387_v20  ;;  %2129 = vmatmul.mubr.msk.bf16.vlgmr.msra.gmra.mrb[0].mxu1 %vm274_vm0, %v2387_v20  ;;  %v935_v20 = vsel %vm932_vm2, %v933_v63, %v934_v11 }
  0x1f   : > { %618 = vmatpush1.bf16.msra.mxu0 %v2613_v21  ;;  %661 = vmatpush1.bf16.msra.mxu1 %v2618_v22 }
  0x20   : > { %619 = vmatprep.subr.bf16.mxu0 %v2623_v23  ;;  %662 = vmatprep.subr.bf16.mxu1 %v2629_v25 }
  0x21   : > { %649 = vmatprep.mubr.bf16.mxu0 %v2447_v2  ;;  %692 = vmatprep.mubr.bf16.mxu1 %v2447_v2 }
  0x23   : > { %620 = vmatpush1.bf16.msra.mxu0 %v2637_v28  ;;  %663 = vmatpush1.bf16.msra.mxu1 %v2642_v29 }
  0x24   : > { %802 = vmatprep.subr.bf16.mxu0 %v2647_v30  ;;  %845 = vmatprep.subr.bf16.mxu1 %v2656_v34 }
  0x2a   : > { %2148 = vmatmul.mubr.msk.bf16.vlgmr.msra.gmra.mrb[0].mxu0 %vm274_vm0, %v573_v41  ;;  %2149 = vmatmul.mubr.msk.bf16.vlgmr.msra.gmra.mrb[0].mxu1 %vm274_vm0, %v573_v41 }
  0x2b   : > { %803 = vmatpush1.bf16.msra.mxu0 %v2668_v38  ;;  %846 = vmatpush1.bf16.msra.mxu1 %v2673_v39 }
  0x2c   : > { %804 = vmatprep.subr.bf16.mxu0 %v2678_v40  ;;  %847 = vmatprep.subr.bf16.mxu1 %v2685_v44 }
  0x2d   : > { %834 = vmatprep.mubr.bf16.mxu0 %v2447_v2  ;;  %877 = vmatprep.mubr.bf16.mxu1 %v2447_v2 }
  0x2f   : > { %805 = vmatpush1.bf16.msra.mxu0 %v2690_v45  ;;  %848 = vmatpush1.bf16.msra.mxu1 %v2695_v46 }
  0x30   : > { %979 = vmatprep.subr.bf16.mxu0 %v2706_v50  ;;  %1022 = vmatprep.subr.bf16.mxu1 %v2711_v51 }
  0x36   : > { %2168 = vmatmul.mubr.msk.bf16.vlgmr.msra.gmra.mrb[0].mxu0 %vm274_vm0, %v758_v54  ;;  %2169 = vmatmul.mubr.msk.bf16.vlgmr.msra.gmra.mrb[0].mxu1 %vm274_vm0, %v758_v54 }
  0x37   : > { %980 = vmatpush1.bf16.msra.mxu0 %v2723_v55  ;;  %1023 = vmatpush1.bf16.msra.mxu1 %v2728_v56 }
  0x38   : > { %981 = vmatprep.subr.bf16.mxu0 %v2733_v57  ;;  %1024 = vmatprep.subr.bf16.mxu1 %v2738_v58 }
  0x39   : > { %1011 = vmatprep.mubr.bf16.mxu0 %v2447_v2  ;;  %1054 = vmatprep.mubr.bf16.mxu1 %v2447_v2 }
  0x3b   : > { %982 = vmatpush1.bf16.msra.mxu0 %v2745_v59  ;;  %1025 = vmatpush1.bf16.msra.mxu1 %v2750_v60 }
  0x3c   : > { %1147 = vmatprep.subr.bf16.mxu0 %v2484_v0  ;;  %1190 = vmatprep.subr.bf16.mxu1 %v2489_v1  ;;  %v2430_v0 = vld [vmem:[%s2570_s25] sm:$0xff]   ;;  %v2432_v1 = vld [vmem:[%s2535_s10 + $0x8] ss:$0 sps:$4 sm:$0x11]  }
  0x42   : > { %2188 = vmatmul.mubr.msk.bf16.vlgmr.msra.gmra.mrb[0].mxu0 %vm274_vm0, %v935_v20  ;;  %2189 = vmatmul.mubr.msk.bf16.vlgmr.msra.gmra.mrb[0].mxu1 %vm274_vm0, %v935_v20 }
  0x43   : > { %1148 = vmatpush1.bf16.msra.mxu0 %v2497_v3  ;;  %1191 = vmatpush1.bf16.msra.mxu1 %v2502_v4  ;;  %v1261_v3 = vshrl.u32 %v2431_v24, 16  ;;  %v1265_v4 = vrot.slane %v1263_v26, 1 }
  0x44   : > { %1149 = vmatprep.subr.bf16.mxu0 %v2510_v5  ;;  %1192 = vmatprep.subr.bf16.mxu1 %v2517_v6  ;;  %v1268_v5 = vshll.u32 %v2432_v1, 16 }
  0x45   : > { %1179 = vmatprep.mubr.bf16.mxu0 %v2447_v2  ;;  %1222 = vmatprep.mubr.bf16.mxu1 %v2447_v2  ;;  %v1266_v6 = vor.u32 %v1265_v4, %v1261_v3 }
  0x47   : > { %1150 = vmatpush1.bf16.msra.mxu0 %v2522_v7  ;;  %1193 = vmatpush1.bf16.msra.mxu1 %v2529_v8  ;;  %v1270_v7 = vrot.slane %v1268_v5, 1  ;;  %v2433_v8 = vld [vmem:[%s2570_s25] sm:$0xff]  }
  0x48   : > { %1315 = vmatprep.subr.bf16.mxu0 %v2545_v10  ;;  %1358 = vmatprep.subr.bf16.mxu1 %v2558_v13  ;;  %v2434_v10 = vld [vmem:[%s2570_s25 + $0x8] ss:$0 sps:$4 sm:$0x11]   ;;  %v1445_v13 = vshrl.u32 %v2433_v8, 16 }
  0x4a   : > { %2199 = vmatmul.mubr.msk.bf16.vlgmr.msra.gmra.mrb[4].mxu0 %vm274_vm0, %v2430_v0  ;;  %2200 = vmatmul.mubr.msk.bf16.vlgmr.msra.gmra.mrb[4].mxu1 %vm274_vm0, %v2430_v0 }
  0x4b   : > { %1316 = vmatpush1.bf16.msra.mxu0 %v2540_v9  ;;  %1359 = vmatpush1.bf16.msra.mxu1 %v2553_v12  ;;  %v1271_v9 = vsel %vm561_vm1, %v1266_v6, %v1270_v7  ;;  %v1447_v12 = vshll.u32 %v2433_v8, 16 }
  0x4c   : > { %1317 = vmatprep.subr.bf16.mxu0 %v2565_v14  ;;  %1360 = vmatprep.subr.bf16.mxu1 %v2582_v16 }
  0x4d   : > { %1347 = vmatprep.mubr.bf16.mxu0 %v2447_v2  ;;  %1390 = vmatprep.mubr.bf16.mxu1 %v2447_v2  ;;  %v1449_v14 = vrot.slane %v1447_v12, 1 }
  0x4f   : > { %1318 = vmatpush1.bf16.msra.mxu0 %v2577_v15  ;;  %1361 = vmatpush1.bf16.msra.mxu1 %v2589_v17  ;;  %v1452_v15 = vshll.u32 %v2434_v10, 16  ;;  %v1450_v16 = vor.u32 %v1449_v14, %v1445_v13 }
  0x50   : > { %1499 = vmatprep.subr.bf16.mxu0 %v2596_v18  ;;  %1542 = vmatprep.subr.bf16.mxu1 %v2603_v19  ;;  %v2435_v19 = vld [vmem:[%s2535_s10] sm:$0xfe]  }
  0x51   : > { %v1454_v17 = vrot.slane %v1452_v15, 1 }
  0x53   : > { %v1455_v18 = vsel %vm561_vm1, %v1450_v16, %v1454_v17 }
  0x56   : > { %2219 = vmatmul.mubr.msk.bf16.vlgmr.msra.gmra.mrb[4].mxu0 %vm274_vm0, %v1271_v9  ;;  %2220 = vmatmul.mubr.msk.bf16.vlgmr.msra.gmra.mrb[4].mxu1 %vm274_vm0, %v1271_v9 }
  0x57   : > { %1500 = vmatpush1.bf16.msra.mxu0 %v2613_v21  ;;  %1543 = vmatpush1.bf16.msra.mxu1 %v2618_v22  ;;  %v2436_v21 = vld [vmem:[%s2535_s10 + $0x8] ss:$0 sps:$4 sm:$0x11]   ;;  %v1628_v22 = vrot.slane %v2435_v19, 1 }
  0x58   : > { %1501 = vmatprep.subr.bf16.mxu0 %v2623_v23  ;;  %1544 = vmatprep.subr.bf16.mxu1 %v2629_v25  ;;  %v1629_v23 = vrot.slane %v2436_v21, 1 }
  0x59   : > { %1531 = vmatprep.mubr.bf16.mxu0 %v2447_v2  ;;  %1574 = vmatprep.mubr.bf16.mxu1 %v2447_v2 }
  0x5a   : > { %v1630_v25 = vsel %vm932_vm2, %v1628_v22, %v1629_v23 }
  0x5b   : > { %1502 = vmatpush1.bf16.msra.mxu0 %v2637_v28  ;;  %1545 = vmatpush1.bf16.msra.mxu1 %v2642_v29  ;;  %v2438_v28 = vld [vmem:[%s2570_s25 + $0x8] ss:$0 sps:$4 sm:$0x11]   ;;  %v1803_v29 = vrot.slane %v2437_v27, 1 }
  0x5c   : > { %1674 = vmatprep.subr.bf16.mxu0 %v2647_v30  ;;  %1717 = vmatprep.subr.bf16.mxu1 %v2656_v34  ;;  %v1804_v30 = vrot.slane %v2438_v28, 1 }
  0x5e   : > { %v1805_v31 = vsel %vm932_vm2, %v1803_v29, %v1804_v30 }
  0x62   : > { %2239 = vmatmul.mubr.msk.bf16.vlgmr.msra.gmra.mrb[4].mxu0 %vm274_vm0, %v1455_v18  ;;  %2240 = vmatmul.mubr.msk.bf16.vlgmr.msra.gmra.mrb[4].mxu1 %vm274_vm0, %v1455_v18 }
  0x63   : > { %1675 = vmatpush1.bf16.msra.mxu0 %v2668_v38  ;;  %1718 = vmatpush1.bf16.msra.mxu1 %v2673_v39  ;;  %v1989_v39 = vlaneseq }
  0x64   : > { %1676 = vmatprep.subr.bf16.mxu0 %v2678_v40  ;;  %1719 = vmatprep.subr.bf16.mxu1 %v2685_v44 }
  0x65   : > { %1706 = vmatprep.mubr.bf16.mxu0 %v2447_v2  ;;  %1749 = vmatprep.mubr.bf16.mxu1 %v2447_v2  ;;  %v1990_v40 = vshrl.u32 %v1989_v39, 7 }
  0x67   : > { %1677 = vmatpush1.bf16.msra.mxu0 %v2690_v45  ;;  %1720 = vmatpush1.bf16.msra.mxu1 %v2695_v46  ;;  %v1991_v41 = vsub.s32 0, %v1990_v40  ;;  %v1995_v43 = vsub.s32 1, %v1990_v40 }
  0x68   : > { %1849 = vmatprep.subr.bf16.mxu0 %v2706_v50  ;;  %1892 = vmatprep.subr.bf16.mxu1 %v2711_v51 }
  0x69   : > { %v1992_v48 = vrot.slane %v1987_v42, %v1991_v41  ;;  %v1996_v53 = vrot.slane %v1987_v42, %v1995_v43 }
  0x6e   : > { %2259 = vmatmul.mubr.msk.bf16.vlgmr.msra.gmra.mrb[4].mxu0 %vm274_vm0, %v1630_v25  ;;  %2260 = vmatmul.mubr.msk.bf16.vlgmr.msra.gmra.mrb[4].mxu1 %vm274_vm0, %v1630_v25 }
  0x6f   : > { %1850 = vmatpush1.bf16.msra.mxu0 %v2723_v55  ;;  %1893 = vmatpush1.bf16.msra.mxu1 %v2728_v56 }
  0x70   : > { %1851 = vmatprep.subr.bf16.mxu0 %v2733_v57  ;;  %1894 = vmatprep.subr.bf16.mxu1 %v2738_v58 }
  0x71   : > { %1881 = vmatprep.mubr.bf16.mxu0 %v2447_v2  ;;  %1924 = vmatprep.mubr.bf16.mxu1 %v2447_v2 }
  0x73   : > { %1852 = vmatpush1.bf16.msra.mxu0 %v2745_v59  ;;  %1895 = vmatpush1.bf16.msra.mxu1 %v2750_v60 }
  0x7a   : > { %2279 = vmatmul.mubr.msk.bf16.vlgmr.msra.gmra.mrb[4].mxu0 %vm274_vm0, %v1805_v31  ;;  %2280 = vmatmul.mubr.msk.bf16.vlgmr.msra.gmra.mrb[4].mxu1 %vm274_vm0, %v1805_v31 }
 0x115   : > { %v1013_v32 = vpop.f32.mrb[0].mxu0  ;;  %v1056_v33 = vpop.f32.mrb[0].mxu1 }
 0x116   : > { %v1015_v34 = vpop.f32.mrb[1].mxu0  ;;  %v1058_v35 = vpop.f32.mrb[1].mxu1 }
 0x117   : > { %v1017_v36 = vpop.f32.mrb[2].mxu0  ;;  %v1060_v37 = vpop.f32.mrb[2].mxu1 }
 0x118   : > { %v1019_v38 = vpop.f32.mrb[3].mxu0  ;;  %v1062_v2 = vpop.f32.mrb[3].mxu1 }
 0x14d   : > { %v1883_v44 = vpop.f32.mrb[4].mxu0  ;;  %v1926_v45 = vpop.f32.mrb[4].mxu1 }
 0x14e   : > { %v1975_v46 = vmax.f32 %v1013_v32, %v1883_v44  ;;  %v1977_v47 = vmax.f32 %v1056_v33, %v1926_v45  ;;  %v1885_v49 = vpop.f32.mrb[5].mxu0  ;;  %v1928_v50 = vpop.f32.mrb[5].mxu1 }
 0x14f   : > { %v1976_v51 = vmax.f32 %v1015_v34, %v1885_v49  ;;  %v1978_v52 = vmax.f32 %v1058_v35, %v1928_v50  ;;  %v1887_v54 = vpop.f32.mrb[6].mxu0  ;;  %v1930_v55 = vpop.f32.mrb[6].mxu1 }
 0x150   : > { %v1983_v56 = vmax.f32 %v1975_v46, %v1977_v47  ;;  %v1979_v57 = vmax.f32 %v1017_v36, %v1887_v54  ;;  %v1981_v58 = vmax.f32 %v1060_v37, %v1930_v55  ;;  %v1889_v59 = vpop.f32.mrb[7].mxu0  ;;  %v1932_v60 = vpop.f32.mrb[7].mxu1 }
 0x151   : > { %v1984_v61 = vmax.f32 %v1976_v51, %v1978_v52  ;;  %v1980_v62 = vmax.f32 %v1019_v38, %v1889_v59  ;;  %v1982_v63 = vmax.f32 %v1062_v2, %v1932_v60 }
 0x152   : > { %v1999_v11 = vadd.f32 %v1992_v48, %v1983_v56  ;;  %v1985_v20 = vmax.f32 %v1979_v57, %v1981_v58 }
 0x153   : > { %v2000_v24 = vadd.f32 %v1996_v53, %v1984_v61  ;;  %v1986_v0 = vmax.f32 %v1980_v62, %v1982_v63 }
 0x154   : > { %v2003_v1 = vmax.f32 %v1999_v11, 0.0  ;;  %v2001_v26 = vadd.f32 %v1992_v48, %v1985_v20 }
 0x155   : > { %v2004_v3 = vmax.f32 %v2000_v24, 0.0  ;;  %v2002_v4 = vadd.f32 %v1996_v53, %v1986_v0 }
 0x156   : > { %v2005_v5 = vmax.f32 %v2001_v26, 0.0 }
 0x157   : > { %v2286_v6 = vpack.c.bf16 %v2004_v3, %v2003_v1  ;;  %v2006_v7 = vmax.f32 %v2002_v4, 0.0 }
 0x159   : > { %2022 = vst.msk [vmem:[%s217_s14] sm:$0xff] %vm2021_vm5, %v2286_v6  ;;  %v2287_v8 = vpack.c.bf16 %v2006_v7, %v2005_v5 }
 0x15b   : > { %2023 = vst.msk [vmem:[%s217_s14 + $0x8] sm:$0xff] %vm2021_vm5, %v2287_v8 }
 0x15c PF: > { %s14_s15 = sadd.s32 1, %s2445_s15  }
 0x15d   : > { %p11_p4 = scmp.ge.s32.totalorder %s14_s15, 4  }
 0x15f   :  { %13 = sbr.rel (!%p11_p4) target bundleno = 1 (0x1), region = 73 }

// kernel: tile.18
= control target key start
LH: loop header
LB: loop body
LE: loop exit
PB: predicated region body
PF: predicated region fallthrough
CT: control target
= control target key end

     0   :  { %s22_s0 = inlined_call_operand.vmem [shape: f32[32], index: 0, kind: input, shape index: {}]   ;;  %s23_s1 = inlined_call_operand.vmem [shape: f32[7,32], index: 1, kind: output, shape index: {}]  }
   0x1   :  { %v4_v0 = vld [vmem:[%s22_s0] ss:$0 sm:$0xff] }
   0x2   :  { %5 = vst [vmem:[%s23_s1] sm:$0xff] %v4_v0 }

// kernel: tile.19
= control target key start
LH: loop header
LB: loop body
LE: loop exit
PB: predicated region body
PF: predicated region fallthrough
CT: control target
= control target key end

     0   :  { %s13_s8 = smov 3  ;;  %s44_s9 = smov 96   ;;  %vm4_vm0 = vcmask 261120   ;;  %vm10_vm1 = vcmask 1048320   ;;  %vm17_vm2 = vcmask 785920   ;;  %vm24_vm3 = vcmask 523520   ;;  %s75_s0 = inlined_call_operand.vmem [shape: f32[7,32], index: 0, kind: input, shape index: {}]   ;;  %s76_s1 = inlined_call_operand.vmem [shape: f32[1,224], index: 1, kind: output, shape index: {}]  }
   0x1   :  { %v37_v0 = vld [vmem:[%s75_s0 + $0x3] sm:$0x1]   ;;  %s20_s10 = smov 3  ;;  %v38_v1 = vld [vmem:[%s75_s0 + $0x2] ss:$4 sm:%s13_s8]   ;;  %s2_s15 = smov 3 }
   0x2   :  { %8 = vrot.lane.b32.xlu0 %v37_v0, %s44_s9  ;;  %v39_v2 = vld [vmem:[%s75_s0 + $0x1] ss:$4 sm:%s20_s10]   ;;  %s45_s16 = smov 32  }
   0x3   :  { %22 = vrot.lane.b32.xlu1 %v39_v2, %s45_s16  ;;  %v3_v3 = vld [vmem:[%s75_s0] ss:$4 sm:%s2_s15]   ;;  %s46_s0 = smov 64  }
   0x4   :  { %5 = vst.msk [vmem:[#allocation0] ss:$8 sm:$0x3] %vm4_vm0, %v3_v3  }
   0x6   :  { %15 = vrot.lane.b32.xlu0 %v38_v1, %s46_s0 }
  0x74   :  { %v9_v4 = vpop.permute.xlu0 %8  }
  0x75   :  { %11 = vst.msk [vmem:[#allocation0] sm:$0x1] %vm10_vm1, %v9_v4   ;;  %v23_v5 = vpop.permute.xlu1 %22  }
  0x78   :  { %v16_v6 = vpop.permute.xlu0 %15  }
  0x79   :  { %18 = vst.msk [vmem:[#allocation0] ss:$8 sm:$0x3] %vm17_vm2, %v16_v6  }
  0x7a   :  { %25 = vst.msk [vmem:[#allocation0] ss:$8 sm:$0x3] %vm24_vm3, %v23_v5  }
  0x81   :  { %v29_v7 = vld [vmem:[#allocation0] sm:$0x1]  ;;  %v33_v8 = vld [vmem:[#allocation0 + $0x8] sm:$0x1] }
  0x82   :  { %31 = vst [vmem:[%s76_s1] sm:$0x1] %v29_v7  ;;  %40 = vst [vmem:[%s76_s1 + $0x1] sm:$0x1] %v33_v8 }

// kernel: cnn_forward.4
= control target key start
LH: loop header
LB: loop body
LE: loop exit
PB: predicated region body
PF: predicated region fallthrough
CT: control target
= control target key end

     0   :  { %s9530_s15 = smov 0   ;;  %s11893_s0 = inlined_call_operand.vmem [shape: bf16[2,17,288], index: 0, kind: input, shape index: {}]   ;;  %s11894_s1 = inlined_call_operand.vmem [shape: bf16[2,17,288], index: 1, kind: input, shape index: {}]   ;;  %s11895_s2 = inlined_call_operand.vmem [shape: bf16[5,288,512], index: 2, kind: input, shape index: {}]   ;;  %s11896_s3 = inlined_call_operand.vmem [shape: f32[1,224], index: 3, kind: input, shape index: {}]   ;;  %s11897_s4 = inlined_call_operand.vmem [shape: bf16[2,9,224], index: 4, kind: output, shape index: {}]  }
   0x1 LB: > { %s6926_s16 = sadd.s32 4294967295, %s9502_s15   ;;  %p6930_p0 = scmp.ge.s32.totalorder %s9502_s15, 1  ;;  %s9502_s15 = sphi %s9530_s15, %s14_s15  }
   0x2   : > { %p172_p1 = scmp.lt.s32.totalorder %s9502_s15, 3 }
   0x4   : > { %p173_p2 = pnand %p6930_p0, %p172_p1 }
   0x5   : > { %v8378_v0 = vld [vmem:[%s11895_s2 + $0x4] ss:$16 sps:$4 sm:$0xff] (!%p173_p2)   ;;  %v8380_v1 = vld [vmem:[%s11895_s2 + $0xc] ss:$16 sps:$4 sm:$0xff] (!%p173_p2)   ;;  %v8382_v2 = vld [vmem:[%s11895_s2] ss:$16 sps:$4 sm:$0xff] (!%p173_p2)  }
   0x6   : > { %176 = sbr.rel (%p173_p2) target bundleno = 1003 (0x3eb), region = 36  ;;  %674 = vmatprep.subr.bf16.mxu0 (!%p173_p2), %v8378_v0  ;;  %v8383_v3 = vld [vmem:[%s11895_s2 + $0x8] ss:$16 sps:$4 sm:$0xff] (!%p173_p2)   ;;  %760 = vmatprep.subr.bf16.mxu1 (!%p173_p2), %v8380_v1  ;;  %v8384_v4 = vld [vmem:[%s11895_s2 + $0x24] ss:$16 sps:$4 sm:$0xff] (!%p173_p2)   ;;  %p203_p3 = scmp.lt.s32.totalorder (!%p173_p2), %s6926_s16, 1 }
   0x7   : > { %675 = vmatpush1.bf16.msra.mxu0 (!%p173_p2), %v8382_v2  ;;  %761 = vmatpush1.bf16.msra.mxu1 (!%p173_p2), %v8383_v3  ;;  %v8386_v5 = vld [vmem:[%s11895_s2 + $0x2c] ss:$16 sps:$4 sm:$0xff] (!%p173_p2)   ;;  %v8388_v6 = vld [vmem:[%s11895_s2 + $0x20] ss:$16 sps:$4 sm:$0xff] (!%p173_p2)   ;;  %v8389_v7 = vld [vmem:[%s11895_s2 + $0x28] ss:$16 sps:$4 sm:$0xff] (!%p173_p2)  }
   0x8   : > { %676 = vmatprep.subr.bf16.mxu0 (!%p173_p2), %v8384_v4  ;;  %762 = vmatprep.subr.bf16.mxu1 (!%p173_p2), %v8386_v5  ;;  %v8390_v8 = vld [vmem:[%s11895_s2 + $0x44] ss:$16 sps:$4 sm:$0xff] (!%p173_p2)   ;;  %v8392_v9 = vld [vmem:[%s11895_s2 + $0x4c] ss:$16 sps:$4 sm:$0xff] (!%p173_p2)   ;;  %v8394_v10 = vld [vmem:[%s11895_s2 + $0x40] ss:$16 sps:$4 sm:$0xff] (!%p173_p2)  }
   0x9   : > { %v8395_v11 = vld [vmem:[%s11895_s2 + $0x48] ss:$16 sps:$4 sm:$0xff] (!%p173_p2)   ;;  %v8396_v12 = vld [vmem:[%s11895_s2 + $0x64] ss:$16 sps:$4 sm:$0xff] (!%p173_p2)   ;;  %v8398_v13 = vld [vmem:[%s11895_s2 + $0x6c] ss:$16 sps:$4 sm:$0xff] (!%p173_p2)  }
   0xa   : > { %v8400_v14 = vld [vmem:[%s11895_s2 + $0x60] ss:$16 sps:$4 sm:$0xff] (!%p173_p2)   ;;  %v8401_v15 = vld [vmem:[%s11895_s2 + $0x68] ss:$16 sps:$4 sm:$0xff] (!%p173_p2)   ;;  %v8402_v16 = vld [vmem:[%s11895_s2 + $0x84] ss:$16 sps:$4 sm:$0xff] (!%p173_p2)  }
   0xb   : > { %677 = vmatpush1.bf16.msra.mxu0 (!%p173_p2), %v8388_v6  ;;  %763 = vmatpush1.bf16.msra.mxu1 (!%p173_p2), %v8389_v7  ;;  %v8404_v17 = vld [vmem:[%s11895_s2 + $0x8c] ss:$16 sps:$4 sm:$0xff] (!%p173_p2)   ;;  %v8406_v18 = vld [vmem:[%s11895_s2 + $0x80] ss:$16 sps:$4 sm:$0xff] (!%p173_p2)   ;;  %v8407_v19 = vld [vmem:[%s11895_s2 + $0x88] ss:$16 sps:$4 sm:$0xff] (!%p173_p2)  }
   0xc   : > { %678 = vmatprep.subr.bf16.mxu0 (!%p173_p2), %v8390_v8  ;;  %764 = vmatprep.subr.bf16.mxu1 (!%p173_p2), %v8392_v9  ;;  %v8408_v20 = vld [vmem:[%s11895_s2 + $0xa4] ss:$16 sps:$4 sm:$0xff] (!%p173_p2)   ;;  %v8410_v21 = vld [vmem:[%s11895_s2 + $0xac] ss:$16 sps:$4 sm:$0xff] (!%p173_p2)   ;;  %v8412_v22 = vld [vmem:[%s11895_s2 + $0xa0] ss:$16 sps:$4 sm:$0xff] (!%p173_p2)  }
   0xd   : > { %v8413_v23 = vld [vmem:[%s11895_s2 + $0xa8] ss:$16 sps:$4 sm:$0xff]   ;;  %v8414_v24 = vld [vmem:[%s11895_s2 + $0xc4] ss:$16 sps:$4 sm:$0xff]   ;;  %v8416_v25 = vld [vmem:[%s11895_s2 + $0xcc] ss:$16 sps:$4 sm:$0xff]  }
   0xe   : > { %v8418_v26 = vld [vmem:[%s11895_s2 + $0xc0] ss:$16 sps:$4 sm:$0xff]   ;;  %v8419_v27 = vld [vmem:[%s11895_s2 + $0xc8] ss:$16 sps:$4 sm:$0xff]   ;;  %v8420_v28 = vld [vmem:[%s11895_s2 + $0xe4] ss:$16 sps:$4 sm:$0xff]  }
   0xf   : > { %679 = vmatpush1.bf16.msra.mxu0 %v8394_v10  ;;  %765 = vmatpush1.bf16.msra.mxu1 %v8395_v11  ;;  %v8422_v29 = vld [vmem:[%s11895_s2 + $0xec] ss:$16 sps:$4 sm:$0xff]   ;;  %v8424_v30 = vld [vmem:[%s11895_s2 + $0xe0] ss:$16 sps:$4 sm:$0xff]   ;;  %v8425_v31 = vld [vmem:[%s11895_s2 + $0xe8] ss:$16 sps:$4 sm:$0xff]  }
  0x10   : > { %680 = vmatprep.subr.bf16.mxu0 %v8396_v12  ;;  %766 = vmatprep.subr.bf16.mxu1 %v8398_v13  ;;  %v8426_v32 = vld [vmem:[%s11895_s2 + $0x104] ss:$16 sps:$4 sm:$0xff]   ;;  %v8428_v33 = vld [vmem:[%s11895_s2 + $0x10c] ss:$16 sps:$4 sm:$0xff]   ;;  %v8430_v34 = vld [vmem:[%s11895_s2 + $0x100] ss:$16 sps:$4 sm:$0xff]  }
  0x11   : > { %v8431_v35 = vld [vmem:[%s11895_s2 + $0x108] ss:$16 sps:$4 sm:$0xff]   ;;  %s11899_s16 = smov (!%p203_p3, %s6926_s16), 1  ;;  %v8432_v36 = vld [vmem:[%s11895_s2 + $0x124] ss:$16 sps:$4 sm:$0xff]   ;;  %vm670_vm0 = vcmask 261120  }
  0x12   : > { %v8434_v37 = vld [vmem:[%s11895_s2 + $0x12c] ss:$16 sps:$4 sm:$0xff]   ;;  %v8436_v38 = vld [vmem:[%s11895_s2 + $0x120] ss:$16 sps:$4 sm:$0xff]   ;;  %s8368_s23 = smul.u32 36, %s11899_s16  ;;  %s8285_s21 = sshll.u32 %s11899_s16, 4 }
  0x13   : > { %681 = vmatpush1.bf16.msra.mxu0 %v8400_v14  ;;  %767 = vmatpush1.bf16.msra.mxu1 %v8401_v15  ;;  %v8437_v39 = vld [vmem:[%s11895_s2 + $0x128] ss:$16 sps:$4 sm:$0xff]   ;;  %v8438_v40 = vld [vmem:[%s11895_s2 + $0x144] ss:$16 sps:$4 sm:$0xff]   ;;  %v8440_v41 = vld [vmem:[%s11895_s2 + $0x14c] ss:$16 sps:$4 sm:$0xff]   ;;  %s217_s25 = scalar_lea.vmem %s11897_s4, %s8285_s21 }
  0x14   : > { %682 = vmatprep.subr.bf16.mxu0 %v8402_v16  ;;  %768 = vmatprep.subr.bf16.mxu1 %v8404_v17  ;;  %v8442_v42 = vld [vmem:[%s11895_s2 + $0x140] ss:$16 sps:$4 sm:$0xff]   ;;  %v8443_v43 = vld [vmem:[%s11895_s2 + $0x148] ss:$16 sps:$4 sm:$0xff]   ;;  %s9682_s10 = scalar_lea.vmem %s11893_s0, %s8368_s23  ;;  %v8444_v44 = vld [vmem:[%s11895_s2 + $0x164] ss:$16 sps:$4 sm:$0xff]   ;;  %s9838_s19 = scalar_lea.vmem %s11894_s1, %s8368_s23 }
  0x15   : > { %v8446_v45 = vld [vmem:[%s11895_s2 + $0x16c] ss:$16 sps:$4 sm:$0xff]   ;;  %v9691_v46 = vld [vmem:[%s9682_s10] sm:$0xff]  ;;  %v8449_v49 = vld [vmem:[%s11895_s2 + $0x168] ss:$16 sps:$4 sm:$0xff]   ;;  %v9504_v14 = vmov 0  }
  0x16   : > { %v221_v47 = vld [vmem:[%s9682_s10 + $0xc] sm:$0x11]  ;;  %v8450_v51 = vld [vmem:[%s11895_s2 + $0x184] ss:$16 sps:$4 sm:$0xff]   ;;  %v8455_v54 = vld [vmem:[%s11895_s2 + $0x188] ss:$16 sps:$4 sm:$0xff]  }
  0x17   : > { %683 = vmatpush1.bf16.msra.mxu0 %v8406_v18  ;;  %769 = vmatpush1.bf16.msra.mxu1 %v8407_v19  ;;  %v8448_v48 = vld [vmem:[%s11895_s2 + $0x160] ss:$16 sps:$4 sm:$0xff]   ;;  %v6936_v50 = vcombine.high %v9691_v46, %v221_v47  ;;  %v8452_v52 = vld [vmem:[%s11895_s2 + $0x18c] ss:$16 sps:$4 sm:$0xff]   ;;  %v8456_v55 = vld [vmem:[%s11895_s2 + $0x1a4] ss:$16 sps:$4 sm:$0xff]   ;;  %v6935_v5 = vcombine.low %v9691_v46, %v221_v47 }
  0x18   : > { %684 = vmatprep.subr.bf16.mxu0 %v8408_v20  ;;  %770 = vmatprep.subr.bf16.mxu1 %v8410_v21  ;;  %v8454_v53 = vld [vmem:[%s11895_s2 + $0x180] ss:$16 sps:$4 sm:$0xff]   ;;  %v8458_v56 = vld [vmem:[%s11895_s2 + $0x1ac] ss:$16 sps:$4 sm:$0xff]   ;;  %v8461_v58 = vld [vmem:[%s11895_s2 + $0x1a8] ss:$16 sps:$4 sm:$0xff]  }
  0x19   : > { %706 = vmatprep.mubr.bf16.mxu0 %v6936_v50  ;;  %792 = vmatprep.mubr.bf16.mxu1 %v6936_v50  ;;  %v8460_v57 = vld [vmem:[%s11895_s2 + $0x1a0] ss:$16 sps:$4 sm:$0xff]   ;;  %v8462_v59 = vld [vmem:[%s11895_s2 + $0x1c4] ss:$16 sps:$4 sm:$0xff]   ;;  %v8464_v60 = vld [vmem:[%s11895_s2 + $0x1cc] ss:$16 sps:$4 sm:$0xff]  }
  0x1a   : > { %v8466_v61 = vld [vmem:[%s11895_s2 + $0x1c0] ss:$16 sps:$4 sm:$0xff]   ;;  %v8467_v62 = vld [vmem:[%s11895_s2 + $0x1c8] ss:$16 sps:$4 sm:$0xff]   ;;  %v8468_v63 = vld [vmem:[%s11895_s2 + $0x1e4] ss:$16 sps:$4 sm:$0xff]  }
  0x1b   : > { %685 = vmatpush1.bf16.msra.mxu0 %v8412_v22  ;;  %771 = vmatpush1.bf16.msra.mxu1 %v8413_v23  ;;  %v8470_v0 = vld [vmem:[%s11895_s2 + $0x1ec] ss:$16 sps:$4 sm:$0xff]   ;;  %v8472_v1 = vld [vmem:[%s11895_s2 + $0x1e0] ss:$16 sps:$4 sm:$0xff]   ;;  %v8473_v2 = vld [vmem:[%s11895_s2 + $0x1e8] ss:$16 sps:$4 sm:$0xff]  }
  0x1c   : > { %686 = vmatprep.subr.bf16.mxu0 %v8414_v24  ;;  %772 = vmatprep.subr.bf16.mxu1 %v8416_v25  ;;  %v8478_v3 = vld [vmem:[%s11895_s2 + $0x204] ss:$16 sps:$4 sm:$0xff]   ;;  %v8481_v4 = vld [vmem:[%s11895_s2 + $0x20c] ss:$16 sps:$4 sm:$0xff]   ;;  %v8476_v6 = vld [vmem:[%s11895_s2 + $0x200] ss:$16 sps:$4 sm:$0xff]  }
  0x1d   : > { %v8479_v7 = vld [vmem:[%s11895_s2 + $0x208] ss:$16 sps:$4 sm:$0xff]   ;;  %v8484_v8 = vld [vmem:[%s11895_s2 + $0x224] ss:$16 sps:$4 sm:$0xff]   ;;  %v8487_v9 = vld [vmem:[%s11895_s2 + $0x22c] ss:$16 sps:$4 sm:$0xff]  }
  0x1e   : > { %v8482_v10 = vld [vmem:[%s11895_s2 + $0x220] ss:$16 sps:$4 sm:$0xff]   ;;  %v8485_v11 = vld [vmem:[%s11895_s2 + $0x228] ss:$16 sps:$4 sm:$0xff]   ;;  %v8490_v12 = vld [vmem:[%s11895_s2 + $0x244] ss:$16 sps:$4 sm:$0xff]  }
  0x1f   : > { %687 = vmatpush1.bf16.msra.mxu0 %v8418_v26  ;;  %773 = vmatpush1.bf16.msra.mxu1 %v8419_v27  ;;  %v8493_v13 = vld [vmem:[%s11895_s2 + $0x24c] ss:$16 sps:$4 sm:$0xff]   ;;  %v8488_v15 = vld [vmem:[%s11895_s2 + $0x240] ss:$16 sps:$4 sm:$0xff]   ;;  %v8491_v17 = vld [vmem:[%s11895_s2 + $0x248] ss:$16 sps:$4 sm:$0xff]  }
  0x20   : > { %688 = vmatprep.subr.bf16.mxu0 %v8420_v28  ;;  %774 = vmatprep.subr.bf16.mxu1 %v8422_v29  ;;  %v8494_v16 = vld [vmem:[%s9682_s10 + $0x8] ss:$12 sps:$4 sm:$0x1f]   ;;  %v8500_v19 = vld [vmem:[%s11895_s2 + $0x26c] ss:$16 sps:$4 sm:$0xff]   ;;  %vm6845_vm1 = vcmask 1043456  }
  0x21   : > { %v8497_v18 = vld [vmem:[%s11895_s2 + $0x264] ss:$16 sps:$4 sm:$0xff]   ;;  %v8495_v20 = vld [vmem:[%s11895_s2 + $0x260] ss:$16 sps:$4 sm:$0xff]   ;;  %v8498_v21 = vld [vmem:[%s11895_s2 + $0x268] ss:$16 sps:$4 sm:$0xff]  }
  0x22   : > { %v8503_v22 = vld [vmem:[%s11895_s2 + $0x284] ss:$16 sps:$4 sm:$0xff]   ;;  %v8506_v23 = vld [vmem:[%s11895_s2 + $0x28c] ss:$16 sps:$4 sm:$0xff]   ;;  %v8501_v24 = vld [vmem:[%s11895_s2 + $0x280] ss:$16 sps:$4 sm:$0xff]  }
  0x23   : > { %689 = vmatpush1.bf16.msra.mxu0 %v8424_v30  ;;  %775 = vmatpush1.bf16.msra.mxu1 %v8425_v31  ;;  %v8504_v25 = vld [vmem:[%s11895_s2 + $0x288] ss:$16 sps:$4 sm:$0xff]   ;;  %v8509_v26 = vld [vmem:[%s11895_s2 + $0x2a4] ss:$16 sps:$4 sm:$0xff]   ;;  %v8512_v27 = vld [vmem:[%s11895_s2 + $0x2ac] ss:$16 sps:$4 sm:$0xff]  }
  0x24   : > { %690 = vmatprep.subr.bf16.mxu0 %v8426_v32  ;;  %776 = vmatprep.subr.bf16.mxu1 %v8428_v33  ;;  %v8507_v28 = vld [vmem:[%s11895_s2 + $0x2a0] ss:$16 sps:$4 sm:$0xff]   ;;  %v8510_v29 = vld [vmem:[%s11895_s2 + $0x2a8] ss:$16 sps:$4 sm:$0xff]   ;;  %v8515_v30 = vld [vmem:[%s11895_s2 + $0x2c4] ss:$16 sps:$4 sm:$0xff]  }
  0x25   : > { %v8518_v31 = vld [vmem:[%s11895_s2 + $0x2cc] ss:$16 sps:$4 sm:$0xff]   ;;  %v8513_v32 = vld [vmem:[%s11895_s2 + $0x2c0] ss:$16 sps:$4 sm:$0xff]   ;;  %v8516_v33 = vld [vmem:[%s11895_s2 + $0x2c8] ss:$16 sps:$4 sm:$0xff]  }
  0x26   : > { %v8536_v47 = vld [vmem:[%s11895_s2 + $0x32c] ss:$16 sps:$4 sm:$0xff]   ;;  %v8539_v50 = vld [vmem:[%s11895_s2 + $0x344] ss:$16 sps:$4 sm:$0xff]   ;;  %vm6846_vm2 = vcmask 785412   ;;  %vm6849_vm4 = vcmask 1040384  }
  0x27   : > { %691 = vmatpush1.bf16.msra.mxu0 %v8430_v34  ;;  %777 = vmatpush1.bf16.msra.mxu1 %v8431_v35  ;;  %v8521_v34 = vld [vmem:[%s11895_s2 + $0x2e4] ss:$16 sps:$4 sm:$0xff]   ;;  %vm6847_vm3 = vmor %vm6846_vm2, %vm6845_vm1  ;;  %vm6850_vm5 = vsmask.f32 256  ;;  %vm6852_vm6 = vcmask 782340  }
  0x28   : > { %692 = vmatprep.subr.bf16.mxu0 %v8432_v36  ;;  %778 = vmatprep.subr.bf16.mxu1 %v8434_v37  ;;  %v9850_v35 = vld [vmem:[%s9838_s19] sm:$0xff]  ;;  %v9853_v36 = vld [vmem:[%s9838_s19 + $0xc] sm:$0x11]  ;;  %vm6853_vm7 = vsmask.f32 4352  ;;  %vm6851_vm8 = vmand %vm6849_vm4, %vm6850_vm5 }
  0x29   : > { %v8524_v37 = vld [vmem:[%s11895_s2 + $0x2ec] ss:$16 sps:$4 sm:$0xff]   ;;  %vm6854_vm9 = vmand %vm6852_vm6, %vm6853_vm7 }
  0x2a   : > { %vm6855_vm10 = vmor %vm6854_vm9, %vm6851_vm8 }
  0x2b   : > { %693 = vmatpush1.bf16.msra.mxu0 %v8436_v38  ;;  %779 = vmatpush1.bf16.msra.mxu1 %v8437_v39  ;;  %v7085_v38 = vcombine.high %v9850_v35, %v9853_v36  ;;  %v8519_v39 = vld [vmem:[%s11895_s2 + $0x2e0] ss:$16 sps:$4 sm:$0xff]  }
  0x2c   : > { %694 = vmatprep.subr.bf16.mxu0 %v8438_v40  ;;  %780 = vmatprep.subr.bf16.mxu1 %v8440_v41  ;;  %v8522_v40 = vld [vmem:[%s11895_s2 + $0x2e8] ss:$16 sps:$4 sm:$0xff]   ;;  %v8527_v41 = vld [vmem:[%s11895_s2 + $0x304] ss:$16 sps:$4 sm:$0xff]  }
  0x2f   : > { %695 = vmatpush1.bf16.msra.mxu0 %v8442_v42  ;;  %781 = vmatpush1.bf16.msra.mxu1 %v8443_v43  ;;  %v8530_v42 = vld [vmem:[%s11895_s2 + $0x30c] ss:$16 sps:$4 sm:$0xff]   ;;  %v8525_v43 = vld [vmem:[%s11895_s2 + $0x300] ss:$16 sps:$4 sm:$0xff]  }
  0x30   : > { %696 = vmatprep.subr.bf16.mxu0 %v8444_v44  ;;  %782 = vmatprep.subr.bf16.mxu1 %v8446_v45  ;;  %v8528_v44 = vld [vmem:[%s11895_s2 + $0x308] ss:$16 sps:$4 sm:$0xff]   ;;  %v8533_v45 = vld [vmem:[%s11895_s2 + $0x324] ss:$16 sps:$4 sm:$0xff]  }
  0x33   : > { %697 = vmatpush1.bf16.msra.mxu0 %v8448_v48  ;;  %783 = vmatpush1.bf16.msra.mxu1 %v8449_v49  ;;  %v8531_v48 = vld [vmem:[%s11895_s2 + $0x320] ss:$16 sps:$4 sm:$0xff]   ;;  %v8534_v49 = vld [vmem:[%s11895_s2 + $0x328] ss:$16 sps:$4 sm:$0xff]  }
  0x34   : > { %698 = vmatprep.subr.bf16.mxu0 %v8450_v51  ;;  %784 = vmatprep.subr.bf16.mxu1 %v8452_v52  ;;  %v8542_v51 = vld [vmem:[%s11895_s2 + $0x34c] ss:$16 sps:$4 sm:$0xff]   ;;  %v8537_v52 = vld [vmem:[%s11895_s2 + $0x340] ss:$16 sps:$4 sm:$0xff]  }
  0x37   : > { %699 = vmatpush1.bf16.msra.mxu0 %v8454_v53  ;;  %785 = vmatpush1.bf16.msra.mxu1 %v8455_v54  ;;  %v8540_v53 = vld [vmem:[%s11895_s2 + $0x348] ss:$16 sps:$4 sm:$0xff]   ;;  %v8545_v54 = vld [vmem:[%s11895_s2 + $0x364] ss:$16 sps:$4 sm:$0xff]  }
  0x38   : > { %700 = vmatprep.subr.bf16.mxu0 %v8456_v55  ;;  %786 = vmatprep.subr.bf16.mxu1 %v8458_v56  ;;  %v8548_v55 = vld [vmem:[%s11895_s2 + $0x36c] ss:$16 sps:$4 sm:$0xff]   ;;  %v8543_v56 = vld [vmem:[%s11895_s2 + $0x360] ss:$16 sps:$4 sm:$0xff]  }
  0x3b   : > { %701 = vmatpush1.bf16.msra.mxu0 %v8460_v57  ;;  %787 = vmatpush1.bf16.msra.mxu1 %v8461_v58  ;;  %v8546_v57 = vld [vmem:[%s11895_s2 + $0x368] ss:$16 sps:$4 sm:$0xff]   ;;  %v8551_v58 = vld [vmem:[%s11895_s2 + $0x384] ss:$16 sps:$4 sm:$0xff]  }
  0x3c   : > { %702 = vmatprep.subr.bf16.mxu0 %v8462_v59  ;;  %788 = vmatprep.subr.bf16.mxu1 %v8464_v60  ;;  %v8554_v59 = vld [vmem:[%s11895_s2 + $0x38c] ss:$16 sps:$4 sm:$0xff]   ;;  %v8549_v60 = vld [vmem:[%s11895_s2 + $0x380] ss:$16 sps:$4 sm:$0xff]  }
  0x3f   : > { %703 = vmatpush1.bf16.msra.mxu0 %v8466_v61  ;;  %789 = vmatpush1.bf16.msra.mxu1 %v8467_v62  ;;  %v8552_v61 = vld [vmem:[%s11895_s2 + $0x388] ss:$16 sps:$4 sm:$0xff]   ;;  %v8557_v62 = vld [vmem:[%s11895_s2 + $0x3a4] ss:$16 sps:$4 sm:$0xff]  }
  0x40   : > { %704 = vmatprep.subr.bf16.mxu0 %v8468_v63  ;;  %790 = vmatprep.subr.bf16.mxu1 %v8470_v0  ;;  %v8560_v63 = vld [vmem:[%s11895_s2 + $0x3ac] ss:$16 sps:$4 sm:$0xff]   ;;  %v8555_v0 = vld [vmem:[%s11895_s2 + $0x3a0] ss:$16 sps:$4 sm:$0xff]  }
  0x43   : > { %705 = vmatpush1.bf16.msra.mxu0 %v8472_v1  ;;  %791 = vmatpush1.bf16.msra.mxu1 %v8473_v2  ;;  %v8558_v1 = vld [vmem:[%s11895_s2 + $0x3a8] ss:$16 sps:$4 sm:$0xff]   ;;  %v8563_v2 = vld [vmem:[%s11895_s2 + $0x3c4] ss:$16 sps:$4 sm:$0xff]  }
  0x44   : > { %717 = vmatprep.subr.bf16.mxu0 %v8478_v3  ;;  %803 = vmatprep.subr.bf16.mxu1 %v8481_v4  ;;  %v8566_v3 = vld [vmem:[%s11895_s2 + $0x3cc] ss:$16 sps:$4 sm:$0xff]   ;;  %v8561_v4 = vld [vmem:[%s11895_s2 + $0x3c0] ss:$16 sps:$4 sm:$0xff]  }
  0x46   : > { %707 = vmatmul.mubr.bf16.vlgmr.msra.gmra.mrb[0].mxu0 %v6935_v5  ;;  %793 = vmatmul.mubr.bf16.vlgmr.msra.gmra.mrb[0].mxu1 %v6935_v5  ;;  %v8564_v5 = vld [vmem:[%s11895_s2 + $0x3c8] ss:$16 sps:$4 sm:$0xff]  }
  0x47   : > { %718 = vmatpush1.bf16.msra.mxu0 %v8476_v6  ;;  %804 = vmatpush1.bf16.msra.mxu1 %v8479_v7  ;;  %v8569_v6 = vld [vmem:[%s11895_s2 + $0x3e4] ss:$16 sps:$4 sm:$0xff]   ;;  %v8572_v7 = vld [vmem:[%s11895_s2 + $0x3ec] ss:$16 sps:$4 sm:$0xff]  }
  0x48   : > { %719 = vmatprep.subr.bf16.mxu0 %v8484_v8  ;;  %805 = vmatprep.subr.bf16.mxu1 %v8487_v9  ;;  %v8567_v8 = vld [vmem:[%s11895_s2 + $0x3e0] ss:$16 sps:$4 sm:$0xff]   ;;  %v8570_v9 = vld [vmem:[%s11895_s2 + $0x3e8] ss:$16 sps:$4 sm:$0xff]  }
  0x49   : > { %749 = vmatprep.mubr.bf16.mxu0 %v9504_v14  ;;  %835 = vmatprep.mubr.bf16.mxu1 %v9504_v14 }
  0x4b   : > { %720 = vmatpush1.bf16.msra.mxu0 %v8482_v10  ;;  %806 = vmatpush1.bf16.msra.mxu1 %v8485_v11  ;;  %v8575_v10 = vld [vmem:[%s11895_s2 + $0x404] ss:$16 sps:$4 sm:$0xff]   ;;  %v8578_v11 = vld [vmem:[%s11895_s2 + $0x40c] ss:$16 sps:$4 sm:$0xff]  }
  0x4c   : > { %1309 = vmatprep.subr.bf16.mxu0 %v8490_v12  ;;  %1395 = vmatprep.subr.bf16.mxu1 %v8493_v13  ;;  %v8573_v12 = vld [vmem:[%s11895_s2 + $0x400] ss:$16 sps:$4 sm:$0xff]   ;;  %v8576_v13 = vld [vmem:[%s11895_s2 + $0x408] ss:$16 sps:$4 sm:$0xff]  }
  0x52   : > { %7010 = vmatmul.mubr.msk.bf16.vlgmr.msra.gmra.mrb[0].mxu0 %vm670_vm0, %v8494_v16  ;;  %7011 = vmatmul.mubr.msk.bf16.vlgmr.msra.gmra.mrb[0].mxu1 %vm670_vm0, %v8494_v16  ;;  %v8584_v16 = vld [vmem:[%s11895_s2 + $0x42c] ss:$16 sps:$4 sm:$0xff]  }
  0x53   : > { %1310 = vmatpush1.bf16.msra.mxu0 %v8488_v15  ;;  %1396 = vmatpush1.bf16.msra.mxu1 %v8491_v17  ;;  %v8581_v15 = vld [vmem:[%s11895_s2 + $0x424] ss:$16 sps:$4 sm:$0xff]   ;;  %v8579_v17 = vld [vmem:[%s11895_s2 + $0x420] ss:$16 sps:$4 sm:$0xff]  }
  0x54   : > { %1311 = vmatprep.subr.bf16.mxu0 %v8497_v18  ;;  %1397 = vmatprep.subr.bf16.mxu1 %v8500_v19  ;;  %v8582_v18 = vld [vmem:[%s11895_s2 + $0x428] ss:$16 sps:$4 sm:$0xff]   ;;  %v8589_v19 = vld [vmem:[%s11895_s2 + $0x444] ss:$16 sps:$4 sm:$0xff]  }
  0x55   : > { %1341 = vmatprep.mubr.bf16.mxu0 %v7085_v38  ;;  %1427 = vmatprep.mubr.bf16.mxu1 %v7085_v38  ;;  %v8608_v38 = vld [vmem:[%s11895_s2 + $0x4a4] ss:$16 sps:$4 sm:$0xff]  }
  0x57   : > { %1312 = vmatpush1.bf16.msra.mxu0 %v8495_v20  ;;  %1398 = vmatpush1.bf16.msra.mxu1 %v8498_v21  ;;  %v8592_v20 = vld [vmem:[%s11895_s2 + $0x44c] ss:$16 sps:$4 sm:$0xff]   ;;  %v7084_v21 = vcombine.low %v9850_v35, %v9853_v36  ;;  %v8605_v36 = vld [vmem:[%s9838_s19 + $0x8] ss:$12 sps:$4 sm:$0x1f]  }
  0x58   : > { %1313 = vmatprep.subr.bf16.mxu0 %v8503_v22  ;;  %1399 = vmatprep.subr.bf16.mxu1 %v8506_v23  ;;  %v8587_v22 = vld [vmem:[%s11895_s2 + $0x440] ss:$16 sps:$4 sm:$0xff]   ;;  %v8590_v23 = vld [vmem:[%s11895_s2 + $0x448] ss:$16 sps:$4 sm:$0xff]  }
  0x5b   : > { %1314 = vmatpush1.bf16.msra.mxu0 %v8501_v24  ;;  %1400 = vmatpush1.bf16.msra.mxu1 %v8504_v25  ;;  %v8595_v24 = vld [vmem:[%s11895_s2 + $0x464] ss:$16 sps:$4 sm:$0xff]   ;;  %v8598_v25 = vld [vmem:[%s11895_s2 + $0x46c] ss:$16 sps:$4 sm:$0xff]  }
  0x5c   : > { %1315 = vmatprep.subr.bf16.mxu0 %v8509_v26  ;;  %1401 = vmatprep.subr.bf16.mxu1 %v8512_v27  ;;  %v10007_v26 = vld [vmem:[%s9682_s10 + $0xc] sm:$0x11] }
  0x5d   : > { %v8593_v27 = vld [vmem:[%s11895_s2 + $0x460] ss:$16 sps:$4 sm:$0xff]  }
  0x5f   : > { %1316 = vmatpush1.bf16.msra.mxu0 %v8507_v28  ;;  %1402 = vmatpush1.bf16.msra.mxu1 %v8510_v29  ;;  %v7234_v28 = vcombine.high %v9691_v46, %v10007_v26  ;;  %v8596_v29 = vld [vmem:[%s11895_s2 + $0x468] ss:$16 sps:$4 sm:$0xff]  }
  0x60   : > { %1317 = vmatprep.subr.bf16.mxu0 %v8515_v30  ;;  %1403 = vmatprep.subr.bf16.mxu1 %v8518_v31  ;;  %v8601_v30 = vld [vmem:[%s11895_s2 + $0x484] ss:$16 sps:$4 sm:$0xff]   ;;  %v8604_v31 = vld [vmem:[%s11895_s2 + $0x48c] ss:$16 sps:$4 sm:$0xff]  }
  0x61   : > { %v1605_v46 = vshll.u32 %v7234_v28, 16 }
  0x63   : > { %1318 = vmatpush1.bf16.msra.mxu0 %v8513_v32  ;;  %1404 = vmatpush1.bf16.msra.mxu1 %v8516_v33  ;;  %v8599_v32 = vld [vmem:[%s11895_s2 + $0x480] ss:$16 sps:$4 sm:$0xff]   ;;  %v1603_v33 = vshrl.u32 %v7234_v28, 16 }
  0x64   : > { %1319 = vmatprep.subr.bf16.mxu0 %v8521_v34  ;;  %1405 = vmatprep.subr.bf16.mxu1 %v8524_v37  ;;  %v1607_v34 = vrot.slane %v1605_v46, 1  ;;  %v8602_v37 = vld [vmem:[%s11895_s2 + $0x488] ss:$16 sps:$4 sm:$0xff]   ;;  %v9494_v28 = vld [vmem:[%s9682_s10] sm:$0xff] }
  0x65   : > { %v8686_v46 = vld [vmem:[%s11895_s2 + $0x644] ss:$16 sps:$4 sm:$0xff]  }
  0x67   : > { %1320 = vmatpush1.bf16.msra.mxu0 %v8519_v39  ;;  %1406 = vmatpush1.bf16.msra.mxu1 %v8522_v40  ;;  %v8611_v39 = vld [vmem:[%s11895_s2 + $0x4ac] ss:$16 sps:$4 sm:$0xff]   ;;  %v1608_v40 = vor.u32 %v1607_v34, %v1603_v33  ;;  %v8687_v34 = vld [vmem:[%s11895_s2 + $0x648] ss:$16 sps:$4 sm:$0xff]  }
  0x68   : > { %1321 = vmatprep.subr.bf16.mxu0 %v8527_v41  ;;  %1407 = vmatprep.subr.bf16.mxu1 %v8530_v42  ;;  %v8606_v41 = vld [vmem:[%s11895_s2 + $0x4a0] ss:$16 sps:$4 sm:$0xff]   ;;  %v8609_v42 = vld [vmem:[%s11895_s2 + $0x4a8] ss:$16 sps:$4 sm:$0xff]  }
  0x6b   : > { %1322 = vmatpush1.bf16.msra.mxu0 %v8525_v43  ;;  %1408 = vmatpush1.bf16.msra.mxu1 %v8528_v44  ;;  %v8614_v43 = vld [vmem:[%s11895_s2 + $0x4c4] ss:$16 sps:$4 sm:$0xff]   ;;  %v8617_v44 = vld [vmem:[%s11895_s2 + $0x4cc] ss:$16 sps:$4 sm:$0xff]  }
  0x6c   : > { %1323 = vmatprep.subr.bf16.mxu0 %v8533_v45  ;;  %1409 = vmatprep.subr.bf16.mxu1 %v8536_v47  ;;  %v8612_v45 = vld [vmem:[%s11895_s2 + $0x4c0] ss:$16 sps:$4 sm:$0xff]   ;;  %v8615_v47 = vld [vmem:[%s11895_s2 + $0x4c8] ss:$16 sps:$4 sm:$0xff]  }
  0x6f   : > { %1324 = vmatpush1.bf16.msra.mxu0 %v8531_v48  ;;  %1410 = vmatpush1.bf16.msra.mxu1 %v8534_v49  ;;  %v8620_v48 = vld [vmem:[%s11895_s2 + $0x4e4] ss:$16 sps:$4 sm:$0xff]   ;;  %v8623_v49 = vld [vmem:[%s11895_s2 + $0x4ec] ss:$16 sps:$4 sm:$0xff]  }
  0x70   : > { %1325 = vmatprep.subr.bf16.mxu0 %v8539_v50  ;;  %1411 = vmatprep.subr.bf16.mxu1 %v8542_v51  ;;  %v8618_v50 = vld [vmem:[%s11895_s2 + $0x4e0] ss:$16 sps:$4 sm:$0xff]   ;;  %v8621_v51 = vld [vmem:[%s11895_s2 + $0x4e8] ss:$16 sps:$4 sm:$0xff]  }
  0x73   : > { %1326 = vmatpush1.bf16.msra.mxu0 %v8537_v52  ;;  %1412 = vmatpush1.bf16.msra.mxu1 %v8540_v53  ;;  %v8626_v52 = vld [vmem:[%s11895_s2 + $0x504] ss:$16 sps:$4 sm:$0xff]   ;;  %v8629_v53 = vld [vmem:[%s11895_s2 + $0x50c] ss:$16 sps:$4 sm:$0xff]  }
  0x74   : > { %1327 = vmatprep.subr.bf16.mxu0 %v8545_v54  ;;  %1413 = vmatprep.subr.bf16.mxu1 %v8548_v55  ;;  %v8624_v54 = vld [vmem:[%s11895_s2 + $0x500] ss:$16 sps:$4 sm:$0xff]   ;;  %v8627_v55 = vld [vmem:[%s11895_s2 + $0x508] ss:$16 sps:$4 sm:$0xff]  }
  0x77   : > { %1328 = vmatpush1.bf16.msra.mxu0 %v8543_v56  ;;  %1414 = vmatpush1.bf16.msra.mxu1 %v8546_v57  ;;  %v8632_v56 = vld [vmem:[%s11895_s2 + $0x524] ss:$16 sps:$4 sm:$0xff]   ;;  %v8635_v57 = vld [vmem:[%s11895_s2 + $0x52c] ss:$16 sps:$4 sm:$0xff]  }
  0x78   : > { %1329 = vmatprep.subr.bf16.mxu0 %v8551_v58  ;;  %1415 = vmatprep.subr.bf16.mxu1 %v8554_v59  ;;  %v8630_v58 = vld [vmem:[%s11895_s2 + $0x520] ss:$16 sps:$4 sm:$0xff]   ;;  %v8633_v59 = vld [vmem:[%s11895_s2 + $0x528] ss:$16 sps:$4 sm:$0xff]  }
  0x7b   : > { %1330 = vmatpush1.bf16.msra.mxu0 %v8549_v60  ;;  %1416 = vmatpush1.bf16.msra.mxu1 %v8552_v61  ;;  %v8638_v60 = vld [vmem:[%s11895_s2 + $0x544] ss:$16 sps:$4 sm:$0xff]   ;;  %v8641_v61 = vld [vmem:[%s11895_s2 + $0x54c] ss:$16 sps:$4 sm:$0xff]  }
  0x7c   : > { %1331 = vmatprep.subr.bf16.mxu0 %v8557_v62  ;;  %1417 = vmatprep.subr.bf16.mxu1 %v8560_v63  ;;  %v8636_v62 = vld [vmem:[%s11895_s2 + $0x540] ss:$16 sps:$4 sm:$0xff]   ;;  %v8639_v63 = vld [vmem:[%s11895_s2 + $0x548] ss:$16 sps:$4 sm:$0xff]  }
  0x7f   : > { %1332 = vmatpush1.bf16.msra.mxu0 %v8555_v0  ;;  %1418 = vmatpush1.bf16.msra.mxu1 %v8558_v1  ;;  %v8644_v0 = vld [vmem:[%s11895_s2 + $0x564] ss:$16 sps:$4 sm:$0xff]   ;;  %v8647_v1 = vld [vmem:[%s11895_s2 + $0x56c] ss:$16 sps:$4 sm:$0xff]  }
  0x80   : > { %1333 = vmatprep.subr.bf16.mxu0 %v8563_v2  ;;  %1419 = vmatprep.subr.bf16.mxu1 %v8566_v3  ;;  %v8642_v2 = vld [vmem:[%s11895_s2 + $0x560] ss:$16 sps:$4 sm:$0xff]   ;;  %v8645_v3 = vld [vmem:[%s11895_s2 + $0x568] ss:$16 sps:$4 sm:$0xff]  }
  0x83   : > { %1334 = vmatpush1.bf16.msra.mxu0 %v8561_v4  ;;  %1420 = vmatpush1.bf16.msra.mxu1 %v8564_v5  ;;  %v8650_v4 = vld [vmem:[%s11895_s2 + $0x584] ss:$16 sps:$4 sm:$0xff]   ;;  %v8653_v5 = vld [vmem:[%s11895_s2 + $0x58c] ss:$16 sps:$4 sm:$0xff]  }
  0x84   : > { %1335 = vmatprep.subr.bf16.mxu0 %v8569_v6  ;;  %1421 = vmatprep.subr.bf16.mxu1 %v8572_v7  ;;  %v8648_v6 = vld [vmem:[%s11895_s2 + $0x580] ss:$16 sps:$4 sm:$0xff]   ;;  %v8651_v7 = vld [vmem:[%s11895_s2 + $0x588] ss:$16 sps:$4 sm:$0xff]  }
  0x87   : > { %1336 = vmatpush1.bf16.msra.mxu0 %v8567_v8  ;;  %1422 = vmatpush1.bf16.msra.mxu1 %v8570_v9  ;;  %v8656_v8 = vld [vmem:[%s11895_s2 + $0x5a4] ss:$16 sps:$4 sm:$0xff]   ;;  %v8659_v9 = vld [vmem:[%s11895_s2 + $0x5ac] ss:$16 sps:$4 sm:$0xff]  }
  0x88   : > { %1337 = vmatprep.subr.bf16.mxu0 %v8575_v10  ;;  %1423 = vmatprep.subr.bf16.mxu1 %v8578_v11  ;;  %v8654_v10 = vld [vmem:[%s11895_s2 + $0x5a0] ss:$16 sps:$4 sm:$0xff]   ;;  %v8657_v11 = vld [vmem:[%s11895_s2 + $0x5a8] ss:$16 sps:$4 sm:$0xff]  }
  0x8b   : > { %1338 = vmatpush1.bf16.msra.mxu0 %v8573_v12  ;;  %1424 = vmatpush1.bf16.msra.mxu1 %v8576_v13  ;;  %v8662_v12 = vld [vmem:[%s11895_s2 + $0x5c4] ss:$16 sps:$4 sm:$0xff]   ;;  %v8665_v13 = vld [vmem:[%s11895_s2 + $0x5cc] ss:$16 sps:$4 sm:$0xff]  }
  0x8c   : > { %1339 = vmatprep.subr.bf16.mxu0 %v8581_v15  ;;  %1425 = vmatprep.subr.bf16.mxu1 %v8584_v16  ;;  %v8660_v15 = vld [vmem:[%s11895_s2 + $0x5c0] ss:$16 sps:$4 sm:$0xff]   ;;  %v8663_v16 = vld [vmem:[%s11895_s2 + $0x5c8] ss:$16 sps:$4 sm:$0xff]  }
  0x8f   : > { %1340 = vmatpush1.bf16.msra.mxu0 %v8579_v17  ;;  %1426 = vmatpush1.bf16.msra.mxu1 %v8582_v18  ;;  %v8668_v17 = vld [vmem:[%s11895_s2 + $0x5e4] ss:$16 sps:$4 sm:$0xff]   ;;  %v8671_v18 = vld [vmem:[%s11895_s2 + $0x5ec] ss:$16 sps:$4 sm:$0xff]  }
  0x90   : > { %1352 = vmatprep.subr.bf16.mxu0 %v8589_v19  ;;  %1438 = vmatprep.subr.bf16.mxu1 %v8592_v20  ;;  %v8666_v19 = vld [vmem:[%s11895_s2 + $0x5e0] ss:$16 sps:$4 sm:$0xff]   ;;  %v8669_v20 = vld [vmem:[%s11895_s2 + $0x5e8] ss:$16 sps:$4 sm:$0xff]  }
  0x92   : > { %1342 = vmatmul.mubr.bf16.vlgmr.msra.gmra.mrb[4].mxu0 %v7084_v21  ;;  %1428 = vmatmul.mubr.bf16.vlgmr.msra.gmra.mrb[4].mxu1 %v7084_v21  ;;  %v8674_v21 = vld [vmem:[%s11895_s2 + $0x604] ss:$16 sps:$4 sm:$0xff]  }
  0x93   : > { %1353 = vmatpush1.bf16.msra.mxu0 %v8587_v22  ;;  %1439 = vmatpush1.bf16.msra.mxu1 %v8590_v23  ;;  %v8677_v22 = vld [vmem:[%s11895_s2 + $0x60c] ss:$16 sps:$4 sm:$0xff]   ;;  %v8672_v23 = vld [vmem:[%s11895_s2 + $0x600] ss:$16 sps:$4 sm:$0xff]  }
  0x94   : > { %1354 = vmatprep.subr.bf16.mxu0 %v8595_v24  ;;  %1440 = vmatprep.subr.bf16.mxu1 %v8598_v25  ;;  %v8675_v24 = vld [vmem:[%s11895_s2 + $0x608] ss:$16 sps:$4 sm:$0xff]   ;;  %v8680_v25 = vld [vmem:[%s11895_s2 + $0x624] ss:$16 sps:$4 sm:$0xff]  }
  0x95   : > { %1384 = vmatprep.mubr.bf16.mxu0 %v9504_v14  ;;  %1470 = vmatprep.mubr.bf16.mxu1 %v9504_v14 }
  0x97   : > { %1355 = vmatpush1.bf16.msra.mxu0 %v8593_v27  ;;  %1441 = vmatpush1.bf16.msra.mxu1 %v8596_v29  ;;  %v8683_v27 = vld [vmem:[%s11895_s2 + $0x62c] ss:$16 sps:$4 sm:$0xff]   ;;  %v7233_v29 = vcombine.low %v9494_v28, %v10007_v26  ;;  %v8755_v28 = vld [vmem:[%s11895_s2 + $0x7a4] ss:$16 sps:$4 sm:$0xff]  }
  0x98   : > { %1981 = vmatprep.subr.bf16.mxu0 %v8601_v30  ;;  %2067 = vmatprep.subr.bf16.mxu1 %v8604_v31  ;;  %v8678_v30 = vld [vmem:[%s11895_s2 + $0x620] ss:$16 sps:$4 sm:$0xff]   ;;  %v8681_v31 = vld [vmem:[%s11895_s2 + $0x628] ss:$16 sps:$4 sm:$0xff]   ;;  %v8689_v26 = vld [vmem:[%s11895_s2 + $0x64c] ss:$16 sps:$4 sm:$0xff]  }
  0x99   : > { %v1598_v33 = vshll.u32 %v7233_v29, 16 }
  0x9e   : > { %7159 = vmatmul.mubr.msk.bf16.vlgmr.msra.gmra.mrb[4].mxu0 %vm670_vm0, %v8605_v36  ;;  %7160 = vmatmul.mubr.msk.bf16.vlgmr.msra.gmra.mrb[4].mxu1 %vm670_vm0, %v8605_v36  ;;  %v8692_v36 = vld [vmem:[%s11895_s2 + $0x664] ss:$16 sps:$4 sm:$0xff]  }
  0x9f   : > { %1982 = vmatpush1.bf16.msra.mxu0 %v8599_v32  ;;  %2068 = vmatpush1.bf16.msra.mxu1 %v8602_v37  ;;  %v8684_v32 = vld [vmem:[%s11895_s2 + $0x640] ss:$16 sps:$4 sm:$0xff]   ;;  %v8695_v37 = vld [vmem:[%s11895_s2 + $0x66c] ss:$16 sps:$4 sm:$0xff]  }
  0xa0   : > { %1983 = vmatprep.subr.bf16.mxu0 %v8608_v38  ;;  %2069 = vmatprep.subr.bf16.mxu1 %v8611_v39  ;;  %v8690_v38 = vld [vmem:[%s11895_s2 + $0x660] ss:$16 sps:$4 sm:$0xff]   ;;  %v1596_v39 = vshrl.u32 %v7233_v29, 16  ;;  %v8758_v29 = vld [vmem:[%s11895_s2 + $0x7ac] ss:$16 sps:$4 sm:$0xff]  }
  0xa1   : > { %2013 = vmatprep.mubr.bf16.mxu0 %v1608_v40  ;;  %2099 = vmatprep.mubr.bf16.mxu1 %v1608_v40  ;;  %v1600_v40 = vrot.slane %v1598_v33, 1  ;;  %v8762_v33 = vld [vmem:[%s11895_s2 + $0x7c8] ss:$16 sps:$4 sm:$0xff]  }
  0xa3   : > { %1984 = vmatpush1.bf16.msra.mxu0 %v8606_v41  ;;  %2070 = vmatpush1.bf16.msra.mxu1 %v8609_v42  ;;  %v8693_v41 = vld [vmem:[%s11895_s2 + $0x668] ss:$16 sps:$4 sm:$0xff]   ;;  %v8700_v42 = vld [vmem:[%s11895_s2 + $0x684] ss:$16 sps:$4 sm:$0xff]  }
  0xa4   : > { %1985 = vmatprep.subr.bf16.mxu0 %v8614_v43  ;;  %2071 = vmatprep.subr.bf16.mxu1 %v8617_v44  ;;  %v8703_v43 = vld [vmem:[%s11895_s2 + $0x68c] ss:$16 sps:$4 sm:$0xff]   ;;  %v8698_v44 = vld [vmem:[%s11895_s2 + $0x680] ss:$16 sps:$4 sm:$0xff]  }
  0xa7   : > { %1986 = vmatpush1.bf16.msra.mxu0 %v8612_v45  ;;  %2072 = vmatpush1.bf16.msra.mxu1 %v8615_v47  ;;  %v1601_v45 = vor.u32 %v1600_v40, %v1596_v39  ;;  %v8716_v47 = vld [vmem:[%s9682_s10 + $0x8] ss:$12 sps:$4 sm:$0x1f]   ;;  %v8776_v40 = vld [vmem:[%s11895_s2 + $0x80c] ss:$16 sps:$4 sm:$0xff]  }
  0xa8   : > { %1987 = vmatprep.subr.bf16.mxu0 %v8620_v48  ;;  %2073 = vmatprep.subr.bf16.mxu1 %v8623_v49  ;;  %v10227_v48 = vld [vmem:[%s9838_s19 + $0xc] sm:$0x11]  ;;  %v8701_v49 = vld [vmem:[%s11895_s2 + $0x688] ss:$16 sps:$4 sm:$0xff]   ;;  %v8773_v39 = vld [vmem:[%s11895_s2 + $0x804] ss:$16 sps:$4 sm:$0xff]  }
  0xab   : > { %1988 = vmatpush1.bf16.msra.mxu0 %v8618_v50  ;;  %2074 = vmatpush1.bf16.msra.mxu1 %v8621_v51  ;;  %v8706_v50 = vld [vmem:[%s11895_s2 + $0x6a4] ss:$16 sps:$4 sm:$0xff]   ;;  %v8709_v51 = vld [vmem:[%s11895_s2 + $0x6ac] ss:$16 sps:$4 sm:$0xff]  }
  0xac   : > { %1989 = vmatprep.subr.bf16.mxu0 %v8626_v52  ;;  %2075 = vmatprep.subr.bf16.mxu1 %v8629_v53  ;;  %v7383_v52 = vcombine.high %v9850_v35, %v10227_v48  ;;  %v8704_v53 = vld [vmem:[%s11895_s2 + $0x6a0] ss:$16 sps:$4 sm:$0xff]   ;;  %v8715_v35 = vld [vmem:[%s11895_s2 + $0x6cc] ss:$16 sps:$4 sm:$0xff]  }
  0xaf   : > { %1990 = vmatpush1.bf16.msra.mxu0 %v8624_v54  ;;  %2076 = vmatpush1.bf16.msra.mxu1 %v8627_v55  ;;  %v1612_v54 = vshll.u32 %v8716_v47, 16  ;;  %v8707_v55 = vld [vmem:[%s11895_s2 + $0x6a8] ss:$16 sps:$4 sm:$0xff]  }
  0xb0   : > { %1991 = vmatprep.subr.bf16.mxu0 %v8632_v56  ;;  %2077 = vmatprep.subr.bf16.mxu1 %v8635_v57  ;;  %v8712_v56 = vld [vmem:[%s11895_s2 + $0x6c4] ss:$16 sps:$4 sm:$0xff]   ;;  %v2277_v57 = vshll.u32 %v7383_v52, 16 }
  0xb3   : > { %1992 = vmatpush1.bf16.msra.mxu0 %v8630_v58  ;;  %2078 = vmatpush1.bf16.msra.mxu1 %v8633_v59  ;;  %v1610_v58 = vshrl.u32 %v8716_v47, 16  ;;  %v1614_v59 = vrot.slane %v1612_v54, 1  ;;  %v8780_v47 = vld [vmem:[%s11895_s2 + $0x828] ss:$16 sps:$4 sm:$0xff]   ;;  %v8794_v54 = vld [vmem:[%s11895_s2 + $0x86c] ss:$16 sps:$4 sm:$0xff]  }
  0xb4   : > { %1993 = vmatprep.subr.bf16.mxu0 %v8638_v60  ;;  %2079 = vmatprep.subr.bf16.mxu1 %v8641_v61  ;;  %v2275_v60 = vshrl.u32 %v7383_v52, 16  ;;  %v2279_v61 = vrot.slane %v2277_v57, 1  ;;  %v8786_v52 = vld [vmem:[%s11895_s2 + $0x848] ss:$16 sps:$4 sm:$0xff]  }
  0xb5   : > { %v8792_v57 = vld [vmem:[%s11895_s2 + $0x868] ss:$16 sps:$4 sm:$0xff]  }
  0xb7   : > { %1994 = vmatpush1.bf16.msra.mxu0 %v8636_v62  ;;  %2080 = vmatpush1.bf16.msra.mxu1 %v8639_v63  ;;  %v8710_v62 = vld [vmem:[%s11895_s2 + $0x6c0] ss:$16 sps:$4 sm:$0xff]   ;;  %v1615_v63 = vor.u32 %v1614_v59, %v1610_v58  ;;  %v8797_v58 = vld [vmem:[%s11895_s2 + $0x884] ss:$16 sps:$4 sm:$0xff]  }
  0xb8   : > { %1995 = vmatprep.subr.bf16.mxu0 %v8644_v0  ;;  %2081 = vmatprep.subr.bf16.mxu1 %v8647_v1  ;;  %v8713_v0 = vld [vmem:[%s11895_s2 + $0x6c8] ss:$16 sps:$4 sm:$0xff]   ;;  %v8719_v1 = vld [vmem:[%s11895_s2 + $0x6e4] ss:$16 sps:$4 sm:$0xff]  }
  0xbb   : > { %1996 = vmatpush1.bf16.msra.mxu0 %v8642_v2  ;;  %2082 = vmatpush1.bf16.msra.mxu1 %v8645_v3  ;;  %v8722_v2 = vld [vmem:[%s11895_s2 + $0x6ec] ss:$16 sps:$4 sm:$0xff]   ;;  %v2280_v3 = vor.u32 %v2279_v61, %v2275_v60  ;;  %v8795_v60 = vld [vmem:[%s11895_s2 + $0x880] ss:$16 sps:$4 sm:$0xff]   ;;  %v8798_v61 = vld [vmem:[%s11895_s2 + $0x888] ss:$16 sps:$4 sm:$0xff]  }
  0xbc   : > { %1997 = vmatprep.subr.bf16.mxu0 %v8650_v4  ;;  %2083 = vmatprep.subr.bf16.mxu1 %v8653_v5  ;;  %v8717_v4 = vld [vmem:[%s11895_s2 + $0x6e0] ss:$16 sps:$4 sm:$0xff]   ;;  %v8720_v5 = vld [vmem:[%s11895_s2 + $0x6e8] ss:$16 sps:$4 sm:$0xff]  }
  0xbf   : > { %1998 = vmatpush1.bf16.msra.mxu0 %v8648_v6  ;;  %2084 = vmatpush1.bf16.msra.mxu1 %v8651_v7  ;;  %v8725_v6 = vld [vmem:[%s11895_s2 + $0x704] ss:$16 sps:$4 sm:$0xff]   ;;  %v8728_v7 = vld [vmem:[%s11895_s2 + $0x70c] ss:$16 sps:$4 sm:$0xff]  }
  0xc0   : > { %1999 = vmatprep.subr.bf16.mxu0 %v8656_v8  ;;  %2085 = vmatprep.subr.bf16.mxu1 %v8659_v9  ;;  %v8723_v8 = vld [vmem:[%s11895_s2 + $0x700] ss:$16 sps:$4 sm:$0xff]   ;;  %v8726_v9 = vld [vmem:[%s11895_s2 + $0x708] ss:$16 sps:$4 sm:$0xff]  }
  0xc3   : > { %2000 = vmatpush1.bf16.msra.mxu0 %v8654_v10  ;;  %2086 = vmatpush1.bf16.msra.mxu1 %v8657_v11  ;;  %v8731_v10 = vld [vmem:[%s11895_s2 + $0x724] ss:$16 sps:$4 sm:$0xff]   ;;  %v8734_v11 = vld [vmem:[%s11895_s2 + $0x72c] ss:$16 sps:$4 sm:$0xff]  }
  0xc4   : > { %2001 = vmatprep.subr.bf16.mxu0 %v8662_v12  ;;  %2087 = vmatprep.subr.bf16.mxu1 %v8665_v13  ;;  %v8729_v12 = vld [vmem:[%s11895_s2 + $0x720] ss:$16 sps:$4 sm:$0xff]   ;;  %v8732_v13 = vld [vmem:[%s11895_s2 + $0x728] ss:$16 sps:$4 sm:$0xff]  }
  0xc7   : > { %2002 = vmatpush1.bf16.msra.mxu0 %v8660_v15  ;;  %2088 = vmatpush1.bf16.msra.mxu1 %v8663_v16  ;;  %v8737_v15 = vld [vmem:[%s11895_s2 + $0x744] ss:$16 sps:$4 sm:$0xff]   ;;  %v8740_v16 = vld [vmem:[%s11895_s2 + $0x74c] ss:$16 sps:$4 sm:$0xff]  }
  0xc8   : > { %2003 = vmatprep.subr.bf16.mxu0 %v8668_v17  ;;  %2089 = vmatprep.subr.bf16.mxu1 %v8671_v18  ;;  %v8735_v17 = vld [vmem:[%s11895_s2 + $0x740] ss:$16 sps:$4 sm:$0xff]   ;;  %v8738_v18 = vld [vmem:[%s11895_s2 + $0x748] ss:$16 sps:$4 sm:$0xff]  }
  0xcb   : > { %2004 = vmatpush1.bf16.msra.mxu0 %v8666_v19  ;;  %2090 = vmatpush1.bf16.msra.mxu1 %v8669_v20  ;;  %v8743_v19 = vld [vmem:[%s11895_s2 + $0x764] ss:$16 sps:$4 sm:$0xff]   ;;  %v8746_v20 = vld [vmem:[%s11895_s2 + $0x76c] ss:$16 sps:$4 sm:$0xff]  }
  0xcc   : > { %2005 = vmatprep.subr.bf16.mxu0 %v8674_v21  ;;  %2091 = vmatprep.subr.bf16.mxu1 %v8677_v22  ;;  %v8741_v21 = vld [vmem:[%s11895_s2 + $0x760] ss:$16 sps:$4 sm:$0xff]   ;;  %v8744_v22 = vld [vmem:[%s11895_s2 + $0x768] ss:$16 sps:$4 sm:$0xff]  }
  0xcf   : > { %2006 = vmatpush1.bf16.msra.mxu0 %v8672_v23  ;;  %2092 = vmatpush1.bf16.msra.mxu1 %v8675_v24  ;;  %v8749_v23 = vld [vmem:[%s11895_s2 + $0x784] ss:$16 sps:$4 sm:$0xff]   ;;  %v8752_v24 = vld [vmem:[%s11895_s2 + $0x78c] ss:$16 sps:$4 sm:$0xff]  }
  0xd0   : > { %2007 = vmatprep.subr.bf16.mxu0 %v8680_v25  ;;  %2093 = vmatprep.subr.bf16.mxu1 %v8683_v27  ;;  %v8747_v25 = vld [vmem:[%s11895_s2 + $0x780] ss:$16 sps:$4 sm:$0xff]   ;;  %v8750_v27 = vld [vmem:[%s11895_s2 + $0x788] ss:$16 sps:$4 sm:$0xff]  }
  0xd3   : > { %2008 = vmatpush1.bf16.msra.mxu0 %v8678_v30  ;;  %2094 = vmatpush1.bf16.msra.mxu1 %v8681_v31  ;;  %v8753_v30 = vld [vmem:[%s11895_s2 + $0x7a0] ss:$16 sps:$4 sm:$0xff]   ;;  %v8756_v31 = vld [vmem:[%s11895_s2 + $0x7a8] ss:$16 sps:$4 sm:$0xff]  }
  0xd4   : > { %2009 = vmatprep.subr.bf16.mxu0 %v8686_v46  ;;  %2095 = vmatprep.subr.bf16.mxu1 %v8689_v26  ;;  %v8761_v46 = vld [vmem:[%s11895_s2 + $0x7c4] ss:$16 sps:$4 sm:$0xff]   ;;  %v8764_v26 = vld [vmem:[%s11895_s2 + $0x7cc] ss:$16 sps:$4 sm:$0xff]  }
  0xd7   : > { %2010 = vmatpush1.bf16.msra.mxu0 %v8684_v32  ;;  %2096 = vmatpush1.bf16.msra.mxu1 %v8687_v34  ;;  %v8759_v32 = vld [vmem:[%s11895_s2 + $0x7c0] ss:$16 sps:$4 sm:$0xff]   ;;  %v8767_v34 = vld [vmem:[%s11895_s2 + $0x7e4] ss:$16 sps:$4 sm:$0xff]  }
  0xd8   : > { %2011 = vmatprep.subr.bf16.mxu0 %v8692_v36  ;;  %2097 = vmatprep.subr.bf16.mxu1 %v8695_v37  ;;  %v8770_v36 = vld [vmem:[%s11895_s2 + $0x7ec] ss:$16 sps:$4 sm:$0xff]   ;;  %v8765_v37 = vld [vmem:[%s11895_s2 + $0x7e0] ss:$16 sps:$4 sm:$0xff]  }
  0xdb   : > { %2012 = vmatpush1.bf16.msra.mxu0 %v8690_v38  ;;  %2098 = vmatpush1.bf16.msra.mxu1 %v8693_v41  ;;  %v8768_v38 = vld [vmem:[%s11895_s2 + $0x7e8] ss:$16 sps:$4 sm:$0xff]   ;;  %v8771_v41 = vld [vmem:[%s11895_s2 + $0x800] ss:$16 sps:$4 sm:$0xff]  }
  0xdc   : > { %2024 = vmatprep.subr.bf16.mxu0 %v8700_v42  ;;  %2110 = vmatprep.subr.bf16.mxu1 %v8703_v43  ;;  %v8774_v42 = vld [vmem:[%s11895_s2 + $0x808] ss:$16 sps:$4 sm:$0xff]   ;;  %v8779_v43 = vld [vmem:[%s11895_s2 + $0x824] ss:$16 sps:$4 sm:$0xff]  }
  0xde   : > { %2014 = vmatmul.mubr.bf16.vlgmr.msra.gmra.mrb[8].mxu0 %v1601_v45  ;;  %2100 = vmatmul.mubr.bf16.vlgmr.msra.gmra.mrb[8].mxu1 %v1601_v45  ;;  %v8777_v45 = vld [vmem:[%s11895_s2 + $0x820] ss:$16 sps:$4 sm:$0xff]  }
  0xdf   : > { %2025 = vmatpush1.bf16.msra.mxu0 %v8698_v44  ;;  %2111 = vmatpush1.bf16.msra.mxu1 %v8701_v49  ;;  %v8782_v44 = vld [vmem:[%s11895_s2 + $0x82c] ss:$16 sps:$4 sm:$0xff]   ;;  %v8785_v49 = vld [vmem:[%s11895_s2 + $0x844] ss:$16 sps:$4 sm:$0xff]  }
  0xe0   : > { %2026 = vmatprep.subr.bf16.mxu0 %v8706_v50  ;;  %2112 = vmatprep.subr.bf16.mxu1 %v8709_v51  ;;  %v8788_v50 = vld [vmem:[%s11895_s2 + $0x84c] ss:$16 sps:$4 sm:$0xff]   ;;  %v8783_v51 = vld [vmem:[%s11895_s2 + $0x840] ss:$16 sps:$4 sm:$0xff]  }
  0xe1   : > { %2056 = vmatprep.mubr.bf16.mxu0 %v9504_v14  ;;  %2142 = vmatprep.mubr.bf16.mxu1 %v9504_v14 }
  0xe3   : > { %2027 = vmatpush1.bf16.msra.mxu0 %v8704_v53  ;;  %2113 = vmatpush1.bf16.msra.mxu1 %v8707_v55  ;;  %v8791_v53 = vld [vmem:[%s11895_s2 + $0x864] ss:$16 sps:$4 sm:$0xff]  }
  0xe4   : > { %2653 = vmatprep.subr.bf16.mxu0 %v8712_v56  ;;  %2739 = vmatprep.subr.bf16.mxu1 %v8715_v35  ;;  %v9495_v55 = vld [vmem:[%s9838_s19] sm:$0xff] }
  0xe5   : > { %v7382_v56 = vcombine.low %v9495_v55, %v10227_v48  ;;  %v8789_v35 = vld [vmem:[%s11895_s2 + $0x860] ss:$16 sps:$4 sm:$0xff]   ;;  %v8800_v48 = vld [vmem:[%s11895_s2 + $0x88c] ss:$16 sps:$4 sm:$0xff]   ;;  %v8860_v55 = vld [vmem:[%s11895_s2 + $0x9c4] ss:$16 sps:$4 sm:$0xff]  }
  0xe7   : > { %v2270_v59 = vshll.u32 %v7382_v56, 16 }
  0xea   : > { %7308 = vmatmul.mubr.msk.bf16.vlgmr.msra.gmra.mrb[8].mxu0 %vm670_vm0, %v1615_v63  ;;  %7309 = vmatmul.mubr.msk.bf16.vlgmr.msra.gmra.mrb[8].mxu1 %vm670_vm0, %v1615_v63  ;;  %v8806_v63 = vld [vmem:[%s11895_s2 + $0x8ac] ss:$16 sps:$4 sm:$0xff]  }
  0xeb   : > { %2654 = vmatpush1.bf16.msra.mxu0 %v8710_v62  ;;  %2740 = vmatpush1.bf16.msra.mxu1 %v8713_v0  ;;  %v8803_v62 = vld [vmem:[%s11895_s2 + $0x8a4] ss:$16 sps:$4 sm:$0xff]   ;;  %v8801_v0 = vld [vmem:[%s11895_s2 + $0x8a0] ss:$16 sps:$4 sm:$0xff]  }
  0xec   : > { %2655 = vmatprep.subr.bf16.mxu0 %v8719_v1  ;;  %2741 = vmatprep.subr.bf16.mxu1 %v8722_v2  ;;  %v8804_v1 = vld [vmem:[%s11895_s2 + $0x8a8] ss:$16 sps:$4 sm:$0xff]   ;;  %v2268_v2 = vshrl.u32 %v7382_v56, 16  ;;  %v8863_v56 = vld [vmem:[%s11895_s2 + $0x9cc] ss:$16 sps:$4 sm:$0xff]  }
  0xed   : > { %2685 = vmatprep.mubr.bf16.mxu0 %v2280_v3  ;;  %2771 = vmatprep.mubr.bf16.mxu1 %v2280_v3  ;;  %v2272_v3 = vrot.slane %v2270_v59, 1  ;;  %v8864_v59 = vld [vmem:[%s11895_s2 + $0x9e0] ss:$16 sps:$4 sm:$0xff]  }
  0xef   : > { %2656 = vmatpush1.bf16.msra.mxu0 %v8717_v4  ;;  %2742 = vmatpush1.bf16.msra.mxu1 %v8720_v5  ;;  %v8811_v4 = vld [vmem:[%s11895_s2 + $0x8c4] ss:$16 sps:$4 sm:$0xff]   ;;  %v8814_v5 = vld [vmem:[%s11895_s2 + $0x8cc] ss:$16 sps:$4 sm:$0xff]  }
  0xf0   : > { %2657 = vmatprep.subr.bf16.mxu0 %v8725_v6  ;;  %2743 = vmatprep.subr.bf16.mxu1 %v8728_v7  ;;  %v8827_v6 = vld [vmem:[%s9838_s19 + $0x8] ss:$12 sps:$4 sm:$0x1f]  }
  0xf3   : > { %2658 = vmatpush1.bf16.msra.mxu0 %v8723_v8  ;;  %2744 = vmatpush1.bf16.msra.mxu1 %v8726_v9 }
  0xf4   : > { %2659 = vmatprep.subr.bf16.mxu0 %v8731_v10  ;;  %2745 = vmatprep.subr.bf16.mxu1 %v8734_v11  ;;  %v2273_v11 = vor.u32 %v2272_v3, %v2268_v2  ;;  %v8881_v2 = vld [vmem:[%s11895_s2 + $0xa2c] ss:$16 sps:$4 sm:$0xff]   ;;  %v8876_v3 = vld [vmem:[%s11895_s2 + $0xa20] ss:$16 sps:$4 sm:$0xff]  }
  0xf7   : > { %2660 = vmatpush1.bf16.msra.mxu0 %v8729_v12  ;;  %2746 = vmatpush1.bf16.msra.mxu1 %v8732_v13 }
  0xf8   : > { %2661 = vmatprep.subr.bf16.mxu0 %v8737_v15  ;;  %2747 = vmatprep.subr.bf16.mxu1 %v8740_v16  ;;  %v8809_v15 = vld [vmem:[%s11895_s2 + $0x8c0] ss:$16 sps:$4 sm:$0xff]   ;;  %v8812_v16 = vld [vmem:[%s11895_s2 + $0x8c8] ss:$16 sps:$4 sm:$0xff]  }
  0xfb   : > { %2662 = vmatpush1.bf16.msra.mxu0 %v8735_v17  ;;  %2748 = vmatpush1.bf16.msra.mxu1 %v8738_v18 }
  0xfc   : > { %2663 = vmatprep.subr.bf16.mxu0 %v8743_v19  ;;  %2749 = vmatprep.subr.bf16.mxu1 %v8746_v20  ;;  %v8817_v19 = vld [vmem:[%s11895_s2 + $0x8e4] ss:$16 sps:$4 sm:$0xff]   ;;  %v8820_v20 = vld [vmem:[%s11895_s2 + $0x8ec] ss:$16 sps:$4 sm:$0xff]  }
  0xff   : > { %2664 = vmatpush1.bf16.msra.mxu0 %v8741_v21  ;;  %2750 = vmatpush1.bf16.msra.mxu1 %v8744_v22  ;;  %v2284_v21 = vshll.u32 %v8827_v6, 16  ;;  %v8815_v22 = vld [vmem:[%s11895_s2 + $0x8e0] ss:$16 sps:$4 sm:$0xff]  }
 0x100   : > { %2665 = vmatprep.subr.bf16.mxu0 %v8749_v23  ;;  %2751 = vmatprep.subr.bf16.mxu1 %v8752_v24  ;;  %v8818_v23 = vld [vmem:[%s11895_s2 + $0x8e8] ss:$16 sps:$4 sm:$0xff]   ;;  %v8823_v24 = vld [vmem:[%s11895_s2 + $0x904] ss:$16 sps:$4 sm:$0xff]  }
 0x103   : > { %2666 = vmatpush1.bf16.msra.mxu0 %v8747_v25  ;;  %2752 = vmatpush1.bf16.msra.mxu1 %v8750_v27  ;;  %v8826_v25 = vld [vmem:[%s11895_s2 + $0x90c] ss:$16 sps:$4 sm:$0xff]   ;;  %v2282_v27 = vshrl.u32 %v8827_v6, 16 }
 0x104   : > { %2667 = vmatprep.subr.bf16.mxu0 %v8755_v28  ;;  %2753 = vmatprep.subr.bf16.mxu1 %v8758_v29  ;;  %v2286_v28 = vrot.slane %v2284_v21, 1  ;;  %v8920_v29 = vld [vmem:[%s9682_s10 + $0x4] ss:$12 sps:$4 sm:$0x3e]   ;;  %v8887_v6 = vld [vmem:[%s11895_s2 + $0xa4c] ss:$16 sps:$4 sm:$0xff]  }
 0x105   : > { %v8897_v21 = vld [vmem:[%s11895_s2 + $0xa88] ss:$16 sps:$4 sm:$0xff]  }
 0x107   : > { %2668 = vmatpush1.bf16.msra.mxu0 %v8753_v30  ;;  %2754 = vmatpush1.bf16.msra.mxu1 %v8756_v31  ;;  %v2287_v30 = vor.u32 %v2286_v28, %v2282_v27  ;;  %v8821_v31 = vld [vmem:[%s11895_s2 + $0x900] ss:$16 sps:$4 sm:$0xff]   ;;  %v8908_v27 = vld [vmem:[%s11895_s2 + $0xac4] ss:$16 sps:$4 sm:$0xff]   ;;  %v8911_v28 = vld [vmem:[%s11895_s2 + $0xacc] ss:$16 sps:$4 sm:$0xff]  }
 0x108   : > { %2669 = vmatprep.subr.bf16.mxu0 %v8761_v46  ;;  %2755 = vmatprep.subr.bf16.mxu1 %v8764_v26  ;;  %v8824_v46 = vld [vmem:[%s11895_s2 + $0x908] ss:$16 sps:$4 sm:$0xff]   ;;  %v8830_v26 = vld [vmem:[%s11895_s2 + $0x924] ss:$16 sps:$4 sm:$0xff]  }
 0x10b   : > { %2670 = vmatpush1.bf16.msra.mxu0 %v8759_v32  ;;  %2756 = vmatpush1.bf16.msra.mxu1 %v8762_v33  ;;  %v8833_v32 = vld [vmem:[%s11895_s2 + $0x92c] ss:$16 sps:$4 sm:$0xff]   ;;  %v2940_v33 = vrot.slane %v8920_v29, 1  ;;  %v8906_v29 = vld [vmem:[%s11895_s2 + $0xac0] ss:$16 sps:$4 sm:$0xff]  }
 0x10c   : > { %2671 = vmatprep.subr.bf16.mxu0 %v8767_v34  ;;  %2757 = vmatprep.subr.bf16.mxu1 %v8770_v36  ;;  %v8828_v34 = vld [vmem:[%s11895_s2 + $0x920] ss:$16 sps:$4 sm:$0xff]   ;;  %v8831_v36 = vld [vmem:[%s11895_s2 + $0x928] ss:$16 sps:$4 sm:$0xff]  }
 0x10f   : > { %2672 = vmatpush1.bf16.msra.mxu0 %v8765_v37  ;;  %2758 = vmatpush1.bf16.msra.mxu1 %v8768_v38  ;;  %v8836_v37 = vld [vmem:[%s11895_s2 + $0x944] ss:$16 sps:$4 sm:$0xff]   ;;  %v8839_v38 = vld [vmem:[%s11895_s2 + $0x94c] ss:$16 sps:$4 sm:$0xff]  }
 0x110   : > { %2673 = vmatprep.subr.bf16.mxu0 %v8773_v39  ;;  %2759 = vmatprep.subr.bf16.mxu1 %v8776_v40  ;;  %v8834_v39 = vld [vmem:[%s11895_s2 + $0x940] ss:$16 sps:$4 sm:$0xff]   ;;  %v8837_v40 = vld [vmem:[%s11895_s2 + $0x948] ss:$16 sps:$4 sm:$0xff]  }
 0x113   : > { %2674 = vmatpush1.bf16.msra.mxu0 %v8771_v41  ;;  %2760 = vmatpush1.bf16.msra.mxu1 %v8774_v42  ;;  %v8842_v41 = vld [vmem:[%s11895_s2 + $0x964] ss:$16 sps:$4 sm:$0xff]   ;;  %v8845_v42 = vld [vmem:[%s11895_s2 + $0x96c] ss:$16 sps:$4 sm:$0xff]  }
 0x114   : > { %2675 = vmatprep.subr.bf16.mxu0 %v8779_v43  ;;  %2761 = vmatprep.subr.bf16.mxu1 %v8782_v44  ;;  %v8840_v43 = vld [vmem:[%s11895_s2 + $0x960] ss:$16 sps:$4 sm:$0xff]   ;;  %v8843_v44 = vld [vmem:[%s11895_s2 + $0x968] ss:$16 sps:$4 sm:$0xff]  }
 0x117   : > { %2676 = vmatpush1.bf16.msra.mxu0 %v8777_v45  ;;  %2762 = vmatpush1.bf16.msra.mxu1 %v8780_v47  ;;  %v8848_v45 = vld [vmem:[%s11895_s2 + $0x984] ss:$16 sps:$4 sm:$0xff]   ;;  %v8851_v47 = vld [vmem:[%s11895_s2 + $0x98c] ss:$16 sps:$4 sm:$0xff]  }
 0x118   : > { %2677 = vmatprep.subr.bf16.mxu0 %v8785_v49  ;;  %2763 = vmatprep.subr.bf16.mxu1 %v8788_v50  ;;  %v8846_v49 = vld [vmem:[%s11895_s2 + $0x980] ss:$16 sps:$4 sm:$0xff]   ;;  %v8849_v50 = vld [vmem:[%s11895_s2 + $0x988] ss:$16 sps:$4 sm:$0xff]  }
 0x11b   : > { %2678 = vmatpush1.bf16.msra.mxu0 %v8783_v51  ;;  %2764 = vmatpush1.bf16.msra.mxu1 %v8786_v52  ;;  %v8854_v51 = vld [vmem:[%s11895_s2 + $0x9a4] ss:$16 sps:$4 sm:$0xff]   ;;  %v8857_v52 = vld [vmem:[%s11895_s2 + $0x9ac] ss:$16 sps:$4 sm:$0xff]  }
 0x11c   : > { %2679 = vmatprep.subr.bf16.mxu0 %v8791_v53  ;;  %2765 = vmatprep.subr.bf16.mxu1 %v8794_v54  ;;  %v8852_v53 = vld [vmem:[%s11895_s2 + $0x9a0] ss:$16 sps:$4 sm:$0xff]   ;;  %v8855_v54 = vld [vmem:[%s11895_s2 + $0x9a8] ss:$16 sps:$4 sm:$0xff]  }
 0x11f   : > { %2680 = vmatpush1.bf16.msra.mxu0 %v8789_v35  ;;  %2766 = vmatpush1.bf16.msra.mxu1 %v8792_v57  ;;  %v8858_v35 = vld [vmem:[%s11895_s2 + $0x9c0] ss:$16 sps:$4 sm:$0xff]   ;;  %v8861_v57 = vld [vmem:[%s11895_s2 + $0x9c8] ss:$16 sps:$4 sm:$0xff]  }
 0x120   : > { %2681 = vmatprep.subr.bf16.mxu0 %v8797_v58  ;;  %2767 = vmatprep.subr.bf16.mxu1 %v8800_v48  ;;  %v8866_v58 = vld [vmem:[%s11895_s2 + $0x9e4] ss:$16 sps:$4 sm:$0xff]   ;;  %v8869_v48 = vld [vmem:[%s11895_s2 + $0x9ec] ss:$16 sps:$4 sm:$0xff]  }
 0x123   : > { %2682 = vmatpush1.bf16.msra.mxu0 %v8795_v60  ;;  %2768 = vmatpush1.bf16.msra.mxu1 %v8798_v61  ;;  %v8867_v60 = vld [vmem:[%s11895_s2 + $0x9e8] ss:$16 sps:$4 sm:$0xff]   ;;  %v8872_v61 = vld [vmem:[%s11895_s2 + $0xa04] ss:$16 sps:$4 sm:$0xff]  }
 0x124   : > { %2683 = vmatprep.subr.bf16.mxu0 %v8803_v62  ;;  %2769 = vmatprep.subr.bf16.mxu1 %v8806_v63  ;;  %v8875_v62 = vld [vmem:[%s11895_s2 + $0xa0c] ss:$16 sps:$4 sm:$0xff]   ;;  %v8870_v63 = vld [vmem:[%s11895_s2 + $0xa00] ss:$16 sps:$4 sm:$0xff]  }
 0x125   : > { %v10451_v7 = vpop.f32.mrb[0].mxu0  ;;  %v10453_v8 = vpop.f32.mrb[0].mxu1 }
 0x126   : > { %v10455_v9 = vpop.f32.mrb[1].mxu0  ;;  %v10457_v10 = vpop.f32.mrb[1].mxu1 }
 0x127   : > { %2684 = vmatpush1.bf16.msra.mxu0 %v8801_v0  ;;  %2770 = vmatpush1.bf16.msra.mxu1 %v8804_v1  ;;  %v755_v12 = vpop.f32.mrb[2].mxu0  ;;  %v841_v13 = vpop.f32.mrb[2].mxu1  ;;  %v8873_v0 = vld [vmem:[%s11895_s2 + $0xa08] ss:$16 sps:$4 sm:$0xff]   ;;  %v8878_v1 = vld [vmem:[%s11895_s2 + $0xa24] ss:$16 sps:$4 sm:$0xff]  }
 0x128   : > { %850 = vst [vmem:[#allocation2 + $0x20] sm:$0x1] %v755_v12  ;;  %852 = vst [vmem:[#allocation2 + $0x30] sm:$0x1] %v841_v13  ;;  %2696 = vmatprep.subr.bf16.mxu0 %v8811_v4  ;;  %2782 = vmatprep.subr.bf16.mxu1 %v8814_v5  ;;  %v757_v17 = vpop.f32.mrb[3].mxu0  ;;  %v843_v18 = vpop.f32.mrb[3].mxu1 }
 0x129   : > { %851 = vst [vmem:[#allocation2 + $0x28] sm:$0x1] %v757_v17  ;;  %853 = vst [vmem:[#allocation2 + $0x38] sm:$0x1] %v843_v18  ;;  %v8879_v4 = vld [vmem:[%s11895_s2 + $0xa28] ss:$16 sps:$4 sm:$0xff]  }
 0x12a   : > { %2686 = vmatmul.mubr.bf16.vlgmr.msra.gmra.mrb[12].mxu0 %v2273_v11  ;;  %2772 = vmatmul.mubr.bf16.vlgmr.msra.gmra.mrb[12].mxu1 %v2273_v11  ;;  %v8884_v5 = vld [vmem:[%s11895_s2 + $0xa44] ss:$16 sps:$4 sm:$0xff]   ;;  %v8882_v11 = vld [vmem:[%s11895_s2 + $0xa40] ss:$16 sps:$4 sm:$0xff]   ;;  %v8885_v12 = vld [vmem:[%s11895_s2 + $0xa48] ss:$16 sps:$4 sm:$0xff]  }
 0x12b   : > { %2697 = vmatpush1.bf16.msra.mxu0 %v8809_v15  ;;  %2783 = vmatpush1.bf16.msra.mxu1 %v8812_v16  ;;  %v8890_v13 = vld [vmem:[%s11895_s2 + $0xa64] ss:$16 sps:$4 sm:$0xff]   ;;  %v8893_v15 = vld [vmem:[%s11895_s2 + $0xa6c] ss:$16 sps:$4 sm:$0xff]   ;;  %v8888_v16 = vld [vmem:[%s11895_s2 + $0xa60] ss:$16 sps:$4 sm:$0xff]  }
 0x12c   : > { %2698 = vmatprep.subr.bf16.mxu0 %v8817_v19  ;;  %2784 = vmatprep.subr.bf16.mxu1 %v8820_v20  ;;  %v8891_v17 = vld [vmem:[%s11895_s2 + $0xa68] ss:$16 sps:$4 sm:$0xff]   ;;  %v8896_v18 = vld [vmem:[%s11895_s2 + $0xa84] ss:$16 sps:$4 sm:$0xff]   ;;  %v8899_v19 = vld [vmem:[%s11895_s2 + $0xa8c] ss:$16 sps:$4 sm:$0xff]  }
 0x12d   : > { %2728 = vmatprep.mubr.bf16.mxu0 %v9504_v14  ;;  %2814 = vmatprep.mubr.bf16.mxu1 %v9504_v14  ;;  %v8894_v20 = vld [vmem:[%s11895_s2 + $0xa80] ss:$16 sps:$4 sm:$0xff]  }
 0x12f   : > { %2699 = vmatpush1.bf16.msra.mxu0 %v8815_v22  ;;  %2785 = vmatpush1.bf16.msra.mxu1 %v8818_v23  ;;  %v8902_v22 = vld [vmem:[%s11895_s2 + $0xaa4] ss:$16 sps:$4 sm:$0xff]   ;;  %v8905_v23 = vld [vmem:[%s11895_s2 + $0xaac] ss:$16 sps:$4 sm:$0xff]  }
 0x130   : > { %3307 = vmatprep.subr.bf16.mxu0 %v8823_v24  ;;  %3393 = vmatprep.subr.bf16.mxu1 %v8826_v25  ;;  %v8900_v24 = vld [vmem:[%s11895_s2 + $0xaa0] ss:$16 sps:$4 sm:$0xff]   ;;  %v8903_v25 = vld [vmem:[%s11895_s2 + $0xaa8] ss:$16 sps:$4 sm:$0xff]  }
 0x136   : > { %7457 = vmatmul.mubr.msk.bf16.vlgmr.msra.gmra.mrb[12].mxu0 %vm670_vm0, %v2287_v30  ;;  %7458 = vmatmul.mubr.msk.bf16.vlgmr.msra.gmra.mrb[12].mxu1 %vm670_vm0, %v2287_v30  ;;  %v8909_v30 = vld [vmem:[%s11895_s2 + $0xac8] ss:$16 sps:$4 sm:$0xff]  }
 0x137   : > { %3308 = vmatpush1.bf16.msra.mxu0 %v8821_v31  ;;  %3394 = vmatpush1.bf16.msra.mxu1 %v8824_v46  ;;  %v8914_v31 = vld [vmem:[%s11895_s2 + $0xae4] ss:$16 sps:$4 sm:$0xff]   ;;  %v8917_v46 = vld [vmem:[%s11895_s2 + $0xaec] ss:$16 sps:$4 sm:$0xff]  }
 0x138   : > { %3309 = vmatprep.subr.bf16.mxu0 %v8830_v26  ;;  %3395 = vmatprep.subr.bf16.mxu1 %v8833_v32  ;;  %v8918_v26 = vld [vmem:[%s9682_s10] ss:$12 sps:$4 sm:$0x3e]  }
 0x139   : > { %3339 = vmatprep.mubr.bf16.mxu0 %v2940_v33  ;;  %3425 = vmatprep.mubr.bf16.mxu1 %v2940_v33  ;;  %v8912_v32 = vld [vmem:[%s11895_s2 + $0xae0] ss:$16 sps:$4 sm:$0xff]   ;;  %v8915_v33 = vld [vmem:[%s11895_s2 + $0xae8] ss:$16 sps:$4 sm:$0xff]  }
 0x13b   : > { %3310 = vmatpush1.bf16.msra.mxu0 %v8828_v34  ;;  %3396 = vmatpush1.bf16.msra.mxu1 %v8831_v36  ;;  %v8923_v34 = vld [vmem:[%s11895_s2 + $0xb04] ss:$16 sps:$4 sm:$0xff]   ;;  %v8926_v36 = vld [vmem:[%s11895_s2 + $0xb0c] ss:$16 sps:$4 sm:$0xff]  }
 0x13c   : > { %3311 = vmatprep.subr.bf16.mxu0 %v8836_v37  ;;  %3397 = vmatprep.subr.bf16.mxu1 %v8839_v38 }
 0x13f   : > { %3312 = vmatpush1.bf16.msra.mxu0 %v8834_v39  ;;  %3398 = vmatpush1.bf16.msra.mxu1 %v8837_v40  ;;  %v2939_v39 = vrot.slane %v8918_v26, 1  ;;  %v8921_v40 = vld [vmem:[%s11895_s2 + $0xb00] ss:$16 sps:$4 sm:$0xff]   ;;  %v8978_v26 = vld [vmem:[%s11895_s2 + $0xe4] ss:$16 sps:$4 sm:$0xff]  }
 0x140   : > { %3313 = vmatprep.subr.bf16.mxu0 %v8842_v41  ;;  %3399 = vmatprep.subr.bf16.mxu1 %v8845_v42  ;;  %v8924_v41 = vld [vmem:[%s11895_s2 + $0xb08] ss:$16 sps:$4 sm:$0xff]  }
 0x143   : > { %3314 = vmatpush1.bf16.msra.mxu0 %v8840_v43  ;;  %3400 = vmatpush1.bf16.msra.mxu1 %v8843_v44 }
 0x144   : > { %3315 = vmatprep.subr.bf16.mxu0 %v8848_v45  ;;  %3401 = vmatprep.subr.bf16.mxu1 %v8851_v47  ;;  %v8929_v47 = vld [vmem:[%s11895_s2 + $0xb24] ss:$16 sps:$4 sm:$0xff]  }
 0x147   : > { %3316 = vmatpush1.bf16.msra.mxu0 %v8846_v49  ;;  %3402 = vmatpush1.bf16.msra.mxu1 %v8849_v50  ;;  %v8932_v49 = vld [vmem:[%s11895_s2 + $0xb2c] ss:$16 sps:$4 sm:$0xff]  }
 0x148   : > { %3317 = vmatprep.subr.bf16.mxu0 %v8854_v51  ;;  %3403 = vmatprep.subr.bf16.mxu1 %v8857_v52  ;;  %v1485_v51 = vld [vmem:[#allocation2 + $0x20] sm:$0x1] }
 0x14b   : > { %3318 = vmatpush1.bf16.msra.mxu0 %v8852_v53  ;;  %3404 = vmatpush1.bf16.msra.mxu1 %v8855_v54  ;;  %v1487_v53 = vld [vmem:[#allocation2 + $0x30] sm:$0x1] }
 0x14c   : > { %3319 = vmatprep.subr.bf16.mxu0 %v8860_v55  ;;  %3405 = vmatprep.subr.bf16.mxu1 %v8863_v56 }
 0x14f   : > { %3320 = vmatpush1.bf16.msra.mxu0 %v8858_v35  ;;  %3406 = vmatpush1.bf16.msra.mxu1 %v8861_v57  ;;  %v1486_v35 = vld [vmem:[#allocation2 + $0x28] sm:$0x1] }
 0x150   : > { %3321 = vmatprep.subr.bf16.mxu0 %v8866_v58  ;;  %3407 = vmatprep.subr.bf16.mxu1 %v8869_v48  ;;  %v1488_v58 = vld [vmem:[#allocation2 + $0x38] sm:$0x1] }
 0x153   : > { %3322 = vmatpush1.bf16.msra.mxu0 %v8864_v59  ;;  %3408 = vmatpush1.bf16.msra.mxu1 %v8867_v60  ;;  %v8935_v60 = vld [vmem:[%s11895_s2 + $0x4] ss:$16 sps:$4 sm:$0xff]  }
 0x154   : > { %3323 = vmatprep.subr.bf16.mxu0 %v8872_v61  ;;  %3409 = vmatprep.subr.bf16.mxu1 %v8875_v62  ;;  %v8938_v61 = vld [vmem:[%s11895_s2 + $0xc] ss:$16 sps:$4 sm:$0xff]   ;;  %v8939_v62 = vld [vmem:[%s9682_s10 + $0x8] ss:$12 sps:$4 sm:$0x3e]  }
 0x157   : > { %3324 = vmatpush1.bf16.msra.mxu0 %v8870_v63  ;;  %3410 = vmatpush1.bf16.msra.mxu1 %v8873_v0  ;;  %v8933_v63 = vld [vmem:[%s11895_s2] ss:$16 sps:$4 sm:$0xff]   ;;  %v2941_v0 = vrot.slane %v8939_v62, 1 }
 0x158   : > { %3325 = vmatprep.subr.bf16.mxu0 %v8878_v1  ;;  %3411 = vmatprep.subr.bf16.mxu1 %v8881_v2  ;;  %v8936_v1 = vld [vmem:[%s11895_s2 + $0x8] ss:$16 sps:$4 sm:$0xff]   ;;  %v8942_v2 = vld [vmem:[%s11895_s2 + $0x24] ss:$16 sps:$4 sm:$0xff]   ;;  %v9018_v62 = vld [vmem:[%s11895_s2 + $0x1c0] ss:$16 sps:$4 sm:$0xff]  }
 0x15b   : > { %3326 = vmatpush1.bf16.msra.mxu0 %v8876_v3  ;;  %3412 = vmatpush1.bf16.msra.mxu1 %v8879_v4  ;;  %v8945_v3 = vld [vmem:[%s11895_s2 + $0x2c] ss:$16 sps:$4 sm:$0xff]   ;;  %v9032_v4 = vld [vmem:[%s9838_s19 + $0x4] ss:$12 sps:$4 sm:$0x1f]  }
 0x15c   : > { %3327 = vmatprep.subr.bf16.mxu0 %v8884_v5  ;;  %3413 = vmatprep.subr.bf16.mxu1 %v8887_v6  ;;  %v8940_v5 = vld [vmem:[%s11895_s2 + $0x20] ss:$16 sps:$4 sm:$0xff]   ;;  %v8943_v6 = vld [vmem:[%s11895_s2 + $0x28] ss:$16 sps:$4 sm:$0xff]  }
 0x15f   : > { %3328 = vmatpush1.bf16.msra.mxu0 %v8882_v11  ;;  %3414 = vmatpush1.bf16.msra.mxu1 %v8885_v12  ;;  %v8948_v11 = vld [vmem:[%s11895_s2 + $0x44] ss:$16 sps:$4 sm:$0xff]   ;;  %v8951_v12 = vld [vmem:[%s11895_s2 + $0x4c] ss:$16 sps:$4 sm:$0xff]  }
 0x160   : > { %3329 = vmatprep.subr.bf16.mxu0 %v8890_v13  ;;  %3415 = vmatprep.subr.bf16.mxu1 %v8893_v15  ;;  %v8946_v13 = vld [vmem:[%s11895_s2 + $0x40] ss:$16 sps:$4 sm:$0xff]   ;;  %v8949_v15 = vld [vmem:[%s11895_s2 + $0x48] ss:$16 sps:$4 sm:$0xff]  }
 0x163   : > { %3330 = vmatpush1.bf16.msra.mxu0 %v8888_v16  ;;  %3416 = vmatpush1.bf16.msra.mxu1 %v8891_v17  ;;  %v8954_v16 = vld [vmem:[%s11895_s2 + $0x64] ss:$16 sps:$4 sm:$0xff]   ;;  %v8957_v17 = vld [vmem:[%s11895_s2 + $0x6c] ss:$16 sps:$4 sm:$0xff]  }
 0x164   : > { %3331 = vmatprep.subr.bf16.mxu0 %v8896_v18  ;;  %3417 = vmatprep.subr.bf16.mxu1 %v8899_v19  ;;  %v8952_v18 = vld [vmem:[%s11895_s2 + $0x60] ss:$16 sps:$4 sm:$0xff]   ;;  %v8955_v19 = vld [vmem:[%s11895_s2 + $0x68] ss:$16 sps:$4 sm:$0xff]  }
 0x167   : > { %3332 = vmatpush1.bf16.msra.mxu0 %v8894_v20  ;;  %3418 = vmatpush1.bf16.msra.mxu1 %v8897_v21  ;;  %v8960_v20 = vld [vmem:[%s11895_s2 + $0x84] ss:$16 sps:$4 sm:$0xff]   ;;  %v8963_v21 = vld [vmem:[%s11895_s2 + $0x8c] ss:$16 sps:$4 sm:$0xff]  }
 0x168   : > { %3333 = vmatprep.subr.bf16.mxu0 %v8902_v22  ;;  %3419 = vmatprep.subr.bf16.mxu1 %v8905_v23  ;;  %v8958_v22 = vld [vmem:[%s11895_s2 + $0x80] ss:$16 sps:$4 sm:$0xff]   ;;  %v8961_v23 = vld [vmem:[%s11895_s2 + $0x88] ss:$16 sps:$4 sm:$0xff]  }
 0x16b   : > { %3334 = vmatpush1.bf16.msra.mxu0 %v8900_v24  ;;  %3420 = vmatpush1.bf16.msra.mxu1 %v8903_v25  ;;  %v8966_v24 = vld [vmem:[%s11895_s2 + $0xa4] ss:$16 sps:$4 sm:$0xff]   ;;  %v8969_v25 = vld [vmem:[%s11895_s2 + $0xac] ss:$16 sps:$4 sm:$0xff]  }
 0x16c   : > { %3335 = vmatprep.subr.bf16.mxu0 %v8908_v27  ;;  %3421 = vmatprep.subr.bf16.mxu1 %v8911_v28  ;;  %v8964_v27 = vld [vmem:[%s11895_s2 + $0xa0] ss:$16 sps:$4 sm:$0xff]   ;;  %v8967_v28 = vld [vmem:[%s11895_s2 + $0xa8] ss:$16 sps:$4 sm:$0xff]  }
 0x16f   : > { %3336 = vmatpush1.bf16.msra.mxu0 %v8906_v29  ;;  %3422 = vmatpush1.bf16.msra.mxu1 %v8909_v30  ;;  %v8972_v29 = vld [vmem:[%s11895_s2 + $0xc4] ss:$16 sps:$4 sm:$0xff]   ;;  %v8975_v30 = vld [vmem:[%s11895_s2 + $0xcc] ss:$16 sps:$4 sm:$0xff]  }
 0x170   : > { %3337 = vmatprep.subr.bf16.mxu0 %v8914_v31  ;;  %3423 = vmatprep.subr.bf16.mxu1 %v8917_v46  ;;  %v8970_v31 = vld [vmem:[%s11895_s2 + $0xc0] ss:$16 sps:$4 sm:$0xff]   ;;  %v8973_v46 = vld [vmem:[%s11895_s2 + $0xc8] ss:$16 sps:$4 sm:$0xff]  }
 0x171   : > { %v1386_v37 = vpop.f32.mrb[4].mxu0  ;;  %v1472_v38 = vpop.f32.mrb[4].mxu1 }
 0x172   : > { %v10688_v42 = vadd.f32 %v1386_v37, %v10451_v7  ;;  %v10691_v43 = vadd.f32 %v1472_v38, %v10453_v8  ;;  %v1388_v44 = vpop.f32.mrb[5].mxu0  ;;  %v1474_v45 = vpop.f32.mrb[5].mxu1  ;;  %v8987_v37 = vld [vmem:[%s11895_s2 + $0x10c] ss:$16 sps:$4 sm:$0xff]   ;;  %v8982_v38 = vld [vmem:[%s11895_s2 + $0x100] ss:$16 sps:$4 sm:$0xff]  }
 0x173   : > { %3338 = vmatpush1.bf16.msra.mxu0 %v8912_v32  ;;  %3424 = vmatpush1.bf16.msra.mxu1 %v8915_v33  ;;  %v10700_v50 = vadd.f32 %v1388_v44, %v10455_v9  ;;  %v10703_v7 = vadd.f32 %v1474_v45, %v10457_v10  ;;  %v1390_v8 = vpop.f32.mrb[6].mxu0  ;;  %v1476_v52 = vpop.f32.mrb[6].mxu1  ;;  %v8927_v9 = vld [vmem:[%s11895_s2 + $0xb20] ss:$16 sps:$4 sm:$0xff]   ;;  %v8930_v10 = vld [vmem:[%s11895_s2 + $0xb28] ss:$16 sps:$4 sm:$0xff]  }
 0x174   : > { %v1493_v54 = vadd.f32 %v1485_v51, %v1390_v8  ;;  %v1495_v55 = vadd.f32 %v1487_v53, %v1476_v52  ;;  %3350 = vmatprep.subr.bf16.mxu0 %v8923_v34  ;;  %3436 = vmatprep.subr.bf16.mxu1 %v8926_v36  ;;  %v1392_v56 = vpop.f32.mrb[7].mxu0  ;;  %v1478_v57 = vpop.f32.mrb[7].mxu1  ;;  %v8981_v32 = vld [vmem:[%s11895_s2 + $0xec] ss:$16 sps:$4 sm:$0xff]   ;;  %v8976_v33 = vld [vmem:[%s11895_s2 + $0xe0] ss:$16 sps:$4 sm:$0xff]  }
 0x175   : > { %v1494_v48 = vadd.f32 %v1486_v35, %v1392_v56  ;;  %v1496_v59 = vadd.f32 %v1488_v58, %v1478_v57  ;;  %v8979_v34 = vld [vmem:[%s11895_s2 + $0xe8] ss:$16 sps:$4 sm:$0xff]   ;;  %v8984_v36 = vld [vmem:[%s11895_s2 + $0x104] ss:$16 sps:$4 sm:$0xff]   ;;  %v8988_v44 = vld [vmem:[%s11895_s2 + $0x120] ss:$16 sps:$4 sm:$0xff]  }
 0x176   : > { %1501 = vst [vmem:[#allocation2 + $0x20] sm:$0x1] %v1493_v54  ;;  %1503 = vst [vmem:[#allocation2 + $0x30] sm:$0x1] %v1495_v55  ;;  %3340 = vmatmul.mubr.bf16.vlgmr.msra.gmra.mrb[16].mxu0 %v2939_v39  ;;  %3426 = vmatmul.mubr.bf16.vlgmr.msra.gmra.mrb[16].mxu1 %v2939_v39  ;;  %v8985_v39 = vld [vmem:[%s11895_s2 + $0x108] ss:$16 sps:$4 sm:$0xff]  }
 0x177   : > { %1502 = vst [vmem:[#allocation2 + $0x28] sm:$0x1] %v1494_v48  ;;  %1504 = vst [vmem:[#allocation2 + $0x38] sm:$0x1] %v1496_v59  ;;  %3351 = vmatpush1.bf16.msra.mxu0 %v8921_v40  ;;  %3437 = vmatpush1.bf16.msra.mxu1 %v8924_v41  ;;  %v8990_v40 = vld [vmem:[%s11895_s2 + $0x124] ss:$16 sps:$4 sm:$0xff]  }
 0x178   : > { %3352 = vmatprep.subr.bf16.mxu0 %v8929_v47  ;;  %3438 = vmatprep.subr.bf16.mxu1 %v8932_v49  ;;  %v8993_v41 = vld [vmem:[%s11895_s2 + $0x12c] ss:$16 sps:$4 sm:$0xff]   ;;  %v8991_v45 = vld [vmem:[%s11895_s2 + $0x128] ss:$16 sps:$4 sm:$0xff]   ;;  %v8996_v47 = vld [vmem:[%s11895_s2 + $0x144] ss:$16 sps:$4 sm:$0xff]  }
 0x179   : > { %3382 = vmatprep.mubr.bf16.mxu0 %v9504_v14  ;;  %3468 = vmatprep.mubr.bf16.mxu1 %v9504_v14  ;;  %v8999_v49 = vld [vmem:[%s11895_s2 + $0x14c] ss:$16 sps:$4 sm:$0xff]   ;;  %v8994_v8 = vld [vmem:[%s11895_s2 + $0x140] ss:$16 sps:$4 sm:$0xff]   ;;  %v8997_v51 = vld [vmem:[%s11895_s2 + $0x148] ss:$16 sps:$4 sm:$0xff]  }
 0x17a   : > { %v9002_v52 = vld [vmem:[%s11895_s2 + $0x164] ss:$16 sps:$4 sm:$0xff]   ;;  %v9005_v53 = vld [vmem:[%s11895_s2 + $0x16c] ss:$16 sps:$4 sm:$0xff]   ;;  %v9000_v54 = vld [vmem:[%s11895_s2 + $0x160] ss:$16 sps:$4 sm:$0xff]  }
 0x17b   : > { %3353 = vmatpush1.bf16.msra.mxu0 %v8927_v9  ;;  %3439 = vmatpush1.bf16.msra.mxu1 %v8930_v10  ;;  %v9003_v55 = vld [vmem:[%s11895_s2 + $0x168] ss:$16 sps:$4 sm:$0xff]   ;;  %v9008_v56 = vld [vmem:[%s11895_s2 + $0x184] ss:$16 sps:$4 sm:$0xff]   ;;  %v9011_v35 = vld [vmem:[%s11895_s2 + $0x18c] ss:$16 sps:$4 sm:$0xff]  }
 0x17c   : > { %3957 = vmatprep.subr.bf16.mxu0 %v8935_v60  ;;  %4043 = vmatprep.subr.bf16.mxu1 %v8938_v61  ;;  %v9006_v57 = vld [vmem:[%s11895_s2 + $0x180] ss:$16 sps:$4 sm:$0xff]   ;;  %v9009_v58 = vld [vmem:[%s11895_s2 + $0x188] ss:$16 sps:$4 sm:$0xff]   ;;  %v9014_v48 = vld [vmem:[%s11895_s2 + $0x1a4] ss:$16 sps:$4 sm:$0xff]  }
 0x17d   : > { %v9017_v59 = vld [vmem:[%s11895_s2 + $0x1ac] ss:$16 sps:$4 sm:$0xff]   ;;  %v9012_v9 = vld [vmem:[%s11895_s2 + $0x1a0] ss:$16 sps:$4 sm:$0xff]   ;;  %v9015_v10 = vld [vmem:[%s11895_s2 + $0x1a8] ss:$16 sps:$4 sm:$0xff]  }
 0x17e   : > { %v9020_v60 = vld [vmem:[%s11895_s2 + $0x1c4] ss:$16 sps:$4 sm:$0xff]   ;;  %v9023_v61 = vld [vmem:[%s11895_s2 + $0x1cc] ss:$16 sps:$4 sm:$0xff]  }
 0x182   : > { %7606 = vmatmul.mubr.msk.bf16.vlgmr.msra.gmra.mrb[16].mxu0 %vm670_vm0, %v2941_v0  ;;  %7607 = vmatmul.mubr.msk.bf16.vlgmr.msra.gmra.mrb[16].mxu1 %vm670_vm0, %v2941_v0  ;;  %v9026_v0 = vld [vmem:[%s11895_s2 + $0x1e4] ss:$16 sps:$4 sm:$0xff]  }
 0x183   : > { %3958 = vmatpush1.bf16.msra.mxu0 %v8933_v63  ;;  %4044 = vmatpush1.bf16.msra.mxu1 %v8936_v1  ;;  %v9021_v63 = vld [vmem:[%s11895_s2 + $0x1c8] ss:$16 sps:$4 sm:$0xff]   ;;  %v9029_v1 = vld [vmem:[%s11895_s2 + $0x1ec] ss:$16 sps:$4 sm:$0xff]  }
 0x184   : > { %3959 = vmatprep.subr.bf16.mxu0 %v8942_v2  ;;  %4045 = vmatprep.subr.bf16.mxu1 %v8945_v3  ;;  %v9024_v2 = vld [vmem:[%s11895_s2 + $0x1e0] ss:$16 sps:$4 sm:$0xff]   ;;  %v9027_v3 = vld [vmem:[%s11895_s2 + $0x1e8] ss:$16 sps:$4 sm:$0xff]  }
 0x185   : > { %3989 = vmatprep.mubr.bf16.mxu0 %v9032_v4  ;;  %4075 = vmatprep.mubr.bf16.mxu1 %v9032_v4  ;;  %v9030_v4 = vld [vmem:[%s9838_s19] ss:$12 sps:$4 sm:$0x1f]  }
 0x187   : > { %3960 = vmatpush1.bf16.msra.mxu0 %v8940_v5  ;;  %4046 = vmatpush1.bf16.msra.mxu1 %v8943_v6  ;;  %v9035_v5 = vld [vmem:[%s11895_s2 + $0x204] ss:$16 sps:$4 sm:$0xff]   ;;  %v9038_v6 = vld [vmem:[%s11895_s2 + $0x20c] ss:$16 sps:$4 sm:$0xff]  }
 0x188   : > { %3961 = vmatprep.subr.bf16.mxu0 %v8948_v11  ;;  %4047 = vmatprep.subr.bf16.mxu1 %v8951_v12 }
 0x18b   : > { %3962 = vmatpush1.bf16.msra.mxu0 %v8946_v13  ;;  %4048 = vmatpush1.bf16.msra.mxu1 %v8949_v15  ;;  %v2157_v13 = vld [vmem:[#allocation2 + $0x20] sm:$0x1]  ;;  %v2159_v15 = vld [vmem:[#allocation2 + $0x30] sm:$0x1] }
 0x18c   : > { %3963 = vmatprep.subr.bf16.mxu0 %v8954_v16  ;;  %4049 = vmatprep.subr.bf16.mxu1 %v8957_v17  ;;  %v9033_v16 = vld [vmem:[%s11895_s2 + $0x200] ss:$16 sps:$4 sm:$0xff]   ;;  %v9036_v17 = vld [vmem:[%s11895_s2 + $0x208] ss:$16 sps:$4 sm:$0xff]  }
 0x18f   : > { %3964 = vmatpush1.bf16.msra.mxu0 %v8952_v18  ;;  %4050 = vmatpush1.bf16.msra.mxu1 %v8955_v19 }
 0x190   : > { %3965 = vmatprep.subr.bf16.mxu0 %v8960_v20  ;;  %4051 = vmatprep.subr.bf16.mxu1 %v8963_v21 }
 0x193   : > { %3966 = vmatpush1.bf16.msra.mxu0 %v8958_v22  ;;  %4052 = vmatpush1.bf16.msra.mxu1 %v8961_v23  ;;  %v9041_v22 = vld [vmem:[%s11895_s2 + $0x224] ss:$16 sps:$4 sm:$0xff]   ;;  %v9044_v23 = vld [vmem:[%s11895_s2 + $0x22c] ss:$16 sps:$4 sm:$0xff]  }
 0x194   : > { %3967 = vmatprep.subr.bf16.mxu0 %v8966_v24  ;;  %4053 = vmatprep.subr.bf16.mxu1 %v8969_v25 }
 0x197   : > { %3968 = vmatpush1.bf16.msra.mxu0 %v8964_v27  ;;  %4054 = vmatpush1.bf16.msra.mxu1 %v8967_v28  ;;  %v2158_v27 = vld [vmem:[#allocation2 + $0x28] sm:$0x1]  ;;  %v2160_v28 = vld [vmem:[#allocation2 + $0x38] sm:$0x1] }
 0x198   : > { %3969 = vmatprep.subr.bf16.mxu0 %v8972_v29  ;;  %4055 = vmatprep.subr.bf16.mxu1 %v8975_v30 }
 0x19b   : > { %3970 = vmatpush1.bf16.msra.mxu0 %v8970_v31  ;;  %4056 = vmatpush1.bf16.msra.mxu1 %v8973_v46 }
 0x19c   : > { %3971 = vmatprep.subr.bf16.mxu0 %v8978_v26  ;;  %4057 = vmatprep.subr.bf16.mxu1 %v8981_v32  ;;  %v9144_v26 = vld [vmem:[%s9682_s10 + $0x4] ss:$12 sps:$4 sm:$0x1f]  }
 0x19f   : > { %3972 = vmatpush1.bf16.msra.mxu0 %v8976_v33  ;;  %4058 = vmatpush1.bf16.msra.mxu1 %v8979_v34  ;;  %v9047_v34 = vld [vmem:[%s11895_s2 + $0x244] ss:$16 sps:$4 sm:$0xff]  }
 0x1a0   : > { %3973 = vmatprep.subr.bf16.mxu0 %v8984_v36  ;;  %4059 = vmatprep.subr.bf16.mxu1 %v8987_v37  ;;  %v9050_v36 = vld [vmem:[%s11895_s2 + $0x24c] ss:$16 sps:$4 sm:$0xff]   ;;  %v4236_v37 = vshll.u32 %v9144_v26, 16 }
 0x1a3   : > { %3974 = vmatpush1.bf16.msra.mxu0 %v8982_v38  ;;  %4060 = vmatpush1.bf16.msra.mxu1 %v8985_v39  ;;  %v4234_v38 = vshrl.u32 %v9144_v26, 16  ;;  %v4238_v39 = vrot.slane %v4236_v37, 1  ;;  %v9123_v26 = vld [vmem:[%s11895_s2 + $0x3cc] ss:$16 sps:$4 sm:$0xff]   ;;  %v9127_v37 = vld [vmem:[%s11895_s2 + $0x3e8] ss:$16 sps:$4 sm:$0xff]  }
 0x1a4   : > { %3975 = vmatprep.subr.bf16.mxu0 %v8990_v40  ;;  %4061 = vmatprep.subr.bf16.mxu1 %v8993_v41  ;;  %v9051_v40 = vld [vmem:[%s9838_s19 + $0x8] ss:$12 sps:$4 sm:$0x1f]   ;;  %v9045_v41 = vld [vmem:[%s11895_s2 + $0x240] ss:$16 sps:$4 sm:$0xff]  }
 0x1a7   : > { %3976 = vmatpush1.bf16.msra.mxu0 %v8988_v44  ;;  %4062 = vmatpush1.bf16.msra.mxu1 %v8991_v45  ;;  %v9048_v44 = vld [vmem:[%s11895_s2 + $0x248] ss:$16 sps:$4 sm:$0xff]   ;;  %v9054_v45 = vld [vmem:[%s11895_s2 + $0x264] ss:$16 sps:$4 sm:$0xff]  }
 0x1a8   : > { %3977 = vmatprep.subr.bf16.mxu0 %v8996_v47  ;;  %4063 = vmatprep.subr.bf16.mxu1 %v8999_v49  ;;  %v9057_v47 = vld [vmem:[%s11895_s2 + $0x26c] ss:$16 sps:$4 sm:$0xff]   ;;  %v4239_v49 = vor.u32 %v4238_v39, %v4234_v38  ;;  %v9132_v38 = vld [vmem:[%s11895_s2 + $0x404] ss:$16 sps:$4 sm:$0xff]  }
 0x1a9   : > { %v9135_v39 = vld [vmem:[%s11895_s2 + $0x40c] ss:$16 sps:$4 sm:$0xff]  }
 0x1ab   : > { %3978 = vmatpush1.bf16.msra.mxu0 %v8994_v8  ;;  %4064 = vmatpush1.bf16.msra.mxu1 %v8997_v51  ;;  %v9052_v8 = vld [vmem:[%s11895_s2 + $0x260] ss:$16 sps:$4 sm:$0xff]   ;;  %v9055_v51 = vld [vmem:[%s11895_s2 + $0x268] ss:$16 sps:$4 sm:$0xff]  }
 0x1ac   : > { %3979 = vmatprep.subr.bf16.mxu0 %v9002_v52  ;;  %4065 = vmatprep.subr.bf16.mxu1 %v9005_v53  ;;  %v9060_v52 = vld [vmem:[%s11895_s2 + $0x284] ss:$16 sps:$4 sm:$0xff]   ;;  %v9063_v53 = vld [vmem:[%s11895_s2 + $0x28c] ss:$16 sps:$4 sm:$0xff]  }
 0x1af   : > { %3980 = vmatpush1.bf16.msra.mxu0 %v9000_v54  ;;  %4066 = vmatpush1.bf16.msra.mxu1 %v9003_v55  ;;  %v9058_v54 = vld [vmem:[%s11895_s2 + $0x280] ss:$16 sps:$4 sm:$0xff]   ;;  %v9061_v55 = vld [vmem:[%s11895_s2 + $0x288] ss:$16 sps:$4 sm:$0xff]  }
 0x1b0   : > { %3981 = vmatprep.subr.bf16.mxu0 %v9008_v56  ;;  %4067 = vmatprep.subr.bf16.mxu1 %v9011_v35  ;;  %v9066_v56 = vld [vmem:[%s11895_s2 + $0x2a4] ss:$16 sps:$4 sm:$0xff]   ;;  %v9069_v35 = vld [vmem:[%s11895_s2 + $0x2ac] ss:$16 sps:$4 sm:$0xff]  }
 0x1b3   : > { %3982 = vmatpush1.bf16.msra.mxu0 %v9006_v57  ;;  %4068 = vmatpush1.bf16.msra.mxu1 %v9009_v58  ;;  %v9064_v57 = vld [vmem:[%s11895_s2 + $0x2a0] ss:$16 sps:$4 sm:$0xff]   ;;  %v9067_v58 = vld [vmem:[%s11895_s2 + $0x2a8] ss:$16 sps:$4 sm:$0xff]  }
 0x1b4   : > { %3983 = vmatprep.subr.bf16.mxu0 %v9014_v48  ;;  %4069 = vmatprep.subr.bf16.mxu1 %v9017_v59  ;;  %v9072_v48 = vld [vmem:[%s11895_s2 + $0x2c4] ss:$16 sps:$4 sm:$0xff]   ;;  %v9075_v59 = vld [vmem:[%s11895_s2 + $0x2cc] ss:$16 sps:$4 sm:$0xff]  }
 0x1b7   : > { %3984 = vmatpush1.bf16.msra.mxu0 %v9012_v9  ;;  %4070 = vmatpush1.bf16.msra.mxu1 %v9015_v10  ;;  %v9070_v9 = vld [vmem:[%s11895_s2 + $0x2c0] ss:$16 sps:$4 sm:$0xff]   ;;  %v9073_v10 = vld [vmem:[%s11895_s2 + $0x2c8] ss:$16 sps:$4 sm:$0xff]  }
 0x1b8   : > { %3985 = vmatprep.subr.bf16.mxu0 %v9020_v60  ;;  %4071 = vmatprep.subr.bf16.mxu1 %v9023_v61  ;;  %v9078_v60 = vld [vmem:[%s11895_s2 + $0x2e4] ss:$16 sps:$4 sm:$0xff]   ;;  %v9081_v61 = vld [vmem:[%s11895_s2 + $0x2ec] ss:$16 sps:$4 sm:$0xff]  }
 0x1bb   : > { %3986 = vmatpush1.bf16.msra.mxu0 %v9018_v62  ;;  %4072 = vmatpush1.bf16.msra.mxu1 %v9021_v63  ;;  %v9076_v62 = vld [vmem:[%s11895_s2 + $0x2e0] ss:$16 sps:$4 sm:$0xff]   ;;  %v9079_v63 = vld [vmem:[%s11895_s2 + $0x2e8] ss:$16 sps:$4 sm:$0xff]  }
 0x1bc   : > { %3987 = vmatprep.subr.bf16.mxu0 %v9026_v0  ;;  %4073 = vmatprep.subr.bf16.mxu1 %v9029_v1  ;;  %v9084_v0 = vld [vmem:[%s11895_s2 + $0x304] ss:$16 sps:$4 sm:$0xff]   ;;  %v9087_v1 = vld [vmem:[%s11895_s2 + $0x30c] ss:$16 sps:$4 sm:$0xff]  }
 0x1bd   : > { %v2058_v11 = vpop.f32.mrb[8].mxu0  ;;  %v2144_v12 = vpop.f32.mrb[8].mxu1 }
 0x1be   : > { %v10923_v18 = vadd.f32 %v2058_v11, %v10688_v42  ;;  %v10926_v19 = vadd.f32 %v2144_v12, %v10691_v43  ;;  %v2060_v20 = vpop.f32.mrb[9].mxu0  ;;  %v2146_v21 = vpop.f32.mrb[9].mxu1  ;;  %v9091_v11 = vld [vmem:[%s11895_s2 + $0x328] ss:$16 sps:$4 sm:$0xff]   ;;  %v9096_v12 = vld [vmem:[%s11895_s2 + $0x344] ss:$16 sps:$4 sm:$0xff]  }
 0x1bf   : > { %3988 = vmatpush1.bf16.msra.mxu0 %v9024_v2  ;;  %4074 = vmatpush1.bf16.msra.mxu1 %v9027_v3  ;;  %v10935_v24 = vadd.f32 %v2060_v20, %v10700_v50  ;;  %v10938_v42 = vadd.f32 %v2146_v21, %v10703_v7  ;;  %v2062_v43 = vpop.f32.mrb[10].mxu0  ;;  %v2148_v25 = vpop.f32.mrb[10].mxu1  ;;  %v9039_v50 = vld [vmem:[%s11895_s2 + $0x220] ss:$16 sps:$4 sm:$0xff]   ;;  %v9042_v7 = vld [vmem:[%s11895_s2 + $0x228] ss:$16 sps:$4 sm:$0xff]  }
 0x1c0   : > { %v2165_v29 = vadd.f32 %v2157_v13, %v2062_v43  ;;  %v2167_v30 = vadd.f32 %v2159_v15, %v2148_v25  ;;  %4000 = vmatprep.subr.bf16.mxu0 %v9035_v5  ;;  %4086 = vmatprep.subr.bf16.mxu1 %v9038_v6  ;;  %v2064_v31 = vpop.f32.mrb[11].mxu0  ;;  %v2150_v46 = vpop.f32.mrb[11].mxu1  ;;  %v9082_v2 = vld [vmem:[%s11895_s2 + $0x300] ss:$16 sps:$4 sm:$0xff]   ;;  %v9085_v3 = vld [vmem:[%s11895_s2 + $0x308] ss:$16 sps:$4 sm:$0xff]  }
 0x1c1   : > { %v2166_v32 = vadd.f32 %v2158_v27, %v2064_v31  ;;  %v2168_v33 = vadd.f32 %v2160_v28, %v2150_v46  ;;  %v9093_v5 = vld [vmem:[%s11895_s2 + $0x32c] ss:$16 sps:$4 sm:$0xff]   ;;  %v9088_v6 = vld [vmem:[%s11895_s2 + $0x320] ss:$16 sps:$4 sm:$0xff]   ;;  %v9109_v27 = vld [vmem:[%s11895_s2 + $0x388] ss:$16 sps:$4 sm:$0xff]  }
 0x1c2   : > { %2173 = vst [vmem:[#allocation2 + $0x20] sm:$0x1] %v2165_v29  ;;  %2175 = vst [vmem:[#allocation2 + $0x30] sm:$0x1] %v2167_v30  ;;  %3990 = vmatmul.mubr.bf16.vlgmr.msra.gmra.mrb[20].mxu0 %v9030_v4  ;;  %4076 = vmatmul.mubr.bf16.vlgmr.msra.gmra.mrb[20].mxu1 %v9030_v4  ;;  %v9090_v4 = vld [vmem:[%s11895_s2 + $0x324] ss:$16 sps:$4 sm:$0xff]  }
 0x1c3   : > { %2174 = vst [vmem:[#allocation2 + $0x28] sm:$0x1] %v2166_v32  ;;  %2176 = vst [vmem:[#allocation2 + $0x38] sm:$0x1] %v2168_v33  ;;  %4001 = vmatpush1.bf16.msra.mxu0 %v9033_v16  ;;  %4087 = vmatpush1.bf16.msra.mxu1 %v9036_v17  ;;  %v9099_v13 = vld [vmem:[%s11895_s2 + $0x34c] ss:$16 sps:$4 sm:$0xff]  }
 0x1c4   : > { %4002 = vmatprep.subr.bf16.mxu0 %v9041_v22  ;;  %4088 = vmatprep.subr.bf16.mxu1 %v9044_v23  ;;  %v9094_v15 = vld [vmem:[%s11895_s2 + $0x340] ss:$16 sps:$4 sm:$0xff]   ;;  %v9097_v16 = vld [vmem:[%s11895_s2 + $0x348] ss:$16 sps:$4 sm:$0xff]   ;;  %v9102_v17 = vld [vmem:[%s11895_s2 + $0x364] ss:$16 sps:$4 sm:$0xff]  }
 0x1c5   : > { %4032 = vmatprep.mubr.bf16.mxu0 %v9504_v14  ;;  %4118 = vmatprep.mubr.bf16.mxu1 %v9504_v14  ;;  %v9105_v20 = vld [vmem:[%s11895_s2 + $0x36c] ss:$16 sps:$4 sm:$0xff]   ;;  %v9100_v21 = vld [vmem:[%s11895_s2 + $0x360] ss:$16 sps:$4 sm:$0xff]   ;;  %v9103_v22 = vld [vmem:[%s11895_s2 + $0x368] ss:$16 sps:$4 sm:$0xff]  }
 0x1c6   : > { %v9108_v23 = vld [vmem:[%s11895_s2 + $0x384] ss:$16 sps:$4 sm:$0xff]   ;;  %v9111_v43 = vld [vmem:[%s11895_s2 + $0x38c] ss:$16 sps:$4 sm:$0xff]   ;;  %v9106_v25 = vld [vmem:[%s11895_s2 + $0x380] ss:$16 sps:$4 sm:$0xff]  }
 0x1c7   : > { %4003 = vmatpush1.bf16.msra.mxu0 %v9039_v50  ;;  %4089 = vmatpush1.bf16.msra.mxu1 %v9042_v7  ;;  %v9114_v28 = vld [vmem:[%s11895_s2 + $0x3a4] ss:$16 sps:$4 sm:$0xff]   ;;  %v9117_v29 = vld [vmem:[%s11895_s2 + $0x3ac] ss:$16 sps:$4 sm:$0xff]   ;;  %v9112_v30 = vld [vmem:[%s11895_s2 + $0x3a0] ss:$16 sps:$4 sm:$0xff]  }
 0x1c8   : > { %4612 = vmatprep.subr.bf16.mxu0 %v9047_v34  ;;  %4698 = vmatprep.subr.bf16.mxu1 %v9050_v36  ;;  %v9115_v31 = vld [vmem:[%s11895_s2 + $0x3a8] ss:$16 sps:$4 sm:$0xff]   ;;  %v9120_v46 = vld [vmem:[%s11895_s2 + $0x3c4] ss:$16 sps:$4 sm:$0xff]   ;;  %v9118_v32 = vld [vmem:[%s11895_s2 + $0x3c0] ss:$16 sps:$4 sm:$0xff]  }
 0x1c9   : > { %v9121_v33 = vld [vmem:[%s11895_s2 + $0x3c8] ss:$16 sps:$4 sm:$0xff]   ;;  %v9126_v50 = vld [vmem:[%s11895_s2 + $0x3e4] ss:$16 sps:$4 sm:$0xff]   ;;  %v9129_v7 = vld [vmem:[%s11895_s2 + $0x3ec] ss:$16 sps:$4 sm:$0xff]  }
 0x1ca   : > { %v9142_v34 = vld [vmem:[%s9682_s10] ss:$12 sps:$4 sm:$0x1f]  }
 0x1cb   : > { %v9124_v36 = vld [vmem:[%s11895_s2 + $0x3e0] ss:$16 sps:$4 sm:$0xff]  }
 0x1ce   : > { %7683 = vmatmul.mubr.msk.bf16.vlgmr.msra.gmra.mrb[20].mxu0 %vm670_vm0, %v9051_v40  ;;  %7684 = vmatmul.mubr.msk.bf16.vlgmr.msra.gmra.mrb[20].mxu1 %vm670_vm0, %v9051_v40  ;;  %v4229_v40 = vshll.u32 %v9142_v34, 16 }
 0x1cf   : > { %4613 = vmatpush1.bf16.msra.mxu0 %v9045_v41  ;;  %4699 = vmatpush1.bf16.msra.mxu1 %v9048_v44  ;;  %v9130_v41 = vld [vmem:[%s11895_s2 + $0x400] ss:$16 sps:$4 sm:$0xff]   ;;  %v9133_v44 = vld [vmem:[%s11895_s2 + $0x408] ss:$16 sps:$4 sm:$0xff]  }
 0x1d0   : > { %4614 = vmatprep.subr.bf16.mxu0 %v9054_v45  ;;  %4700 = vmatprep.subr.bf16.mxu1 %v9057_v47  ;;  %v9138_v45 = vld [vmem:[%s11895_s2 + $0x424] ss:$16 sps:$4 sm:$0xff]   ;;  %v9141_v47 = vld [vmem:[%s11895_s2 + $0x42c] ss:$16 sps:$4 sm:$0xff]  }
 0x1d1   : > { %4644 = vmatprep.mubr.bf16.mxu0 %v4239_v49  ;;  %4730 = vmatprep.mubr.bf16.mxu1 %v4239_v49  ;;  %v4227_v49 = vshrl.u32 %v9142_v34, 16  ;;  %v9170_v34 = vld [vmem:[%s11895_s2 + $0x4c0] ss:$16 sps:$4 sm:$0xff]  }
 0x1d3   : > { %4615 = vmatpush1.bf16.msra.mxu0 %v9052_v8  ;;  %4701 = vmatpush1.bf16.msra.mxu1 %v9055_v51  ;;  %v4231_v8 = vrot.slane %v4229_v40, 1  ;;  %v9136_v51 = vld [vmem:[%s11895_s2 + $0x420] ss:$16 sps:$4 sm:$0xff]   ;;  %v9179_v40 = vld [vmem:[%s11895_s2 + $0x4e8] ss:$16 sps:$4 sm:$0xff]  }
 0x1d4   : > { %4616 = vmatprep.subr.bf16.mxu0 %v9060_v52  ;;  %4702 = vmatprep.subr.bf16.mxu1 %v9063_v53  ;;  %v9139_v52 = vld [vmem:[%s11895_s2 + $0x428] ss:$16 sps:$4 sm:$0xff]   ;;  %v9147_v53 = vld [vmem:[%s11895_s2 + $0x444] ss:$16 sps:$4 sm:$0xff]  }
 0x1d7   : > { %4617 = vmatpush1.bf16.msra.mxu0 %v9058_v54  ;;  %4703 = vmatpush1.bf16.msra.mxu1 %v9061_v55  ;;  %v9150_v54 = vld [vmem:[%s11895_s2 + $0x44c] ss:$16 sps:$4 sm:$0xff]  }
 0x1d8   : > { %4618 = vmatprep.subr.bf16.mxu0 %v9066_v56  ;;  %4704 = vmatprep.subr.bf16.mxu1 %v9069_v35  ;;  %v9145_v35 = vld [vmem:[%s11895_s2 + $0x440] ss:$16 sps:$4 sm:$0xff]  }
 0x1db   : > { %4619 = vmatpush1.bf16.msra.mxu0 %v9064_v57  ;;  %4705 = vmatpush1.bf16.msra.mxu1 %v9067_v58  ;;  %v9148_v57 = vld [vmem:[%s11895_s2 + $0x448] ss:$16 sps:$4 sm:$0xff]  }
 0x1dc   : > { %4620 = vmatprep.subr.bf16.mxu0 %v9072_v48  ;;  %4706 = vmatprep.subr.bf16.mxu1 %v9075_v59 }
 0x1df   : > { %4621 = vmatpush1.bf16.msra.mxu0 %v9070_v9  ;;  %4707 = vmatpush1.bf16.msra.mxu1 %v9073_v10  ;;  %v4232_v10 = vor.u32 %v4231_v8, %v4227_v49  ;;  %v9190_v49 = vld [vmem:[%s11895_s2 + $0x524] ss:$16 sps:$4 sm:$0xff]   ;;  %v9193_v8 = vld [vmem:[%s11895_s2 + $0x52c] ss:$16 sps:$4 sm:$0xff]  }
 0x1e0   : > { %4622 = vmatprep.subr.bf16.mxu0 %v9078_v60  ;;  %4708 = vmatprep.subr.bf16.mxu1 %v9081_v61  ;;  %v9153_v60 = vld [vmem:[%s11895_s2 + $0x464] ss:$16 sps:$4 sm:$0xff]   ;;  %v9156_v61 = vld [vmem:[%s11895_s2 + $0x46c] ss:$16 sps:$4 sm:$0xff]  }
 0x1e3   : > { %4623 = vmatpush1.bf16.msra.mxu0 %v9076_v62  ;;  %4709 = vmatpush1.bf16.msra.mxu1 %v9079_v63  ;;  %v9163_v62 = vld [vmem:[%s9682_s10 + $0x8] ss:$12 sps:$4 sm:$0x1f]  }
 0x1e4   : > { %4624 = vmatprep.subr.bf16.mxu0 %v9084_v0  ;;  %4710 = vmatprep.subr.bf16.mxu1 %v9087_v1  ;;  %v2829_v0 = vld [vmem:[#allocation2 + $0x20] sm:$0x1] }
 0x1e7   : > { %4625 = vmatpush1.bf16.msra.mxu0 %v9082_v2  ;;  %4711 = vmatpush1.bf16.msra.mxu1 %v9085_v3  ;;  %v2831_v2 = vld [vmem:[#allocation2 + $0x30] sm:$0x1] }
 0x1e8   : > { %4626 = vmatprep.subr.bf16.mxu0 %v9090_v4  ;;  %4712 = vmatprep.subr.bf16.mxu1 %v9093_v5 }
 0x1eb   : > { %4627 = vmatpush1.bf16.msra.mxu0 %v9088_v6  ;;  %4713 = vmatpush1.bf16.msra.mxu1 %v9091_v11  ;;  %v2830_v6 = vld [vmem:[#allocation2 + $0x28] sm:$0x1] }
 0x1ec   : > { %4628 = vmatprep.subr.bf16.mxu0 %v9096_v12  ;;  %4714 = vmatprep.subr.bf16.mxu1 %v9099_v13  ;;  %v2832_v12 = vld [vmem:[#allocation2 + $0x38] sm:$0x1] }
 0x1ef   : > { %4629 = vmatpush1.bf16.msra.mxu0 %v9094_v15  ;;  %4715 = vmatpush1.bf16.msra.mxu1 %v9097_v16  ;;  %v9151_v16 = vld [vmem:[%s11895_s2 + $0x460] ss:$16 sps:$4 sm:$0xff]  }
 0x1f0   : > { %4630 = vmatprep.subr.bf16.mxu0 %v9102_v17  ;;  %4716 = vmatprep.subr.bf16.mxu1 %v9105_v20  ;;  %v9154_v17 = vld [vmem:[%s11895_s2 + $0x468] ss:$16 sps:$4 sm:$0xff]   ;;  %v9159_v20 = vld [vmem:[%s11895_s2 + $0x484] ss:$16 sps:$4 sm:$0xff]  }
 0x1f3   : > { %4631 = vmatpush1.bf16.msra.mxu0 %v9100_v21  ;;  %4717 = vmatpush1.bf16.msra.mxu1 %v9103_v22  ;;  %v9162_v21 = vld [vmem:[%s11895_s2 + $0x48c] ss:$16 sps:$4 sm:$0xff]  }
 0x1f4   : > { %4632 = vmatprep.subr.bf16.mxu0 %v9108_v23  ;;  %4718 = vmatprep.subr.bf16.mxu1 %v9111_v43  ;;  %v4241_v23 = vshrl.u32 %v9163_v62, 16 }
 0x1f7   : > { %4633 = vmatpush1.bf16.msra.mxu0 %v9106_v25  ;;  %4719 = vmatpush1.bf16.msra.mxu1 %v9109_v27 }
 0x1f8   : > { %4634 = vmatprep.subr.bf16.mxu0 %v9114_v28  ;;  %4720 = vmatprep.subr.bf16.mxu1 %v9117_v29  ;;  %v9157_v29 = vld [vmem:[%s11895_s2 + $0x480] ss:$16 sps:$4 sm:$0xff]  }
 0x1fb   : > { %4635 = vmatpush1.bf16.msra.mxu0 %v9112_v30  ;;  %4721 = vmatpush1.bf16.msra.mxu1 %v9115_v31  ;;  %v9160_v30 = vld [vmem:[%s11895_s2 + $0x488] ss:$16 sps:$4 sm:$0xff]   ;;  %v9166_v31 = vld [vmem:[%s11895_s2 + $0x4a4] ss:$16 sps:$4 sm:$0xff]  }
 0x1fc   : > { %4636 = vmatprep.subr.bf16.mxu0 %v9120_v46  ;;  %4722 = vmatprep.subr.bf16.mxu1 %v9123_v26  ;;  %v9169_v46 = vld [vmem:[%s11895_s2 + $0x4ac] ss:$16 sps:$4 sm:$0xff]  }
 0x1ff   : > { %4637 = vmatpush1.bf16.msra.mxu0 %v9118_v32  ;;  %4723 = vmatpush1.bf16.msra.mxu1 %v9121_v33  ;;  %v9164_v32 = vld [vmem:[%s11895_s2 + $0x4a0] ss:$16 sps:$4 sm:$0xff]   ;;  %v9167_v33 = vld [vmem:[%s11895_s2 + $0x4a8] ss:$16 sps:$4 sm:$0xff]  }
 0x200   : > { %4638 = vmatprep.subr.bf16.mxu0 %v9126_v50  ;;  %4724 = vmatprep.subr.bf16.mxu1 %v9129_v7  ;;  %v9172_v50 = vld [vmem:[%s11895_s2 + $0x4c4] ss:$16 sps:$4 sm:$0xff]   ;;  %v9175_v7 = vld [vmem:[%s11895_s2 + $0x4cc] ss:$16 sps:$4 sm:$0xff]  }
 0x203   : > { %4639 = vmatpush1.bf16.msra.mxu0 %v9124_v36  ;;  %4725 = vmatpush1.bf16.msra.mxu1 %v9127_v37  ;;  %v9173_v36 = vld [vmem:[%s11895_s2 + $0x4c8] ss:$16 sps:$4 sm:$0xff]   ;;  %v9178_v37 = vld [vmem:[%s11895_s2 + $0x4e4] ss:$16 sps:$4 sm:$0xff]  }
 0x204   : > { %4640 = vmatprep.subr.bf16.mxu0 %v9132_v38  ;;  %4726 = vmatprep.subr.bf16.mxu1 %v9135_v39  ;;  %v9181_v38 = vld [vmem:[%s11895_s2 + $0x4ec] ss:$16 sps:$4 sm:$0xff]   ;;  %v9176_v39 = vld [vmem:[%s11895_s2 + $0x4e0] ss:$16 sps:$4 sm:$0xff]  }
 0x207   : > { %4641 = vmatpush1.bf16.msra.mxu0 %v9130_v41  ;;  %4727 = vmatpush1.bf16.msra.mxu1 %v9133_v44  ;;  %v9184_v41 = vld [vmem:[%s11895_s2 + $0x504] ss:$16 sps:$4 sm:$0xff]   ;;  %v9187_v44 = vld [vmem:[%s11895_s2 + $0x50c] ss:$16 sps:$4 sm:$0xff]  }
 0x208   : > { %4642 = vmatprep.subr.bf16.mxu0 %v9138_v45  ;;  %4728 = vmatprep.subr.bf16.mxu1 %v9141_v47  ;;  %v9182_v45 = vld [vmem:[%s11895_s2 + $0x500] ss:$16 sps:$4 sm:$0xff]   ;;  %v9185_v47 = vld [vmem:[%s11895_s2 + $0x508] ss:$16 sps:$4 sm:$0xff]  }
 0x209   : > { %v2730_v55 = vpop.f32.mrb[12].mxu0  ;;  %v2816_v56 = vpop.f32.mrb[12].mxu1 }
 0x20a   : > { %v11158_v58 = vadd.f32 %v2730_v55, %v10923_v18  ;;  %v11161_v48 = vadd.f32 %v2816_v56, %v10926_v19  ;;  %v2732_v59 = vpop.f32.mrb[13].mxu0  ;;  %v2818_v9 = vpop.f32.mrb[13].mxu1  ;;  %v9194_v55 = vld [vmem:[%s11895_s2 + $0x540] ss:$16 sps:$4 sm:$0xff]   ;;  %v9197_v56 = vld [vmem:[%s11895_s2 + $0x548] ss:$16 sps:$4 sm:$0xff]  }
 0x20b   : > { %4643 = vmatpush1.bf16.msra.mxu0 %v9136_v51  ;;  %4729 = vmatpush1.bf16.msra.mxu1 %v9139_v52  ;;  %v11171_v18 = vadd.f32 %v2732_v59, %v10935_v24  ;;  %v11174_v19 = vadd.f32 %v2818_v9, %v10938_v42  ;;  %v2734_v63 = vpop.f32.mrb[14].mxu0  ;;  %v2820_v1 = vpop.f32.mrb[14].mxu1  ;;  %v9256_v24 = vld [vmem:[%s9838_s19 + $0x4] ss:$12 sps:$4 sm:$0x1f]   ;;  %v4243_v42 = vshll.u32 %v9163_v62, 16 }
 0x20c   : > { %v2837_v3 = vadd.f32 %v2829_v0, %v2734_v63  ;;  %v2839_v4 = vadd.f32 %v2831_v2, %v2820_v1  ;;  %4655 = vmatprep.subr.bf16.mxu0 %v9147_v53  ;;  %4741 = vmatprep.subr.bf16.mxu1 %v9150_v54  ;;  %v2736_v5 = vpop.f32.mrb[15].mxu0  ;;  %v2822_v11 = vpop.f32.mrb[15].mxu1  ;;  %v4907_v22 = vshll.u32 %v9256_v24, 16  ;;  %v4905_v25 = vshrl.u32 %v9256_v24, 16  ;;  %v9188_v51 = vld [vmem:[%s11895_s2 + $0x520] ss:$16 sps:$4 sm:$0xff]  }
 0x20d   : > { %v2838_v13 = vadd.f32 %v2830_v6, %v2736_v5  ;;  %v2840_v15 = vadd.f32 %v2832_v12, %v2822_v11  ;;  %v4245_v43 = vrot.slane %v4243_v42, 1  ;;  %v9191_v52 = vld [vmem:[%s11895_s2 + $0x528] ss:$16 sps:$4 sm:$0xff]   ;;  %v9196_v53 = vld [vmem:[%s11895_s2 + $0x544] ss:$16 sps:$4 sm:$0xff]  }
 0x20e   : > { %2845 = vst [vmem:[#allocation2 + $0x20] sm:$0x1] %v2837_v3  ;;  %2847 = vst [vmem:[#allocation2 + $0x30] sm:$0x1] %v2839_v4  ;;  %4645 = vmatmul.mubr.bf16.vlgmr.msra.gmra.mrb[24].mxu0 %v4232_v10  ;;  %4731 = vmatmul.mubr.bf16.vlgmr.msra.gmra.mrb[24].mxu1 %v4232_v10  ;;  %v4909_v27 = vrot.slane %v4907_v22, 1 }
 0x20f   : > { %2846 = vst [vmem:[#allocation2 + $0x28] sm:$0x1] %v2838_v13  ;;  %2848 = vst [vmem:[#allocation2 + $0x38] sm:$0x1] %v2840_v15  ;;  %4656 = vmatpush1.bf16.msra.mxu0 %v9145_v35  ;;  %4742 = vmatpush1.bf16.msra.mxu1 %v9148_v57  ;;  %v4246_v28 = vor.u32 %v4245_v43, %v4241_v23  ;;  %v9199_v54 = vld [vmem:[%s11895_s2 + $0x54c] ss:$16 sps:$4 sm:$0xff]  }
 0x210   : > { %4657 = vmatprep.subr.bf16.mxu0 %v9153_v60  ;;  %4743 = vmatprep.subr.bf16.mxu1 %v9156_v61  ;;  %v4910_v26 = vor.u32 %v4909_v27, %v4905_v25  ;;  %v9202_v35 = vld [vmem:[%s11895_s2 + $0x564] ss:$16 sps:$4 sm:$0xff]   ;;  %v9205_v57 = vld [vmem:[%s11895_s2 + $0x56c] ss:$16 sps:$4 sm:$0xff]   ;;  %v9200_v59 = vld [vmem:[%s11895_s2 + $0x560] ss:$16 sps:$4 sm:$0xff]  }
 0x211   : > { %4687 = vmatprep.mubr.bf16.mxu0 %v9504_v14  ;;  %4773 = vmatprep.mubr.bf16.mxu1 %v9504_v14  ;;  %v9203_v9 = vld [vmem:[%s11895_s2 + $0x568] ss:$16 sps:$4 sm:$0xff]   ;;  %v9208_v10 = vld [vmem:[%s11895_s2 + $0x584] ss:$16 sps:$4 sm:$0xff]   ;;  %v9211_v60 = vld [vmem:[%s11895_s2 + $0x58c] ss:$16 sps:$4 sm:$0xff]  }
 0x212   : > { %v9206_v61 = vld [vmem:[%s11895_s2 + $0x580] ss:$16 sps:$4 sm:$0xff]   ;;  %v9209_v62 = vld [vmem:[%s11895_s2 + $0x588] ss:$16 sps:$4 sm:$0xff]   ;;  %v9214_v63 = vld [vmem:[%s11895_s2 + $0x5a4] ss:$16 sps:$4 sm:$0xff]  }
 0x213   : > { %4658 = vmatpush1.bf16.msra.mxu0 %v9151_v16  ;;  %4744 = vmatpush1.bf16.msra.mxu1 %v9154_v17  ;;  %v9217_v0 = vld [vmem:[%s11895_s2 + $0x5ac] ss:$16 sps:$4 sm:$0xff]   ;;  %v9212_v1 = vld [vmem:[%s11895_s2 + $0x5a0] ss:$16 sps:$4 sm:$0xff]   ;;  %v9215_v2 = vld [vmem:[%s11895_s2 + $0x5a8] ss:$16 sps:$4 sm:$0xff]  }
 0x214   : > { %5283 = vmatprep.subr.bf16.mxu0 %v9159_v20  ;;  %5369 = vmatprep.subr.bf16.mxu1 %v9162_v21  ;;  %v9220_v3 = vld [vmem:[%s11895_s2 + $0x5c4] ss:$16 sps:$4 sm:$0xff]   ;;  %v9223_v4 = vld [vmem:[%s11895_s2 + $0x5cc] ss:$16 sps:$4 sm:$0xff]   ;;  %v9218_v5 = vld [vmem:[%s11895_s2 + $0x5c0] ss:$16 sps:$4 sm:$0xff]  }
 0x215   : > { %v9221_v6 = vld [vmem:[%s11895_s2 + $0x5c8] ss:$16 sps:$4 sm:$0xff]   ;;  %v9226_v11 = vld [vmem:[%s11895_s2 + $0x5e4] ss:$16 sps:$4 sm:$0xff]   ;;  %v9229_v12 = vld [vmem:[%s11895_s2 + $0x5ec] ss:$16 sps:$4 sm:$0xff]  }
 0x216   : > { %v9224_v13 = vld [vmem:[%s11895_s2 + $0x5e0] ss:$16 sps:$4 sm:$0xff]   ;;  %v9227_v15 = vld [vmem:[%s11895_s2 + $0x5e8] ss:$16 sps:$4 sm:$0xff]   ;;  %v9232_v24 = vld [vmem:[%s11895_s2 + $0x604] ss:$16 sps:$4 sm:$0xff]  }
 0x217   : > { %v9235_v42 = vld [vmem:[%s11895_s2 + $0x60c] ss:$16 sps:$4 sm:$0xff]   ;;  %v9230_v16 = vld [vmem:[%s11895_s2 + $0x600] ss:$16 sps:$4 sm:$0xff]   ;;  %v9233_v17 = vld [vmem:[%s11895_s2 + $0x608] ss:$16 sps:$4 sm:$0xff]  }
 0x218   : > { %v9238_v20 = vld [vmem:[%s11895_s2 + $0x624] ss:$16 sps:$4 sm:$0xff]   ;;  %v9241_v21 = vld [vmem:[%s11895_s2 + $0x62c] ss:$16 sps:$4 sm:$0xff]   ;;  %v9236_v23 = vld [vmem:[%s11895_s2 + $0x620] ss:$16 sps:$4 sm:$0xff]  }
 0x219   : > { %v9254_v22 = vld [vmem:[%s9838_s19] ss:$12 sps:$4 sm:$0x1f]   ;;  %v9239_v43 = vld [vmem:[%s11895_s2 + $0x628] ss:$16 sps:$4 sm:$0xff]  }
 0x21a   : > { %7832 = vmatmul.mubr.msk.bf16.vlgmr.msra.gmra.mrb[24].mxu0 %vm670_vm0, %v4246_v28  ;;  %7833 = vmatmul.mubr.msk.bf16.vlgmr.msra.gmra.mrb[24].mxu1 %vm670_vm0, %v4246_v28  ;;  %v9244_v25 = vld [vmem:[%s11895_s2 + $0x644] ss:$16 sps:$4 sm:$0xff]   ;;  %v9247_v27 = vld [vmem:[%s11895_s2 + $0x64c] ss:$16 sps:$4 sm:$0xff]   ;;  %v4900_v28 = vshll.u32 %v9254_v22, 16 }
 0x21b   : > { %5284 = vmatpush1.bf16.msra.mxu0 %v9157_v29  ;;  %5370 = vmatpush1.bf16.msra.mxu1 %v9160_v30  ;;  %v9242_v29 = vld [vmem:[%s11895_s2 + $0x640] ss:$16 sps:$4 sm:$0xff]   ;;  %v9245_v30 = vld [vmem:[%s11895_s2 + $0x648] ss:$16 sps:$4 sm:$0xff]  }
 0x21c   : > { %5285 = vmatprep.subr.bf16.mxu0 %v9166_v31  ;;  %5371 = vmatprep.subr.bf16.mxu1 %v9169_v46  ;;  %v9250_v31 = vld [vmem:[%s11895_s2 + $0x664] ss:$16 sps:$4 sm:$0xff]   ;;  %v9253_v46 = vld [vmem:[%s11895_s2 + $0x66c] ss:$16 sps:$4 sm:$0xff]  }
 0x21d   : > { %5315 = vmatprep.mubr.bf16.mxu0 %v4910_v26  ;;  %5401 = vmatprep.mubr.bf16.mxu1 %v4910_v26  ;;  %v4898_v26 = vshrl.u32 %v9254_v22, 16  ;;  %v9293_v22 = vld [vmem:[%s11895_s2 + $0x72c] ss:$16 sps:$4 sm:$0xff]  }
 0x21f   : > { %5286 = vmatpush1.bf16.msra.mxu0 %v9164_v32  ;;  %5372 = vmatpush1.bf16.msra.mxu1 %v9167_v33  ;;  %v4902_v32 = vrot.slane %v4900_v28, 1  ;;  %v9248_v33 = vld [vmem:[%s11895_s2 + $0x660] ss:$16 sps:$4 sm:$0xff]  }
 0x220   : > { %5287 = vmatprep.subr.bf16.mxu0 %v9172_v50  ;;  %5373 = vmatprep.subr.bf16.mxu1 %v9175_v7  ;;  %v9251_v50 = vld [vmem:[%s11895_s2 + $0x668] ss:$16 sps:$4 sm:$0xff]   ;;  %v9259_v7 = vld [vmem:[%s11895_s2 + $0x684] ss:$16 sps:$4 sm:$0xff]   ;;  %v9294_v28 = vld [vmem:[%s11895_s2 + $0x740] ss:$16 sps:$4 sm:$0xff]  }
 0x223   : > { %5288 = vmatpush1.bf16.msra.mxu0 %v9170_v34  ;;  %5374 = vmatpush1.bf16.msra.mxu1 %v9173_v36  ;;  %v9262_v34 = vld [vmem:[%s11895_s2 + $0x68c] ss:$16 sps:$4 sm:$0xff]  }
 0x224   : > { %5289 = vmatprep.subr.bf16.mxu0 %v9178_v37  ;;  %5375 = vmatprep.subr.bf16.mxu1 %v9181_v38  ;;  %v9257_v38 = vld [vmem:[%s11895_s2 + $0x680] ss:$16 sps:$4 sm:$0xff]  }
 0x227   : > { %5290 = vmatpush1.bf16.msra.mxu0 %v9176_v39  ;;  %5376 = vmatpush1.bf16.msra.mxu1 %v9179_v40  ;;  %v9260_v39 = vld [vmem:[%s11895_s2 + $0x688] ss:$16 sps:$4 sm:$0xff]  }
 0x228   : > { %5291 = vmatprep.subr.bf16.mxu0 %v9184_v41  ;;  %5377 = vmatprep.subr.bf16.mxu1 %v9187_v44  ;;  %v9275_v40 = vld [vmem:[%s9838_s19 + $0x8] ss:$12 sps:$4 sm:$0x1f]  }
 0x22b   : > { %5292 = vmatpush1.bf16.msra.mxu0 %v9182_v45  ;;  %5378 = vmatpush1.bf16.msra.mxu1 %v9185_v47 }
 0x22c   : > { %5293 = vmatprep.subr.bf16.mxu0 %v9190_v49  ;;  %5379 = vmatprep.subr.bf16.mxu1 %v9193_v8  ;;  %v4903_v49 = vor.u32 %v4902_v32, %v4898_v26  ;;  %v9265_v8 = vld [vmem:[%s11895_s2 + $0x6a4] ss:$16 sps:$4 sm:$0xff]   ;;  %v9303_v26 = vld [vmem:[%s11895_s2 + $0x768] ss:$16 sps:$4 sm:$0xff]  }
 0x22d   : > { %v9308_v32 = vld [vmem:[%s11895_s2 + $0x784] ss:$16 sps:$4 sm:$0xff]  }
 0x22f   : > { %5294 = vmatpush1.bf16.msra.mxu0 %v9188_v51  ;;  %5380 = vmatpush1.bf16.msra.mxu1 %v9191_v52  ;;  %v9268_v51 = vld [vmem:[%s11895_s2 + $0x6ac] ss:$16 sps:$4 sm:$0xff]  }
 0x230   : > { %5295 = vmatprep.subr.bf16.mxu0 %v9196_v53  ;;  %5381 = vmatprep.subr.bf16.mxu1 %v9199_v54  ;;  %v3483_v53 = vld [vmem:[#allocation2 + $0x20] sm:$0x1] }
 0x233   : > { %5296 = vmatpush1.bf16.msra.mxu0 %v9194_v55  ;;  %5382 = vmatpush1.bf16.msra.mxu1 %v9197_v56  ;;  %v3485_v55 = vld [vmem:[#allocation2 + $0x30] sm:$0x1] }
 0x234   : > { %5297 = vmatprep.subr.bf16.mxu0 %v9202_v35  ;;  %5383 = vmatprep.subr.bf16.mxu1 %v9205_v57 }
 0x237   : > { %5298 = vmatpush1.bf16.msra.mxu0 %v9200_v59  ;;  %5384 = vmatpush1.bf16.msra.mxu1 %v9203_v9  ;;  %v3484_v59 = vld [vmem:[#allocation2 + $0x28] sm:$0x1] }
 0x238   : > { %5299 = vmatprep.subr.bf16.mxu0 %v9208_v10  ;;  %5385 = vmatprep.subr.bf16.mxu1 %v9211_v60  ;;  %v3486_v10 = vld [vmem:[#allocation2 + $0x38] sm:$0x1] }
 0x23b   : > { %5300 = vmatpush1.bf16.msra.mxu0 %v9206_v61  ;;  %5386 = vmatpush1.bf16.msra.mxu1 %v9209_v62  ;;  %v9266_v62 = vld [vmem:[%s11895_s2 + $0x6a8] ss:$16 sps:$4 sm:$0xff]  }
 0x23c   : > { %5301 = vmatprep.subr.bf16.mxu0 %v9214_v63  ;;  %5387 = vmatprep.subr.bf16.mxu1 %v9217_v0  ;;  %v9271_v63 = vld [vmem:[%s11895_s2 + $0x6c4] ss:$16 sps:$4 sm:$0xff]   ;;  %v9274_v0 = vld [vmem:[%s11895_s2 + $0x6cc] ss:$16 sps:$4 sm:$0xff]  }
 0x23f   : > { %5302 = vmatpush1.bf16.msra.mxu0 %v9212_v1  ;;  %5388 = vmatpush1.bf16.msra.mxu1 %v9215_v2  ;;  %v4912_v1 = vshrl.u32 %v9275_v40, 16 }
 0x240   : > { %5303 = vmatprep.subr.bf16.mxu0 %v9220_v3  ;;  %5389 = vmatprep.subr.bf16.mxu1 %v9223_v4  ;;  %v9368_v3 = vld [vmem:[%s9682_s10 + $0x4] ss:$12 sps:$4 sm:$0x3e]  }
 0x243   : > { %5304 = vmatpush1.bf16.msra.mxu0 %v9218_v5  ;;  %5390 = vmatpush1.bf16.msra.mxu1 %v9221_v6  ;;  %v9269_v5 = vld [vmem:[%s11895_s2 + $0x6c0] ss:$16 sps:$4 sm:$0xff]   ;;  %v9272_v6 = vld [vmem:[%s11895_s2 + $0x6c8] ss:$16 sps:$4 sm:$0xff]  }
 0x244   : > { %5305 = vmatprep.subr.bf16.mxu0 %v9226_v11  ;;  %5391 = vmatprep.subr.bf16.mxu1 %v9229_v12  ;;  %v9278_v11 = vld [vmem:[%s11895_s2 + $0x6e4] ss:$16 sps:$4 sm:$0xff]   ;;  %v9281_v12 = vld [vmem:[%s11895_s2 + $0x6ec] ss:$16 sps:$4 sm:$0xff]  }
 0x247   : > { %5306 = vmatpush1.bf16.msra.mxu0 %v9224_v13  ;;  %5392 = vmatpush1.bf16.msra.mxu1 %v9227_v15  ;;  %v5569_v13 = vrot.slane %v9368_v3, 1  ;;  %v9276_v15 = vld [vmem:[%s11895_s2 + $0x6e0] ss:$16 sps:$4 sm:$0xff]  }
 0x248   : > { %5307 = vmatprep.subr.bf16.mxu0 %v9232_v24  ;;  %5393 = vmatprep.subr.bf16.mxu1 %v9235_v42  ;;  %v9279_v24 = vld [vmem:[%s11895_s2 + $0x6e8] ss:$16 sps:$4 sm:$0xff]   ;;  %v9284_v42 = vld [vmem:[%s11895_s2 + $0x704] ss:$16 sps:$4 sm:$0xff]   ;;  %v9354_v3 = vld [vmem:[%s11895_s2 + $0x880] ss:$16 sps:$4 sm:$0xff]  }
 0x24b   : > { %5308 = vmatpush1.bf16.msra.mxu0 %v9230_v16  ;;  %5394 = vmatpush1.bf16.msra.mxu1 %v9233_v17  ;;  %v9287_v16 = vld [vmem:[%s11895_s2 + $0x70c] ss:$16 sps:$4 sm:$0xff]   ;;  %v9282_v17 = vld [vmem:[%s11895_s2 + $0x700] ss:$16 sps:$4 sm:$0xff]  }
 0x24c   : > { %5309 = vmatprep.subr.bf16.mxu0 %v9238_v20  ;;  %5395 = vmatprep.subr.bf16.mxu1 %v9241_v21  ;;  %v9285_v20 = vld [vmem:[%s11895_s2 + $0x708] ss:$16 sps:$4 sm:$0xff]   ;;  %v9290_v21 = vld [vmem:[%s11895_s2 + $0x724] ss:$16 sps:$4 sm:$0xff]  }
 0x24f   : > { %5310 = vmatpush1.bf16.msra.mxu0 %v9236_v23  ;;  %5396 = vmatpush1.bf16.msra.mxu1 %v9239_v43  ;;  %v9288_v23 = vld [vmem:[%s11895_s2 + $0x720] ss:$16 sps:$4 sm:$0xff]   ;;  %v9291_v43 = vld [vmem:[%s11895_s2 + $0x728] ss:$16 sps:$4 sm:$0xff]  }
 0x250   : > { %5311 = vmatprep.subr.bf16.mxu0 %v9244_v25  ;;  %5397 = vmatprep.subr.bf16.mxu1 %v9247_v27  ;;  %v9296_v25 = vld [vmem:[%s11895_s2 + $0x744] ss:$16 sps:$4 sm:$0xff]   ;;  %v9299_v27 = vld [vmem:[%s11895_s2 + $0x74c] ss:$16 sps:$4 sm:$0xff]  }
 0x253   : > { %5312 = vmatpush1.bf16.msra.mxu0 %v9242_v29  ;;  %5398 = vmatpush1.bf16.msra.mxu1 %v9245_v30  ;;  %v9297_v29 = vld [vmem:[%s11895_s2 + $0x748] ss:$16 sps:$4 sm:$0xff]   ;;  %v9302_v30 = vld [vmem:[%s11895_s2 + $0x764] ss:$16 sps:$4 sm:$0xff]  }
 0x254   : > { %5313 = vmatprep.subr.bf16.mxu0 %v9250_v31  ;;  %5399 = vmatprep.subr.bf16.mxu1 %v9253_v46  ;;  %v9305_v31 = vld [vmem:[%s11895_s2 + $0x76c] ss:$16 sps:$4 sm:$0xff]   ;;  %v9300_v46 = vld [vmem:[%s11895_s2 + $0x760] ss:$16 sps:$4 sm:$0xff]  }
 0x255   : > { %v3384_v36 = vpop.f32.mrb[16].mxu0  ;;  %v3470_v37 = vpop.f32.mrb[16].mxu1 }
 0x256   : > { %v11394_v41 = vadd.f32 %v3384_v36, %v11158_v58  ;;  %v11397_v44 = vadd.f32 %v3470_v37, %v11161_v48  ;;  %v3386_v45 = vpop.f32.mrb[17].mxu0  ;;  %v3472_v47 = vpop.f32.mrb[17].mxu1  ;;  %v9317_v36 = vld [vmem:[%s11895_s2 + $0x7ac] ss:$16 sps:$4 sm:$0xff]   ;;  %v9312_v37 = vld [vmem:[%s11895_s2 + $0x7a0] ss:$16 sps:$4 sm:$0xff]  }
 0x257   : > { %5314 = vmatpush1.bf16.msra.mxu0 %v9248_v33  ;;  %5400 = vmatpush1.bf16.msra.mxu1 %v9251_v50  ;;  %v11406_v52 = vadd.f32 %v3386_v45, %v11171_v18  ;;  %v11409_v58 = vadd.f32 %v3472_v47, %v11174_v19  ;;  %v3388_v48 = vpop.f32.mrb[18].mxu0  ;;  %v3474_v54 = vpop.f32.mrb[18].mxu1  ;;  %v4914_v18 = vshll.u32 %v9275_v40, 16  ;;  %v9263_v19 = vld [vmem:[%s11895_s2 + $0x6a0] ss:$16 sps:$4 sm:$0xff]  }
 0x258   : > { %v3491_v56 = vadd.f32 %v3483_v53, %v3388_v48  ;;  %v3493_v35 = vadd.f32 %v3485_v55, %v3474_v54  ;;  %5326 = vmatprep.subr.bf16.mxu0 %v9259_v7  ;;  %5412 = vmatprep.subr.bf16.mxu1 %v9262_v34  ;;  %v3390_v57 = vpop.f32.mrb[19].mxu0  ;;  %v3476_v9 = vpop.f32.mrb[19].mxu1  ;;  %v9311_v33 = vld [vmem:[%s11895_s2 + $0x78c] ss:$16 sps:$4 sm:$0xff]   ;;  %v9306_v50 = vld [vmem:[%s11895_s2 + $0x780] ss:$16 sps:$4 sm:$0xff]  }
 0x259   : > { %v3492_v60 = vadd.f32 %v3484_v59, %v3390_v57  ;;  %v3494_v61 = vadd.f32 %v3486_v10, %v3476_v9  ;;  %v4916_v2 = vrot.slane %v4914_v18, 1  ;;  %v9309_v7 = vld [vmem:[%s11895_s2 + $0x788] ss:$16 sps:$4 sm:$0xff]   ;;  %v9314_v34 = vld [vmem:[%s11895_s2 + $0x7a4] ss:$16 sps:$4 sm:$0xff]  }
 0x25a   : > { %3499 = vst [vmem:[#allocation2 + $0x20] sm:$0x1] %v3491_v56  ;;  %3501 = vst [vmem:[#allocation2 + $0x30] sm:$0x1] %v3493_v35  ;;  %5316 = vmatmul.mubr.bf16.vlgmr.msra.gmra.mrb[28].mxu0 %v4903_v49  ;;  %5402 = vmatmul.mubr.bf16.vlgmr.msra.gmra.mrb[28].mxu1 %v4903_v49  ;;  %v9323_v40 = vld [vmem:[%s11895_s2 + $0x7cc] ss:$16 sps:$4 sm:$0xff]  }
 0x25b   : > { %3500 = vst [vmem:[#allocation2 + $0x28] sm:$0x1] %v3492_v60  ;;  %3502 = vst [vmem:[#allocation2 + $0x38] sm:$0x1] %v3494_v61  ;;  %5327 = vmatpush1.bf16.msra.mxu0 %v9257_v38  ;;  %5413 = vmatpush1.bf16.msra.mxu1 %v9260_v39  ;;  %v4917_v4 = vor.u32 %v4916_v2, %v4912_v1  ;;  %v9315_v38 = vld [vmem:[%s11895_s2 + $0x7a8] ss:$16 sps:$4 sm:$0xff]  }
 0x25c   : > { %5328 = vmatprep.subr.bf16.mxu0 %v9265_v8  ;;  %5414 = vmatprep.subr.bf16.mxu1 %v9268_v51  ;;  %v9320_v39 = vld [vmem:[%s11895_s2 + $0x7c4] ss:$16 sps:$4 sm:$0xff]   ;;  %v9318_v45 = vld [vmem:[%s11895_s2 + $0x7c0] ss:$16 sps:$4 sm:$0xff]   ;;  %v9321_v47 = vld [vmem:[%s11895_s2 + $0x7c8] ss:$16 sps:$4 sm:$0xff]  }
 0x25d   : > { %5358 = vmatprep.mubr.bf16.mxu0 %v9504_v14  ;;  %5444 = vmatprep.mubr.bf16.mxu1 %v9504_v14  ;;  %v9326_v49 = vld [vmem:[%s11895_s2 + $0x7e4] ss:$16 sps:$4 sm:$0xff]   ;;  %v9329_v8 = vld [vmem:[%s11895_s2 + $0x7ec] ss:$16 sps:$4 sm:$0xff]   ;;  %v9324_v51 = vld [vmem:[%s11895_s2 + $0x7e0] ss:$16 sps:$4 sm:$0xff]  }
 0x25e   : > { %v9327_v48 = vld [vmem:[%s11895_s2 + $0x7e8] ss:$16 sps:$4 sm:$0xff]   ;;  %v9332_v53 = vld [vmem:[%s11895_s2 + $0x804] ss:$16 sps:$4 sm:$0xff]   ;;  %v9335_v54 = vld [vmem:[%s11895_s2 + $0x80c] ss:$16 sps:$4 sm:$0xff]  }
 0x25f   : > { %5329 = vmatpush1.bf16.msra.mxu0 %v9263_v19  ;;  %5415 = vmatpush1.bf16.msra.mxu1 %v9266_v62  ;;  %v9330_v55 = vld [vmem:[%s11895_s2 + $0x800] ss:$16 sps:$4 sm:$0xff]   ;;  %v9333_v56 = vld [vmem:[%s11895_s2 + $0x808] ss:$16 sps:$4 sm:$0xff]   ;;  %v9338_v35 = vld [vmem:[%s11895_s2 + $0x824] ss:$16 sps:$4 sm:$0xff]  }
 0x260   : > { %5936 = vmatprep.subr.bf16.mxu0 %v9271_v63  ;;  %6022 = vmatprep.subr.bf16.mxu1 %v9274_v0  ;;  %v9341_v57 = vld [vmem:[%s11895_s2 + $0x82c] ss:$16 sps:$4 sm:$0xff]   ;;  %v9336_v59 = vld [vmem:[%s11895_s2 + $0x820] ss:$16 sps:$4 sm:$0xff]   ;;  %v9339_v9 = vld [vmem:[%s11895_s2 + $0x828] ss:$16 sps:$4 sm:$0xff]  }
 0x261   : > { %v9344_v10 = vld [vmem:[%s11895_s2 + $0x844] ss:$16 sps:$4 sm:$0xff]   ;;  %v9347_v60 = vld [vmem:[%s11895_s2 + $0x84c] ss:$16 sps:$4 sm:$0xff]   ;;  %v9342_v61 = vld [vmem:[%s11895_s2 + $0x840] ss:$16 sps:$4 sm:$0xff]  }
 0x262   : > { %v9345_v18 = vld [vmem:[%s11895_s2 + $0x848] ss:$16 sps:$4 sm:$0xff]   ;;  %v9350_v19 = vld [vmem:[%s11895_s2 + $0x864] ss:$16 sps:$4 sm:$0xff]   ;;  %v9353_v62 = vld [vmem:[%s11895_s2 + $0x86c] ss:$16 sps:$4 sm:$0xff]  }
 0x263   : > { %v9348_v63 = vld [vmem:[%s11895_s2 + $0x860] ss:$16 sps:$4 sm:$0xff]   ;;  %v9351_v0 = vld [vmem:[%s11895_s2 + $0x868] ss:$16 sps:$4 sm:$0xff]   ;;  %v9356_v1 = vld [vmem:[%s11895_s2 + $0x884] ss:$16 sps:$4 sm:$0xff]  }
 0x264   : > { %v9359_v2 = vld [vmem:[%s11895_s2 + $0x88c] ss:$16 sps:$4 sm:$0xff]  }
 0x266   : > { %7981 = vmatmul.mubr.msk.bf16.vlgmr.msra.gmra.mrb[28].mxu0 %vm670_vm0, %v4917_v4  ;;  %7982 = vmatmul.mubr.msk.bf16.vlgmr.msra.gmra.mrb[28].mxu1 %vm670_vm0, %v4917_v4  ;;  %v9357_v4 = vld [vmem:[%s11895_s2 + $0x888] ss:$16 sps:$4 sm:$0xff]  }
 0x267   : > { %5937 = vmatpush1.bf16.msra.mxu0 %v9269_v5  ;;  %6023 = vmatpush1.bf16.msra.mxu1 %v9272_v6  ;;  %v9362_v5 = vld [vmem:[%s11895_s2 + $0x8a4] ss:$16 sps:$4 sm:$0xff]   ;;  %v9365_v6 = vld [vmem:[%s11895_s2 + $0x8ac] ss:$16 sps:$4 sm:$0xff]  }
 0x268   : > { %5938 = vmatprep.subr.bf16.mxu0 %v9278_v11  ;;  %6024 = vmatprep.subr.bf16.mxu1 %v9281_v12  ;;  %v9366_v11 = vld [vmem:[%s9682_s10] ss:$12 sps:$4 sm:$0x3e]  }
 0x269   : > { %5968 = vmatprep.mubr.bf16.mxu0 %v5569_v13  ;;  %6054 = vmatprep.mubr.bf16.mxu1 %v5569_v13  ;;  %v9360_v12 = vld [vmem:[%s11895_s2 + $0x8a0] ss:$16 sps:$4 sm:$0xff]   ;;  %v9363_v13 = vld [vmem:[%s11895_s2 + $0x8a8] ss:$16 sps:$4 sm:$0xff]  }
 0x26b   : > { %5939 = vmatpush1.bf16.msra.mxu0 %v9276_v15  ;;  %6025 = vmatpush1.bf16.msra.mxu1 %v9279_v24  ;;  %v9371_v15 = vld [vmem:[%s11895_s2 + $0x8c4] ss:$16 sps:$4 sm:$0xff]   ;;  %v9374_v24 = vld [vmem:[%s11895_s2 + $0x8cc] ss:$16 sps:$4 sm:$0xff]  }
 0x26c   : > { %5940 = vmatprep.subr.bf16.mxu0 %v9284_v42  ;;  %6026 = vmatprep.subr.bf16.mxu1 %v9287_v16 }
 0x26f   : > { %5941 = vmatpush1.bf16.msra.mxu0 %v9282_v17  ;;  %6027 = vmatpush1.bf16.msra.mxu1 %v9285_v20 }
 0x270   : > { %5942 = vmatprep.subr.bf16.mxu0 %v9290_v21  ;;  %6028 = vmatprep.subr.bf16.mxu1 %v9293_v22  ;;  %v5568_v21 = vrot.slane %v9366_v11, 1  ;;  %v9433_v11 = vld [vmem:[%s11895_s2 + $0xa08] ss:$16 sps:$4 sm:$0xff]  }
 0x273   : > { %5943 = vmatpush1.bf16.msra.mxu0 %v9288_v23  ;;  %6029 = vmatpush1.bf16.msra.mxu1 %v9291_v43  ;;  %v9369_v43 = vld [vmem:[%s11895_s2 + $0x8c0] ss:$16 sps:$4 sm:$0xff]  }
 0x274   : > { %5944 = vmatprep.subr.bf16.mxu0 %v9296_v25  ;;  %6030 = vmatprep.subr.bf16.mxu1 %v9299_v27  ;;  %v9372_v25 = vld [vmem:[%s11895_s2 + $0x8c8] ss:$16 sps:$4 sm:$0xff]  }
 0x277   : > { %5945 = vmatpush1.bf16.msra.mxu0 %v9294_v28  ;;  %6031 = vmatpush1.bf16.msra.mxu1 %v9297_v29  ;;  %v9377_v29 = vld [vmem:[%s11895_s2 + $0x8e4] ss:$16 sps:$4 sm:$0xff]  }
 0x278   : > { %5946 = vmatprep.subr.bf16.mxu0 %v9302_v30  ;;  %6032 = vmatprep.subr.bf16.mxu1 %v9305_v31  ;;  %v9380_v30 = vld [vmem:[%s11895_s2 + $0x8ec] ss:$16 sps:$4 sm:$0xff]   ;;  %v9375_v31 = vld [vmem:[%s11895_s2 + $0x8e0] ss:$16 sps:$4 sm:$0xff]  }
 0x27b   : > { %5947 = vmatpush1.bf16.msra.mxu0 %v9300_v46  ;;  %6033 = vmatpush1.bf16.msra.mxu1 %v9303_v26  ;;  %v9378_v46 = vld [vmem:[%s11895_s2 + $0x8e8] ss:$16 sps:$4 sm:$0xff]   ;;  %v9383_v26 = vld [vmem:[%s11895_s2 + $0x904] ss:$16 sps:$4 sm:$0xff]  }
 0x27c   : > { %5948 = vmatprep.subr.bf16.mxu0 %v9308_v32  ;;  %6034 = vmatprep.subr.bf16.mxu1 %v9311_v33  ;;  %v9386_v32 = vld [vmem:[%s11895_s2 + $0x90c] ss:$16 sps:$4 sm:$0xff]   ;;  %v9387_v33 = vld [vmem:[%s9682_s10 + $0x8] ss:$12 sps:$4 sm:$0x3e]  }
 0x27f   : > { %5949 = vmatpush1.bf16.msra.mxu0 %v9306_v50  ;;  %6035 = vmatpush1.bf16.msra.mxu1 %v9309_v7  ;;  %v9480_v50 = vld [vmem:[%s9838_s19 + $0x4] ss:$12 sps:$4 sm:$0x3e]   ;;  %v5570_v7 = vrot.slane %v9387_v33, 1  ;;  %v9465_v33 = vld [vmem:[%s11895_s2 + $0xaac] ss:$16 sps:$4 sm:$0xff]  }
 0x280   : > { %5950 = vmatprep.subr.bf16.mxu0 %v9314_v34  ;;  %6036 = vmatprep.subr.bf16.mxu1 %v9317_v36  ;;  %v9381_v34 = vld [vmem:[%s11895_s2 + $0x900] ss:$16 sps:$4 sm:$0xff]   ;;  %v9384_v36 = vld [vmem:[%s11895_s2 + $0x908] ss:$16 sps:$4 sm:$0xff]  }
 0x283   : > { %5951 = vmatpush1.bf16.msra.mxu0 %v9312_v37  ;;  %6037 = vmatpush1.bf16.msra.mxu1 %v9315_v38  ;;  %v9390_v37 = vld [vmem:[%s11895_s2 + $0x924] ss:$16 sps:$4 sm:$0xff]   ;;  %v9393_v38 = vld [vmem:[%s11895_s2 + $0x92c] ss:$16 sps:$4 sm:$0xff]  }
 0x284   : > { %5952 = vmatprep.subr.bf16.mxu0 %v9320_v39  ;;  %6038 = vmatprep.subr.bf16.mxu1 %v9323_v40  ;;  %v6222_v39 = vrot.slane %v9480_v50, 1  ;;  %v9388_v40 = vld [vmem:[%s11895_s2 + $0x920] ss:$16 sps:$4 sm:$0xff]  }
 0x285   : > { %v9460_v50 = vld [vmem:[%s11895_s2 + $0xaa0] ss:$16 sps:$4 sm:$0xff]  }
 0x287   : > { %5953 = vmatpush1.bf16.msra.mxu0 %v9318_v45  ;;  %6039 = vmatpush1.bf16.msra.mxu1 %v9321_v47  ;;  %v9391_v45 = vld [vmem:[%s11895_s2 + $0x928] ss:$16 sps:$4 sm:$0xff]   ;;  %v9396_v47 = vld [vmem:[%s11895_s2 + $0x944] ss:$16 sps:$4 sm:$0xff]  }
 0x288   : > { %5954 = vmatprep.subr.bf16.mxu0 %v9326_v49  ;;  %6040 = vmatprep.subr.bf16.mxu1 %v9329_v8  ;;  %v9399_v49 = vld [vmem:[%s11895_s2 + $0x94c] ss:$16 sps:$4 sm:$0xff]   ;;  %v9394_v8 = vld [vmem:[%s11895_s2 + $0x940] ss:$16 sps:$4 sm:$0xff]  }
 0x28b   : > { %5955 = vmatpush1.bf16.msra.mxu0 %v9324_v51  ;;  %6041 = vmatpush1.bf16.msra.mxu1 %v9327_v48  ;;  %v9397_v51 = vld [vmem:[%s11895_s2 + $0x948] ss:$16 sps:$4 sm:$0xff]   ;;  %v9402_v48 = vld [vmem:[%s11895_s2 + $0x964] ss:$16 sps:$4 sm:$0xff]  }
 0x28c   : > { %5956 = vmatprep.subr.bf16.mxu0 %v9332_v53  ;;  %6042 = vmatprep.subr.bf16.mxu1 %v9335_v54  ;;  %v9405_v53 = vld [vmem:[%s11895_s2 + $0x96c] ss:$16 sps:$4 sm:$0xff]   ;;  %v9400_v54 = vld [vmem:[%s11895_s2 + $0x960] ss:$16 sps:$4 sm:$0xff]  }
 0x28f   : > { %5957 = vmatpush1.bf16.msra.mxu0 %v9330_v55  ;;  %6043 = vmatpush1.bf16.msra.mxu1 %v9333_v56  ;;  %v9403_v55 = vld [vmem:[%s11895_s2 + $0x968] ss:$16 sps:$4 sm:$0xff]   ;;  %v9408_v56 = vld [vmem:[%s11895_s2 + $0x984] ss:$16 sps:$4 sm:$0xff]  }
 0x290   : > { %5958 = vmatprep.subr.bf16.mxu0 %v9338_v35  ;;  %6044 = vmatprep.subr.bf16.mxu1 %v9341_v57  ;;  %v9411_v35 = vld [vmem:[%s11895_s2 + $0x98c] ss:$16 sps:$4 sm:$0xff]   ;;  %v9406_v57 = vld [vmem:[%s11895_s2 + $0x980] ss:$16 sps:$4 sm:$0xff]  }
 0x293   : > { %5959 = vmatpush1.bf16.msra.mxu0 %v9336_v59  ;;  %6045 = vmatpush1.bf16.msra.mxu1 %v9339_v9  ;;  %v9409_v59 = vld [vmem:[%s11895_s2 + $0x988] ss:$16 sps:$4 sm:$0xff]   ;;  %v9414_v9 = vld [vmem:[%s11895_s2 + $0x9a4] ss:$16 sps:$4 sm:$0xff]  }
 0x294   : > { %5960 = vmatprep.subr.bf16.mxu0 %v9344_v10  ;;  %6046 = vmatprep.subr.bf16.mxu1 %v9347_v60  ;;  %v9417_v10 = vld [vmem:[%s11895_s2 + $0x9ac] ss:$16 sps:$4 sm:$0xff]   ;;  %v9412_v60 = vld [vmem:[%s11895_s2 + $0x9a0] ss:$16 sps:$4 sm:$0xff]  }
 0x297   : > { %5961 = vmatpush1.bf16.msra.mxu0 %v9342_v61  ;;  %6047 = vmatpush1.bf16.msra.mxu1 %v9345_v18  ;;  %v9415_v61 = vld [vmem:[%s11895_s2 + $0x9a8] ss:$16 sps:$4 sm:$0xff]   ;;  %v9420_v18 = vld [vmem:[%s11895_s2 + $0x9c4] ss:$16 sps:$4 sm:$0xff]  }
 0x298   : > { %5962 = vmatprep.subr.bf16.mxu0 %v9350_v19  ;;  %6048 = vmatprep.subr.bf16.mxu1 %v9353_v62  ;;  %v9423_v19 = vld [vmem:[%s11895_s2 + $0x9cc] ss:$16 sps:$4 sm:$0xff]   ;;  %v9418_v62 = vld [vmem:[%s11895_s2 + $0x9c0] ss:$16 sps:$4 sm:$0xff]  }
 0x29b   : > { %5963 = vmatpush1.bf16.msra.mxu0 %v9348_v63  ;;  %6049 = vmatpush1.bf16.msra.mxu1 %v9351_v0  ;;  %v9421_v63 = vld [vmem:[%s11895_s2 + $0x9c8] ss:$16 sps:$4 sm:$0xff]   ;;  %v9426_v0 = vld [vmem:[%s11895_s2 + $0x9e4] ss:$16 sps:$4 sm:$0xff]  }
 0x29c   : > { %5964 = vmatprep.subr.bf16.mxu0 %v9356_v1  ;;  %6050 = vmatprep.subr.bf16.mxu1 %v9359_v2  ;;  %v9429_v1 = vld [vmem:[%s11895_s2 + $0x9ec] ss:$16 sps:$4 sm:$0xff]   ;;  %v9424_v2 = vld [vmem:[%s11895_s2 + $0x9e0] ss:$16 sps:$4 sm:$0xff]  }
 0x29f   : > { %5965 = vmatpush1.bf16.msra.mxu0 %v9354_v3  ;;  %6051 = vmatpush1.bf16.msra.mxu1 %v9357_v4  ;;  %v9427_v3 = vld [vmem:[%s11895_s2 + $0x9e8] ss:$16 sps:$4 sm:$0xff]   ;;  %v9432_v4 = vld [vmem:[%s11895_s2 + $0xa04] ss:$16 sps:$4 sm:$0xff]  }
 0x2a0   : > { %5966 = vmatprep.subr.bf16.mxu0 %v9362_v5  ;;  %6052 = vmatprep.subr.bf16.mxu1 %v9365_v6  ;;  %v9435_v5 = vld [vmem:[%s11895_s2 + $0xa0c] ss:$16 sps:$4 sm:$0xff]   ;;  %v9430_v6 = vld [vmem:[%s11895_s2 + $0xa00] ss:$16 sps:$4 sm:$0xff]  }
 0x2a1   : > { %v11621_v42 = vpop.f32.mrb[20].mxu0  ;;  %v11623_v16 = vpop.f32.mrb[20].mxu1 }
 0x2a2   : > { %v11625_v17 = vpop.f32.mrb[21].mxu0  ;;  %v11627_v20 = vpop.f32.mrb[21].mxu1 }
 0x2a3   : > { %5967 = vmatpush1.bf16.msra.mxu0 %v9360_v12  ;;  %6053 = vmatpush1.bf16.msra.mxu1 %v9363_v13  ;;  %v4038_v22 = vpop.f32.mrb[22].mxu0  ;;  %v4124_v23 = vpop.f32.mrb[22].mxu1  ;;  %v9438_v12 = vld [vmem:[%s11895_s2 + $0xa24] ss:$16 sps:$4 sm:$0xff]   ;;  %v9441_v13 = vld [vmem:[%s11895_s2 + $0xa2c] ss:$16 sps:$4 sm:$0xff]  }
 0x2a4   : > { %4133 = vst [vmem:[#allocation3 + $0x20] sm:$0x1] %v4038_v22  ;;  %4135 = vst [vmem:[#allocation3 + $0x30] sm:$0x1] %v4124_v23  ;;  %5979 = vmatprep.subr.bf16.mxu0 %v9371_v15  ;;  %6065 = vmatprep.subr.bf16.mxu1 %v9374_v24  ;;  %v4040_v27 = vpop.f32.mrb[23].mxu0  ;;  %v4126_v28 = vpop.f32.mrb[23].mxu1 }
 0x2a5   : > { %4134 = vst [vmem:[#allocation3 + $0x28] sm:$0x1] %v4040_v27  ;;  %4136 = vst [vmem:[#allocation3 + $0x38] sm:$0x1] %v4126_v28  ;;  %v9436_v15 = vld [vmem:[%s11895_s2 + $0xa20] ss:$16 sps:$4 sm:$0xff]  }
 0x2a6   : > { %5969 = vmatmul.mubr.bf16.vlgmr.msra.gmra.mrb[32].mxu0 %v5568_v21  ;;  %6055 = vmatmul.mubr.bf16.vlgmr.msra.gmra.mrb[32].mxu1 %v5568_v21  ;;  %v9439_v24 = vld [vmem:[%s11895_s2 + $0xa28] ss:$16 sps:$4 sm:$0xff]   ;;  %v9444_v21 = vld [vmem:[%s11895_s2 + $0xa44] ss:$16 sps:$4 sm:$0xff]   ;;  %v9447_v22 = vld [vmem:[%s11895_s2 + $0xa4c] ss:$16 sps:$4 sm:$0xff]  }
 0x2a7   : > { %5980 = vmatpush1.bf16.msra.mxu0 %v9369_v43  ;;  %6066 = vmatpush1.bf16.msra.mxu1 %v9372_v25  ;;  %v9442_v23 = vld [vmem:[%s11895_s2 + $0xa40] ss:$16 sps:$4 sm:$0xff]   ;;  %v9445_v43 = vld [vmem:[%s11895_s2 + $0xa48] ss:$16 sps:$4 sm:$0xff]   ;;  %v9450_v25 = vld [vmem:[%s11895_s2 + $0xa64] ss:$16 sps:$4 sm:$0xff]  }
 0x2a8   : > { %5981 = vmatprep.subr.bf16.mxu0 %v9377_v29  ;;  %6067 = vmatprep.subr.bf16.mxu1 %v9380_v30  ;;  %v9453_v27 = vld [vmem:[%s11895_s2 + $0xa6c] ss:$16 sps:$4 sm:$0xff]   ;;  %v9448_v28 = vld [vmem:[%s11895_s2 + $0xa60] ss:$16 sps:$4 sm:$0xff]   ;;  %v9451_v29 = vld [vmem:[%s11895_s2 + $0xa68] ss:$16 sps:$4 sm:$0xff]  }
 0x2a9   : > { %6011 = vmatprep.mubr.bf16.mxu0 %v9504_v14  ;;  %6097 = vmatprep.mubr.bf16.mxu1 %v9504_v14  ;;  %v9456_v30 = vld [vmem:[%s11895_s2 + $0xa84] ss:$16 sps:$4 sm:$0xff]  }
 0x2ab   : > { %5982 = vmatpush1.bf16.msra.mxu0 %v9375_v31  ;;  %6068 = vmatpush1.bf16.msra.mxu1 %v9378_v46  ;;  %v9459_v31 = vld [vmem:[%s11895_s2 + $0xa8c] ss:$16 sps:$4 sm:$0xff]   ;;  %v9454_v46 = vld [vmem:[%s11895_s2 + $0xa80] ss:$16 sps:$4 sm:$0xff]  }
 0x2ac   : > { %6589 = vmatprep.subr.bf16.mxu0 %v9383_v26  ;;  %6675 = vmatprep.subr.bf16.mxu1 %v9386_v32  ;;  %v9457_v26 = vld [vmem:[%s11895_s2 + $0xa88] ss:$16 sps:$4 sm:$0xff]   ;;  %v9462_v32 = vld [vmem:[%s11895_s2 + $0xaa4] ss:$16 sps:$4 sm:$0xff]  }
 0x2b2   : > { %8130 = vmatmul.mubr.msk.bf16.vlgmr.msra.gmra.mrb[32].mxu0 %vm670_vm0, %v5570_v7  ;;  %8131 = vmatmul.mubr.msk.bf16.vlgmr.msra.gmra.mrb[32].mxu1 %vm670_vm0, %v5570_v7  ;;  %v9463_v7 = vld [vmem:[%s11895_s2 + $0xaa8] ss:$16 sps:$4 sm:$0xff]  }
 0x2b3   : > { %6590 = vmatpush1.bf16.msra.mxu0 %v9381_v34  ;;  %6676 = vmatpush1.bf16.msra.mxu1 %v9384_v36  ;;  %v9468_v34 = vld [vmem:[%s11895_s2 + $0xac4] ss:$16 sps:$4 sm:$0xff]   ;;  %v9471_v36 = vld [vmem:[%s11895_s2 + $0xacc] ss:$16 sps:$4 sm:$0xff]  }
 0x2b4   : > { %6591 = vmatprep.subr.bf16.mxu0 %v9390_v37  ;;  %6677 = vmatprep.subr.bf16.mxu1 %v9393_v38  ;;  %v9466_v37 = vld [vmem:[%s11895_s2 + $0xac0] ss:$16 sps:$4 sm:$0xff]   ;;  %v9469_v38 = vld [vmem:[%s11895_s2 + $0xac8] ss:$16 sps:$4 sm:$0xff]  }
 0x2b5   : > { %6621 = vmatprep.mubr.bf16.mxu0 %v6222_v39  ;;  %6707 = vmatprep.mubr.bf16.mxu1 %v6222_v39  ;;  %v9474_v39 = vld [vmem:[%s11895_s2 + $0xae4] ss:$16 sps:$4 sm:$0xff]  }
 0x2b7   : > { %6592 = vmatpush1.bf16.msra.mxu0 %v9388_v40  ;;  %6678 = vmatpush1.bf16.msra.mxu1 %v9391_v45  ;;  %v9477_v40 = vld [vmem:[%s11895_s2 + $0xaec] ss:$16 sps:$4 sm:$0xff]  }
 0x2b8   : > { %6593 = vmatprep.subr.bf16.mxu0 %v9396_v47  ;;  %6679 = vmatprep.subr.bf16.mxu1 %v9399_v49  ;;  %v9478_v45 = vld [vmem:[%s9838_s19] ss:$12 sps:$4 sm:$0x3e]   ;;  %v9475_v49 = vld [vmem:[%s11895_s2 + $0xae8] ss:$16 sps:$4 sm:$0xff]  }
 0x2b9   : > { %v9472_v47 = vld [vmem:[%s11895_s2 + $0xae0] ss:$16 sps:$4 sm:$0xff]  }
 0x2bb   : > { %6594 = vmatpush1.bf16.msra.mxu0 %v9394_v8  ;;  %6680 = vmatpush1.bf16.msra.mxu1 %v9397_v51  ;;  %v6221_v8 = vrot.slane %v9478_v45, 1  ;;  %v9483_v51 = vld [vmem:[%s11895_s2 + $0xb04] ss:$16 sps:$4 sm:$0xff]  }
 0x2bc   : > { %6595 = vmatprep.subr.bf16.mxu0 %v9402_v48  ;;  %6681 = vmatprep.subr.bf16.mxu1 %v9405_v53  ;;  %v9486_v48 = vld [vmem:[%s11895_s2 + $0xb0c] ss:$16 sps:$4 sm:$0xff]  }
 0x2bf   : > { %6596 = vmatpush1.bf16.msra.mxu0 %v9400_v54  ;;  %6682 = vmatpush1.bf16.msra.mxu1 %v9403_v55  ;;  %v9481_v55 = vld [vmem:[%s11895_s2 + $0xb00] ss:$16 sps:$4 sm:$0xff]  }
 0x2c0   : > { %6597 = vmatprep.subr.bf16.mxu0 %v9408_v56  ;;  %6683 = vmatprep.subr.bf16.mxu1 %v9411_v35  ;;  %v9484_v56 = vld [vmem:[%s11895_s2 + $0xb08] ss:$16 sps:$4 sm:$0xff]  }
 0x2c3   : > { %6598 = vmatpush1.bf16.msra.mxu0 %v9406_v57  ;;  %6684 = vmatpush1.bf16.msra.mxu1 %v9409_v59 }
 0x2c4   : > { %6599 = vmatprep.subr.bf16.mxu0 %v9414_v9  ;;  %6685 = vmatprep.subr.bf16.mxu1 %v9417_v10  ;;  %v9489_v10 = vld [vmem:[%s11895_s2 + $0xb24] ss:$16 sps:$4 sm:$0xff]  }
 0x2c7   : > { %6600 = vmatpush1.bf16.msra.mxu0 %v9412_v60  ;;  %6686 = vmatpush1.bf16.msra.mxu1 %v9415_v61  ;;  %v9492_v60 = vld [vmem:[%s11895_s2 + $0xb2c] ss:$16 sps:$4 sm:$0xff]  }
 0x2c8   : > { %6601 = vmatprep.subr.bf16.mxu0 %v9420_v18  ;;  %6687 = vmatprep.subr.bf16.mxu1 %v9423_v19 }
 0x2cb   : > { %6602 = vmatpush1.bf16.msra.mxu0 %v9418_v62  ;;  %6688 = vmatpush1.bf16.msra.mxu1 %v9421_v63 }
 0x2cc   : > { %6603 = vmatprep.subr.bf16.mxu0 %v9426_v0  ;;  %6689 = vmatprep.subr.bf16.mxu1 %v9429_v1 }
 0x2cf   : > { %6604 = vmatpush1.bf16.msra.mxu0 %v9424_v2  ;;  %6690 = vmatpush1.bf16.msra.mxu1 %v9427_v3  ;;  %v4789_v2 = vld [vmem:[#allocation3 + $0x28] sm:$0x1] }
 0x2d0   : > { %6605 = vmatprep.subr.bf16.mxu0 %v9432_v4  ;;  %6691 = vmatprep.subr.bf16.mxu1 %v9435_v5  ;;  %v4791_v4 = vld [vmem:[#allocation3 + $0x38] sm:$0x1] }
 0x2d3   : > { %6606 = vmatpush1.bf16.msra.mxu0 %v9430_v6  ;;  %6692 = vmatpush1.bf16.msra.mxu1 %v9433_v11  ;;  %v9493_v11 = vld [vmem:[%s9838_s19 + $0x8] ss:$12 sps:$4 sm:$0x3e]  }
 0x2d4   : > { %6607 = vmatprep.subr.bf16.mxu0 %v9438_v12  ;;  %6693 = vmatprep.subr.bf16.mxu1 %v9441_v13  ;;  %v6223_v12 = vrot.slane %v9493_v11, 1 }
 0x2d7   : > { %6608 = vmatpush1.bf16.msra.mxu0 %v9436_v15  ;;  %6694 = vmatpush1.bf16.msra.mxu1 %v9439_v24 }
 0x2d8   : > { %6609 = vmatprep.subr.bf16.mxu0 %v9444_v21  ;;  %6695 = vmatprep.subr.bf16.mxu1 %v9447_v22 }
 0x2db   : > { %6610 = vmatpush1.bf16.msra.mxu0 %v9442_v23  ;;  %6696 = vmatpush1.bf16.msra.mxu1 %v9445_v43 }
 0x2dc   : > { %6611 = vmatprep.subr.bf16.mxu0 %v9450_v25  ;;  %6697 = vmatprep.subr.bf16.mxu1 %v9453_v27 }
 0x2df   : > { %6612 = vmatpush1.bf16.msra.mxu0 %v9448_v28  ;;  %6698 = vmatpush1.bf16.msra.mxu1 %v9451_v29 }
 0x2e0   : > { %6613 = vmatprep.subr.bf16.mxu0 %v9456_v30  ;;  %6699 = vmatprep.subr.bf16.mxu1 %v9459_v31 }
 0x2e3   : > { %6614 = vmatpush1.bf16.msra.mxu0 %v9454_v46  ;;  %6700 = vmatpush1.bf16.msra.mxu1 %v9457_v26 }
 0x2e4   : > { %6615 = vmatprep.subr.bf16.mxu0 %v9462_v32  ;;  %6701 = vmatprep.subr.bf16.mxu1 %v9465_v33 }
 0x2e7   : > { %6616 = vmatpush1.bf16.msra.mxu0 %v9460_v50  ;;  %6702 = vmatpush1.bf16.msra.mxu1 %v9463_v7 }
 0x2e8   : > { %6617 = vmatprep.subr.bf16.mxu0 %v9468_v34  ;;  %6703 = vmatprep.subr.bf16.mxu1 %v9471_v36 }
 0x2eb   : > { %6618 = vmatpush1.bf16.msra.mxu0 %v9466_v37  ;;  %6704 = vmatpush1.bf16.msra.mxu1 %v9469_v38 }
 0x2ec   : > { %6619 = vmatprep.subr.bf16.mxu0 %v9474_v39  ;;  %6705 = vmatprep.subr.bf16.mxu1 %v9477_v40 }
 0x2ed   : > { %v4689_v53 = vpop.f32.mrb[24].mxu0  ;;  %v4775_v54 = vpop.f32.mrb[24].mxu1 }
 0x2ee   : > { %v4792_v35 = vadd.f32 %v4689_v53, %v11621_v42  ;;  %v4794_v57 = vadd.f32 %v4775_v54, %v11623_v16  ;;  %v4691_v59 = vpop.f32.mrb[25].mxu0  ;;  %v4777_v9 = vpop.f32.mrb[25].mxu1  ;;  %v4788_v42 = vld [vmem:[#allocation3 + $0x20] sm:$0x1]  ;;  %v4790_v16 = vld [vmem:[#allocation3 + $0x30] sm:$0x1] }
 0x2ef   : > { %6620 = vmatpush1.bf16.msra.mxu0 %v9472_v47  ;;  %6706 = vmatpush1.bf16.msra.mxu1 %v9475_v49  ;;  %v4793_v61 = vadd.f32 %v4691_v59, %v11625_v17  ;;  %v4795_v18 = vadd.f32 %v4777_v9, %v11627_v20  ;;  %v4693_v19 = vpop.f32.mrb[26].mxu0  ;;  %v4779_v62 = vpop.f32.mrb[26].mxu1  ;;  %v9487_v17 = vld [vmem:[%s11895_s2 + $0xb20] ss:$16 sps:$4 sm:$0xff]   ;;  %v9490_v20 = vld [vmem:[%s11895_s2 + $0xb28] ss:$16 sps:$4 sm:$0xff]  }
 0x2f0   : > { %v4796_v63 = vadd.f32 %v4788_v42, %v4693_v19  ;;  %v4798_v0 = vadd.f32 %v4790_v16, %v4779_v62  ;;  %6632 = vmatprep.subr.bf16.mxu0 %v9483_v51  ;;  %6718 = vmatprep.subr.bf16.mxu1 %v9486_v48  ;;  %v4695_v1 = vpop.f32.mrb[27].mxu0  ;;  %v4781_v3 = vpop.f32.mrb[27].mxu1  ;;  %v6813_v19 = vld [vmem:[%s11896_s3] sm:$0x3] }
 0x2f1   : > { %v4797_v5 = vadd.f32 %v4789_v2, %v4695_v1  ;;  %v4799_v6 = vadd.f32 %v4791_v4, %v4781_v3 }
 0x2f2   : > { %4804 = vst [vmem:[#allocation3 + $0x20] sm:$0x1] %v4796_v63  ;;  %4806 = vst [vmem:[#allocation3 + $0x30] sm:$0x1] %v4798_v0  ;;  %6622 = vmatmul.mubr.bf16.vlgmr.msra.gmra.mrb[36].mxu0 %v6221_v8  ;;  %6708 = vmatmul.mubr.bf16.vlgmr.msra.gmra.mrb[36].mxu1 %v6221_v8 }
 0x2f3   : > { %4805 = vst [vmem:[#allocation3 + $0x28] sm:$0x1] %v4797_v5  ;;  %4807 = vst [vmem:[#allocation3 + $0x38] sm:$0x1] %v4799_v6  ;;  %6633 = vmatpush1.bf16.msra.mxu0 %v9481_v55  ;;  %6719 = vmatpush1.bf16.msra.mxu1 %v9484_v56 }
 0x2f4   : > { %6634 = vmatprep.subr.bf16.mxu0 %v9489_v10  ;;  %6720 = vmatprep.subr.bf16.mxu1 %v9492_v60  ;;  %v6815_v10 = vlaneseq }
 0x2f5   : > { %6664 = vmatprep.mubr.bf16.mxu0 %v9504_v14  ;;  %6750 = vmatprep.mubr.bf16.mxu1 %v9504_v14 }
 0x2f6   : > { %v6816_v60 = vshrl.u32 %v6815_v10, 7 }
 0x2f7   : > { %6635 = vmatpush1.bf16.msra.mxu0 %v9487_v17  ;;  %6721 = vmatpush1.bf16.msra.mxu1 %v9490_v20 }
 0x2f9   : > { %v5459_v28 = vld [vmem:[#allocation3 + $0x20] sm:$0x1]  ;;  %v5461_v14 = vld [vmem:[#allocation3 + $0x30] sm:$0x1] }
 0x2fa   : > { %v5460_v26 = vld [vmem:[#allocation3 + $0x28] sm:$0x1]  ;;  %v5462_v33 = vld [vmem:[#allocation3 + $0x38] sm:$0x1] }
 0x2fe   : > { %8279 = vmatmul.mubr.msk.bf16.vlgmr.msra.gmra.mrb[36].mxu0 %vm670_vm0, %v6223_v12  ;;  %8280 = vmatmul.mubr.msk.bf16.vlgmr.msra.gmra.mrb[36].mxu1 %vm670_vm0, %v6223_v12 }
 0x339   : > { %v5360_v13 = vpop.f32.mrb[28].mxu0  ;;  %v5446_v15 = vpop.f32.mrb[28].mxu1 }
 0x33a   : > { %v5463_v24 = vadd.f32 %v5360_v13, %v4792_v35  ;;  %v5465_v21 = vadd.f32 %v5446_v15, %v4794_v57  ;;  %v5362_v22 = vpop.f32.mrb[29].mxu0  ;;  %v5448_v23 = vpop.f32.mrb[29].mxu1 }
 0x33b   : > { %v5464_v43 = vadd.f32 %v5362_v22, %v4793_v61  ;;  %v5466_v25 = vadd.f32 %v5448_v23, %v4795_v18  ;;  %v5364_v27 = vpop.f32.mrb[30].mxu0  ;;  %v5450_v29 = vpop.f32.mrb[30].mxu1  ;;  %v6817_v61 = vsub.s32 0, %v6816_v60  ;;  %v6821_v18 = vsub.s32 1, %v6816_v60 }
 0x33c   : > { %v5467_v30 = vadd.f32 %v5459_v28, %v5364_v27  ;;  %v5469_v31 = vadd.f32 %v5461_v14, %v5450_v29  ;;  %v5366_v46 = vpop.f32.mrb[31].mxu0  ;;  %v5452_v32 = vpop.f32.mrb[31].mxu1 }
 0x33d   : > { %v5468_v50 = vadd.f32 %v5460_v26, %v5366_v46  ;;  %v5470_v7 = vadd.f32 %v5462_v33, %v5452_v32  ;;  %v6818_v2 = vrot.slane %v6813_v19, %v6817_v61  ;;  %v6822_v5 = vrot.slane %v6813_v19, %v6821_v18  ;;  %v6789_v26 = vld [vmem:[#allocation2 + $0x20] sm:$0x1]  ;;  %v6791_v32 = vld [vmem:[#allocation2 + $0x30] sm:$0x1] }
 0x33e   : > { %5475 = vst [vmem:[#allocation3 + $0x20] sm:$0x1] %v5467_v30  ;;  %5477 = vst [vmem:[#allocation3 + $0x30] sm:$0x1] %v5469_v31 }
 0x33f   : > { %5476 = vst [vmem:[#allocation3 + $0x28] sm:$0x1] %v5468_v50  ;;  %5478 = vst [vmem:[#allocation3 + $0x38] sm:$0x1] %v5470_v7  ;;  %v6792_v7 = vld [vmem:[#allocation2 + $0x38] sm:$0x1] }
 0x345   : > { %v6112_v8 = vld [vmem:[#allocation3 + $0x20] sm:$0x1]  ;;  %v6114_v48 = vld [vmem:[#allocation3 + $0x30] sm:$0x1] }
 0x346   : > { %v6113_v56 = vld [vmem:[#allocation3 + $0x28] sm:$0x1]  ;;  %v6115_v57 = vld [vmem:[#allocation3 + $0x38] sm:$0x1] }
 0x385   : > { %v6013_v34 = vpop.f32.mrb[32].mxu0  ;;  %v6099_v36 = vpop.f32.mrb[32].mxu1 }
 0x386   : > { %v6116_v37 = vadd.f32 %v6013_v34, %v5463_v24  ;;  %v6118_v38 = vadd.f32 %v6099_v36, %v5465_v21  ;;  %v6015_v39 = vpop.f32.mrb[33].mxu0  ;;  %v6101_v40 = vpop.f32.mrb[33].mxu1 }
 0x387   : > { %v6117_v45 = vadd.f32 %v6015_v39, %v5464_v43  ;;  %v6119_v47 = vadd.f32 %v6101_v40, %v5466_v25  ;;  %v6017_v49 = vpop.f32.mrb[34].mxu0  ;;  %v6103_v51 = vpop.f32.mrb[34].mxu1 }
 0x388   : > { %v6120_v53 = vadd.f32 %v6112_v8, %v6017_v49  ;;  %v6122_v54 = vadd.f32 %v6114_v48, %v6103_v51  ;;  %v6019_v55 = vpop.f32.mrb[35].mxu0  ;;  %v6105_v35 = vpop.f32.mrb[35].mxu1 }
 0x389   : > { %v6121_v59 = vadd.f32 %v6113_v56, %v6019_v55  ;;  %v6123_v9 = vadd.f32 %v6115_v57, %v6105_v35 }
 0x38a   : > { %6128 = vst [vmem:[#allocation3 + $0x20] sm:$0x1] %v6120_v53  ;;  %6130 = vst [vmem:[#allocation3 + $0x30] sm:$0x1] %v6122_v54  ;;  %v6856_v53 = vld [vmem:[%s217_s25 + $0x8] sm:$0x11] }
 0x38b   : > { %6129 = vst [vmem:[#allocation3 + $0x28] sm:$0x1] %v6121_v59  ;;  %6131 = vst [vmem:[#allocation3 + $0x38] sm:$0x1] %v6123_v9 }
 0x391   : > { %v6765_v17 = vld [vmem:[#allocation3 + $0x20] sm:$0x1]  ;;  %v6767_v11 = vld [vmem:[#allocation3 + $0x30] sm:$0x1] }
 0x392   : > { %v6766_v22 = vld [vmem:[#allocation3 + $0x28] sm:$0x1]  ;;  %v6768_v43 = vld [vmem:[#allocation3 + $0x38] sm:$0x1] }
 0x3d1   : > { %v6666_v42 = vpop.f32.mrb[36].mxu0  ;;  %v6752_v62 = vpop.f32.mrb[36].mxu1 }
 0x3d2   : > { %v6769_v16 = vadd.f32 %v6666_v42, %v6116_v37  ;;  %v6771_v63 = vadd.f32 %v6752_v62, %v6118_v38  ;;  %v6668_v0 = vpop.f32.mrb[37].mxu0  ;;  %v6754_v1 = vpop.f32.mrb[37].mxu1 }
 0x3d3   : > { %v6770_v3 = vadd.f32 %v6668_v0, %v6117_v45  ;;  %v6772_v4 = vadd.f32 %v6754_v1, %v6119_v47  ;;  %v6670_v6 = vpop.f32.mrb[38].mxu0  ;;  %v6756_v20 = vpop.f32.mrb[38].mxu1 }
 0x3d4   : > { %v6801_v12 = vmax.f32 %v11394_v41, %v6769_v16  ;;  %v6803_v13 = vmax.f32 %v11397_v44, %v6771_v63  ;;  %v6773_v15 = vadd.f32 %v6765_v17, %v6670_v6  ;;  %v6775_v24 = vadd.f32 %v6767_v11, %v6756_v20  ;;  %v6672_v21 = vpop.f32.mrb[39].mxu0  ;;  %v6758_v23 = vpop.f32.mrb[39].mxu1 }
 0x3d5   : > { %v6802_v25 = vmax.f32 %v11406_v52, %v6770_v3  ;;  %v6804_v27 = vmax.f32 %v11409_v58, %v6772_v4  ;;  %v6774_v28 = vadd.f32 %v6766_v22, %v6672_v21  ;;  %v6776_v29 = vadd.f32 %v6768_v43, %v6758_v23  ;;  %v6790_v52 = vld [vmem:[#allocation2 + $0x28] sm:$0x1] }
 0x3d6   : > { %v6809_v14 = vmax.f32 %v6801_v12, %v6803_v13  ;;  %6781 = vst [vmem:[#allocation3 + $0x20] sm:$0x1] %v6773_v15  ;;  %6783 = vst [vmem:[#allocation3 + $0x30] sm:$0x1] %v6775_v24 }
 0x3d7   : > { %v6810_v30 = vmax.f32 %v6802_v25, %v6804_v27  ;;  %6782 = vst [vmem:[#allocation3 + $0x28] sm:$0x1] %v6774_v28  ;;  %6784 = vst [vmem:[#allocation3 + $0x38] sm:$0x1] %v6776_v29 }
 0x3d8   : > { %v6825_v41 = vadd.f32 %v6818_v2, %v6809_v14 }
 0x3d9   : > { %v6826_v44 = vadd.f32 %v6822_v5, %v6810_v30 }
 0x3da   : > { %v6829_v31 = vmax.f32 %v6825_v41, 0.0 }
 0x3db   : > { %v6830_v46 = vmax.f32 %v6826_v44, 0.0 }
 0x3dd   : > { %v8286_v58 = vpack.c.bf16 %v6830_v46, %v6829_v31  ;;  %v6797_v33 = vld [vmem:[#allocation3 + $0x20] sm:$0x1]  ;;  %v6799_v50 = vld [vmem:[#allocation3 + $0x30] sm:$0x1] }
 0x3de   : > { %v6805_v34 = vmax.f32 %v6789_v26, %v6797_v33  ;;  %v6807_v36 = vmax.f32 %v6791_v32, %v6799_v50  ;;  %v6798_v37 = vld [vmem:[#allocation3 + $0x28] sm:$0x1]  ;;  %v6800_v38 = vld [vmem:[#allocation3 + $0x38] sm:$0x1] }
 0x3df   : > { %6848 = vst.msk [vmem:[%s217_s25] sm:$0xff] %vm6847_vm3, %v8286_v58  ;;  %v6806_v39 = vmax.f32 %v6790_v52, %v6798_v37  ;;  %v6808_v40 = vmax.f32 %v6792_v7, %v6800_v38 }
 0x3e0   : > { %v6811_v45 = vmax.f32 %v6805_v34, %v6807_v36 }
 0x3e1   : > { %v6812_v47 = vmax.f32 %v6806_v39, %v6808_v40 }
 0x3e2   : > { %v6827_v49 = vadd.f32 %v6818_v2, %v6811_v45 }
 0x3e3   : > { %v6828_v8 = vadd.f32 %v6822_v5, %v6812_v47 }
 0x3e4   : > { %v6831_v51 = vmax.f32 %v6827_v49, 0.0 }
 0x3e5   : > { %v6832_v48 = vmax.f32 %v6828_v8, 0.0 }
 0x3e7   : > { %v8287_v54 = vpack.c.bf16 %v6832_v48, %v6831_v51 }
 0x3e9   : > { %v6857_v55 = vsel %vm6855_vm10, %v8287_v54, %v6856_v53 }
 0x3ea   : > { %6858 = vst [vmem:[%s217_s25 + $0x8] sm:$0x11] %v6857_v55 }
 0x3eb PF: > { %s14_s15 = sadd.s32 1, %s9502_s15  }
 0x3ec   : > { %p11_p4 = scmp.ge.s32.totalorder %s14_s15, 4  }
 0x3ee   :  { %13 = sbr.rel (!%p11_p4) target bundleno = 1 (0x1), region = 73 }

// kernel: cnn_forward.5
= control target key start
LH: loop header
LB: loop body
LE: loop exit
PB: predicated region body
PF: predicated region fallthrough
CT: control target
= control target key end

     0   :  { %vm1517_vm0 = vmmov 0   ;;  %vm858_vm1 = vcmask 261120   ;;  %s1859_s1 = inlined_call_operand.vmem [shape: bf16[1568,128], index: 1, kind: input, shape index: {}]   ;;  %s1860_s0 = inlined_call_operand.vmem [shape: bf16[8,1568], index: 0, kind: input, shape index: {}]   ;;  %s1861_s2 = inlined_call_operand.vmem [shape: f32[1,128], index: 2, kind: input, shape index: {}]   ;;  %s1862_s3 = inlined_call_operand.vmem [shape: f32[8,128], index: 3, kind: output, shape index: {}]  }
   0x1   :  { %v1405_v0 = vld [vmem:[%s1859_s1 + $0x40] sm:$0xff]   ;;  %v1409_v4 = vld [vmem:[%s1859_s1 + $0x48] sm:$0xff]   ;;  %v1413_v8 = vld [vmem:[%s1859_s1 + $0x50] sm:$0xff]  }
   0x2   :  { %v1406_v1 = vld [vmem:[%s1859_s1] sm:$0xff]   ;;  %1260 = vmatprep.subr.bf16.mxu0 %v1405_v0  ;;  %v1410_v5 = vld [vmem:[%s1859_s1 + $0x8] sm:$0xff]   ;;  %v1414_v9 = vld [vmem:[%s1859_s1 + $0x10] sm:$0xff]  }
   0x3   :  { %v1407_v2 = vld [vmem:[%s1859_s1 + $0xc0] sm:$0xff]   ;;  %1261 = vmatpush3.bf16.msra.mxu0 %v1406_v1  ;;  %v1411_v6 = vld [vmem:[%s1859_s1 + $0xc8] sm:$0xff]   ;;  %v1415_v10 = vld [vmem:[%s1859_s1 + $0xd0] sm:$0xff]  }
   0x4   :  { %v1408_v3 = vld [vmem:[%s1859_s1 + $0x80] sm:$0xff]   ;;  %1282 = vmatprep.subr.bf16.mxu1 %v1407_v2  ;;  %1262 = vmatprep.subr.bf16.mxu0 %v1409_v4  ;;  %v1412_v7 = vld [vmem:[%s1859_s1 + $0x88] sm:$0xff]   ;;  %v1416_v11 = vld [vmem:[%s1859_s1 + $0x90] sm:$0xff]  }
   0x5   :  { %1283 = vmatpush3.bf16.msra.mxu1 %v1408_v3  ;;  %v1417_v12 = vld [vmem:[%s1859_s1 + $0x58] sm:$0xff]   ;;  %v1421_v16 = vld [vmem:[%s1859_s1 + $0x60] sm:$0xff]   ;;  %v1425_v20 = vld [vmem:[%s1859_s1 + $0x68] sm:$0xff]  }
   0x6   :  { %1284 = vmatprep.subr.bf16.mxu1 %v1411_v6  ;;  %v1418_v13 = vld [vmem:[%s1859_s1 + $0x18] sm:$0xff]   ;;  %v1422_v17 = vld [vmem:[%s1859_s1 + $0x20] sm:$0xff]   ;;  %v1426_v21 = vld [vmem:[%s1859_s1 + $0x28] sm:$0xff]  }
   0x7   :  { %1263 = vmatpush3.bf16.msra.mxu0 %v1410_v5  ;;  %v1419_v14 = vld [vmem:[%s1859_s1 + $0xd8] sm:$0xff]   ;;  %v1423_v18 = vld [vmem:[%s1859_s1 + $0xe0] sm:$0xff]   ;;  %v1427_v22 = vld [vmem:[%s1859_s1 + $0xe8] sm:$0xff]  }
   0x8   :  { %1264 = vmatprep.subr.bf16.mxu0 %v1413_v8  ;;  %v1420_v15 = vld [vmem:[%s1859_s1 + $0x98] sm:$0xff]   ;;  %v1424_v19 = vld [vmem:[%s1859_s1 + $0xa0] sm:$0xff]   ;;  %v1428_v23 = vld [vmem:[%s1859_s1 + $0xa8] sm:$0xff]  }
   0x9   :  { %1285 = vmatpush3.bf16.msra.mxu1 %v1412_v7  ;;  %v1429_v24 = vld [vmem:[%s1859_s1 + $0x70] sm:$0xff]   ;;  %v1433_v28 = vld [vmem:[%s1859_s1 + $0x78] sm:$0xff]   ;;  %v15_v32 = vld [vmem:[%s1860_s0] sm:$0xff] }
   0xa   :  { %1286 = vmatprep.subr.bf16.mxu1 %v1415_v10  ;;  %v1430_v25 = vld [vmem:[%s1859_s1 + $0x30] sm:$0xff]   ;;  %v1434_v29 = vld [vmem:[%s1859_s1 + $0x38] sm:$0xff]   ;;  %v1148_v33 = vcombine.low %v15_v32, %v15_v32  ;;  %v1149_v34 = vcombine.high %v15_v32, %v15_v32  ;;  %v1439_v35 = vld [vmem:[%s1859_s1 + $0x140] sm:$0xff]  }
   0xb   :  { %1265 = vmatpush3.bf16.msra.mxu0 %v1414_v9  ;;  %v1431_v26 = vld [vmem:[%s1859_s1 + $0xf0] sm:$0xff]   ;;  %v1435_v30 = vld [vmem:[%s1859_s1 + $0xf8] sm:$0xff]   ;;  %v16_v36 = vld [vmem:[%s1860_s0 + $0x8] sm:$0xff] }
   0xc   :  { %1266 = vmatprep.subr.bf16.mxu0 %v1417_v12  ;;  %v1432_v27 = vld [vmem:[%s1859_s1 + $0xb0] sm:$0xff]   ;;  %v1436_v31 = vld [vmem:[%s1859_s1 + $0xb8] sm:$0xff]   ;;  %v1150_v37 = vcombine.low %v16_v36, %v16_v36  ;;  %v1151_v38 = vcombine.high %v16_v36, %v16_v36  ;;  %v1442_v39 = vld [vmem:[%s1859_s1 + $0x100] sm:$0xff]   ;;  %894 = vmatprep.mubr.bf16.mxu0 %v1149_v34 }
   0xd   :  { %1287 = vmatpush3.bf16.msra.mxu1 %v1416_v11  ;;  %v1443_v40 = vld [vmem:[%s1859_s1 + $0x1c0] sm:$0xff]   ;;  %v1445_v42 = vld [vmem:[%s1859_s1 + $0x148] sm:$0xff]   ;;  %v1449_v46 = vld [vmem:[%s1859_s1 + $0x150] sm:$0xff]  }
   0xe   :  { %1288 = vmatprep.subr.bf16.mxu1 %v1419_v14  ;;  %934 = vmatprep.mubr.bf16.mxu1 %v1151_v38  ;;  %v1444_v41 = vld [vmem:[%s1859_s1 + $0x180] sm:$0xff]   ;;  %v1446_v43 = vld [vmem:[%s1859_s1 + $0x108] sm:$0xff]   ;;  %v1450_v47 = vld [vmem:[%s1859_s1 + $0x110] sm:$0xff]  }
   0xf   :  { %1267 = vmatpush3.bf16.msra.mxu0 %v1418_v13  ;;  %v1447_v44 = vld [vmem:[%s1859_s1 + $0x1c8] sm:$0xff]   ;;  %v1451_v48 = vld [vmem:[%s1859_s1 + $0x1d0] sm:$0xff]   ;;  %v1453_v50 = vld [vmem:[%s1859_s1 + $0x158] sm:$0xff]  }
  0x10   :  { %1268 = vmatprep.subr.bf16.mxu0 %v1421_v16  ;;  %v1448_v45 = vld [vmem:[%s1859_s1 + $0x188] sm:$0xff]   ;;  %v1452_v49 = vld [vmem:[%s1859_s1 + $0x190] sm:$0xff]   ;;  %v1454_v51 = vld [vmem:[%s1859_s1 + $0x118] sm:$0xff]  }
  0x11   :  { %1289 = vmatpush3.bf16.msra.mxu1 %v1420_v15  ;;  %v1455_v52 = vld [vmem:[%s1859_s1 + $0x1d8] sm:$0xff]   ;;  %v1457_v54 = vld [vmem:[%s1859_s1 + $0x160] sm:$0xff]   ;;  %v1461_v58 = vld [vmem:[%s1859_s1 + $0x168] sm:$0xff]  }
  0x12   :  { %1290 = vmatprep.subr.bf16.mxu1 %v1423_v18  ;;  %v1456_v53 = vld [vmem:[%s1859_s1 + $0x198] sm:$0xff]   ;;  %v1458_v55 = vld [vmem:[%s1859_s1 + $0x120] sm:$0xff]   ;;  %v1462_v59 = vld [vmem:[%s1859_s1 + $0x128] sm:$0xff]  }
  0x13   :  { %1269 = vmatpush3.bf16.msra.mxu0 %v1422_v17  ;;  %v1459_v56 = vld [vmem:[%s1859_s1 + $0x1e0] sm:$0xff]   ;;  %v1463_v60 = vld [vmem:[%s1859_s1 + $0x1e8] sm:$0xff]   ;;  %v1465_v62 = vld [vmem:[%s1859_s1 + $0x170] sm:$0xff]  }
  0x14   :  { %1270 = vmatprep.subr.bf16.mxu0 %v1425_v20  ;;  %v1460_v57 = vld [vmem:[%s1859_s1 + $0x1a0] sm:$0xff]   ;;  %v1464_v61 = vld [vmem:[%s1859_s1 + $0x1a8] sm:$0xff]   ;;  %v1466_v63 = vld [vmem:[%s1859_s1 + $0x130] sm:$0xff]  }
  0x15   :  { %1291 = vmatpush3.bf16.msra.mxu1 %v1424_v19  ;;  %v1467_v0 = vld [vmem:[%s1859_s1 + $0x1f0] sm:$0xff]   ;;  %v1469_v2 = vld [vmem:[%s1859_s1 + $0x178] sm:$0xff]   ;;  %v1475_v9 = vld [vmem:[%s1859_s1 + $0x240] sm:$0xff]  }
  0x16   :  { %1292 = vmatprep.subr.bf16.mxu1 %v1427_v22  ;;  %v1468_v1 = vld [vmem:[%s1859_s1 + $0x1b0] sm:$0xff]   ;;  %v1470_v3 = vld [vmem:[%s1859_s1 + $0x138] sm:$0xff]   ;;  %v1478_v13 = vld [vmem:[%s1859_s1 + $0x200] sm:$0xff]  }
  0x17   :  { %1271 = vmatpush3.bf16.msra.mxu0 %v1426_v21  ;;  %v1471_v4 = vld [vmem:[%s1859_s1 + $0x1f8] sm:$0xff]   ;;  %v17_v6 = vld [vmem:[%s1860_s0 + $0x10] sm:$0xff]  ;;  %v1479_v14 = vld [vmem:[%s1859_s1 + $0x2c0] sm:$0xff]  }
  0x18   :  { %1272 = vmatprep.subr.bf16.mxu0 %v1429_v24  ;;  %v1472_v5 = vld [vmem:[%s1859_s1 + $0x1b8] sm:$0xff]   ;;  %v1152_v7 = vcombine.low %v17_v6, %v17_v6  ;;  %v1153_v8 = vcombine.high %v17_v6, %v17_v6  ;;  %v1480_v15 = vld [vmem:[%s1859_s1 + $0x280] sm:$0xff]   ;;  %v1481_v16 = vld [vmem:[%s1859_s1 + $0x248] sm:$0xff]  }
  0x19   :  { %1293 = vmatpush3.bf16.msra.mxu1 %v1428_v23  ;;  %v18_v10 = vld [vmem:[%s1860_s0 + $0x18] sm:$0xff]  ;;  %v1482_v17 = vld [vmem:[%s1859_s1 + $0x208] sm:$0xff]   ;;  %v1485_v20 = vld [vmem:[%s1859_s1 + $0x250] sm:$0xff]  }
  0x1a   :  { %1294 = vmatprep.subr.bf16.mxu1 %v1431_v26  ;;  %v1154_v11 = vcombine.low %v18_v10, %v18_v10  ;;  %v1155_v12 = vcombine.high %v18_v10, %v18_v10  ;;  %v1483_v18 = vld [vmem:[%s1859_s1 + $0x2c8] sm:$0xff]   ;;  %v1486_v21 = vld [vmem:[%s1859_s1 + $0x210] sm:$0xff]   ;;  %v1489_v24 = vld [vmem:[%s1859_s1 + $0x258] sm:$0xff]  }
  0x1b   :  { %1273 = vmatpush3.bf16.msra.mxu0 %v1430_v25  ;;  %v1484_v19 = vld [vmem:[%s1859_s1 + $0x288] sm:$0xff]   ;;  %v1487_v22 = vld [vmem:[%s1859_s1 + $0x2d0] sm:$0xff]   ;;  %v1490_v25 = vld [vmem:[%s1859_s1 + $0x218] sm:$0xff]  }
  0x1c   :  { %1274 = vmatprep.subr.bf16.mxu0 %v1433_v28  ;;  %v1488_v23 = vld [vmem:[%s1859_s1 + $0x290] sm:$0xff]   ;;  %v1491_v26 = vld [vmem:[%s1859_s1 + $0x2d8] sm:$0xff]   ;;  %v1493_v28 = vld [vmem:[%s1859_s1 + $0x260] sm:$0xff]  }
  0x1d   :  { %1295 = vmatpush3.bf16.msra.mxu1 %v1432_v27  ;;  %v1492_v27 = vld [vmem:[%s1859_s1 + $0x298] sm:$0xff]   ;;  %v1497_v32 = vld [vmem:[%s1859_s1 + $0x268] sm:$0xff]   ;;  %v1501_v36 = vld [vmem:[%s1859_s1 + $0x270] sm:$0xff]  }
  0x1e   :  { %1296 = vmatprep.subr.bf16.mxu1 %v1435_v30  ;;  %v1495_v30 = vld [vmem:[%s1859_s1 + $0x2e0] sm:$0xff]   ;;  %v1499_v34 = vld [vmem:[%s1859_s1 + $0x2e8] sm:$0xff]   ;;  %v1503_v38 = vld [vmem:[%s1859_s1 + $0x2f0] sm:$0xff]  }
  0x1f   :  { %1275 = vmatpush3.bf16.msra.mxu0 %v1434_v29  ;;  %v1494_v29 = vld [vmem:[%s1859_s1 + $0x220] sm:$0xff]  }
  0x20   :  { %1304 = vmatprep.subr.bf16.mxu0 %v1439_v35  ;;  %v1500_v35 = vld [vmem:[%s1859_s1 + $0x2a8] sm:$0xff]  }
  0x21   :  { %1297 = vmatpush3.bf16.msra.mxu1 %v1436_v31  ;;  %v1496_v31 = vld [vmem:[%s1859_s1 + $0x2a0] sm:$0xff]  }
  0x22   :  { %895 = vmatmul.mubr.bf16.vlgmr.msra.gmra.mrb[0].mxu0 %v1148_v33  ;;  %1326 = vmatprep.subr.bf16.mxu1 %v1443_v40  ;;  %v1498_v33 = vld [vmem:[%s1859_s1 + $0x228] sm:$0xff]   ;;  %v1505_v40 = vld [vmem:[%s1859_s1 + $0x278] sm:$0xff]  }
  0x23   :  { %1305 = vmatpush3.bf16.msra.mxu0 %v1442_v39  ;;  %974 = vmatprep.mubr.bf16.mxu0 %v1153_v8  ;;  %v1504_v39 = vld [vmem:[%s1859_s1 + $0x2b0] sm:$0xff]  }
  0x24   :  { %935 = vmatmul.mubr.bf16.vlgmr.msra.gmra.mrb[0].mxu1 %v1150_v37  ;;  %1306 = vmatprep.subr.bf16.mxu0 %v1445_v42  ;;  %v1502_v37 = vld [vmem:[%s1859_s1 + $0x230] sm:$0xff]   ;;  %v1507_v42 = vld [vmem:[%s1859_s1 + $0x2f8] sm:$0xff]  }
  0x25   :  { %1327 = vmatpush3.bf16.msra.mxu1 %v1444_v41  ;;  %1014 = vmatprep.mubr.bf16.mxu1 %v1155_v12  ;;  %v1506_v41 = vld [vmem:[%s1859_s1 + $0x238] sm:$0xff]  }
  0x26   :  { %1328 = vmatprep.subr.bf16.mxu1 %v1447_v44  ;;  %v19_v44 = vld [vmem:[%s1860_s0 + $0x20] sm:$0xff] }
  0x27   :  { %1307 = vmatpush3.bf16.msra.mxu0 %v1446_v43  ;;  %v1508_v43 = vld [vmem:[%s1859_s1 + $0x2b8] sm:$0xff]  }
  0x28   :  { %1308 = vmatprep.subr.bf16.mxu0 %v1449_v46  ;;  %v1156_v46 = vcombine.low %v19_v44, %v19_v44 }
  0x29   :  { %1329 = vmatpush3.bf16.msra.mxu1 %v1448_v45  ;;  %v20_v45 = vld [vmem:[%s1860_s0 + $0x28] sm:$0xff] }
  0x2a   :  { %1330 = vmatprep.subr.bf16.mxu1 %v1451_v48  ;;  %v1158_v48 = vcombine.low %v20_v45, %v20_v45 }
  0x2b   :  { %1309 = vmatpush3.bf16.msra.mxu0 %v1450_v47  ;;  %v1157_v47 = vcombine.high %v19_v44, %v19_v44 }
  0x2c   :  { %1310 = vmatprep.subr.bf16.mxu0 %v1453_v50  ;;  %v1513_v50 = vld [vmem:[%s1859_s1 + $0x300] sm:$0xff]  }
  0x2d   :  { %1331 = vmatpush3.bf16.msra.mxu1 %v1452_v49  ;;  %v1159_v49 = vcombine.high %v20_v45, %v20_v45 }
  0x2e   :  { %1332 = vmatprep.subr.bf16.mxu1 %v1455_v52  ;;  %v1514_v52 = vld [vmem:[%s1859_s1 + $0x308] sm:$0xff]  }
  0x2f   :  { %1311 = vmatpush3.bf16.msra.mxu0 %v1454_v51  ;;  %v1516_v51 = vmov 0.0  }
  0x30   :  { %1312 = vmatprep.subr.bf16.mxu0 %v1457_v54 }
  0x31   :  { %1333 = vmatpush3.bf16.msra.mxu1 %v1456_v53  ;;  %v1515_v53 = vld [vmem:[%s1860_s0 + $0x30] ss:$0 sps:$4 sm:$0xff]  }
  0x32   :  { %1334 = vmatprep.subr.bf16.mxu1 %v1459_v56 }
  0x33   :  { %1313 = vmatpush3.bf16.msra.mxu0 %v1458_v55  ;;  %v1147_v55 = vld [vmem:[%s1861_s2] ss:$0 sm:$0xff] }
  0x34   :  { %1314 = vmatprep.subr.bf16.mxu0 %v1461_v58 }
  0x35   :  { %1335 = vmatpush3.bf16.msra.mxu1 %v1460_v57 }
  0x36   :  { %1336 = vmatprep.subr.bf16.mxu1 %v1463_v60 }
  0x37   :  { %1315 = vmatpush3.bf16.msra.mxu0 %v1462_v59 }
  0x38   :  { %1316 = vmatprep.subr.bf16.mxu0 %v1465_v62 }
  0x39   :  { %1337 = vmatpush3.bf16.msra.mxu1 %v1464_v61 }
  0x3a   :  { %1338 = vmatprep.subr.bf16.mxu1 %v1467_v0 }
  0x3b   :  { %1317 = vmatpush3.bf16.msra.mxu0 %v1466_v63 }
  0x3c   :  { %1318 = vmatprep.subr.bf16.mxu0 %v1469_v2 }
  0x3d   :  { %1339 = vmatpush3.bf16.msra.mxu1 %v1468_v1 }
  0x3e   :  { %1340 = vmatprep.subr.bf16.mxu1 %v1471_v4 }
  0x3f   :  { %1319 = vmatpush3.bf16.msra.mxu0 %v1470_v3 }
  0x40   :  { %1348 = vmatprep.subr.bf16.mxu0 %v1475_v9 }
  0x41   :  { %1341 = vmatpush3.bf16.msra.mxu1 %v1472_v5 }
  0x42   :  { %975 = vmatmul.mubr.bf16.vlgmr.msra.gmra.mrb[4].mxu0 %v1152_v7  ;;  %1370 = vmatprep.subr.bf16.mxu1 %v1479_v14 }
  0x43   :  { %1349 = vmatpush3.bf16.msra.mxu0 %v1478_v13  ;;  %1054 = vmatprep.mubr.bf16.mxu0 %v1157_v47 }
  0x44   :  { %1015 = vmatmul.mubr.bf16.vlgmr.msra.gmra.mrb[4].mxu1 %v1154_v11  ;;  %1350 = vmatprep.subr.bf16.mxu0 %v1481_v16 }
  0x45   :  { %1371 = vmatpush3.bf16.msra.mxu1 %v1480_v15  ;;  %1094 = vmatprep.mubr.bf16.mxu1 %v1159_v49 }
  0x46   :  { %1372 = vmatprep.subr.bf16.mxu1 %v1483_v18 }
  0x47   :  { %1351 = vmatpush3.bf16.msra.mxu0 %v1482_v17 }
  0x48   :  { %1352 = vmatprep.subr.bf16.mxu0 %v1485_v20 }
  0x49   :  { %1373 = vmatpush3.bf16.msra.mxu1 %v1484_v19 }
  0x4a   :  { %1374 = vmatprep.subr.bf16.mxu1 %v1487_v22 }
  0x4b   :  { %1353 = vmatpush3.bf16.msra.mxu0 %v1486_v21 }
  0x4c   :  { %1354 = vmatprep.subr.bf16.mxu0 %v1489_v24 }
  0x4d   :  { %1375 = vmatpush3.bf16.msra.mxu1 %v1488_v23 }
  0x4e   :  { %1376 = vmatprep.subr.bf16.mxu1 %v1491_v26 }
  0x4f   :  { %1355 = vmatpush3.bf16.msra.mxu0 %v1490_v25 }
  0x50   :  { %1356 = vmatprep.subr.bf16.mxu0 %v1493_v28 }
  0x51   :  { %1377 = vmatpush3.bf16.msra.mxu1 %v1492_v27 }
  0x52   :  { %1378 = vmatprep.subr.bf16.mxu1 %v1495_v30 }
  0x53   :  { %1357 = vmatpush3.bf16.msra.mxu0 %v1494_v29 }
  0x54   :  { %1358 = vmatprep.subr.bf16.mxu0 %v1497_v32 }
  0x55   :  { %1379 = vmatpush3.bf16.msra.mxu1 %v1496_v31 }
  0x56   :  { %1380 = vmatprep.subr.bf16.mxu1 %v1499_v34 }
  0x57   :  { %1359 = vmatpush3.bf16.msra.mxu0 %v1498_v33 }
  0x58   :  { %1360 = vmatprep.subr.bf16.mxu0 %v1501_v36 }
  0x59   :  { %1381 = vmatpush3.bf16.msra.mxu1 %v1500_v35 }
  0x5a   :  { %1382 = vmatprep.subr.bf16.mxu1 %v1503_v38 }
  0x5b   :  { %1361 = vmatpush3.bf16.msra.mxu0 %v1502_v37 }
  0x5c   :  { %1362 = vmatprep.subr.bf16.mxu0 %v1505_v40 }
  0x5d   :  { %1383 = vmatpush3.bf16.msra.mxu1 %v1504_v39 }
  0x5e   :  { %1384 = vmatprep.subr.bf16.mxu1 %v1507_v42 }
  0x5f   :  { %1363 = vmatpush3.bf16.msra.mxu0 %v1506_v41 }
  0x60   :  { %1395 = vmatprep.subr.bf16.mxu0 %v1516_v51 }
  0x61   :  { %1385 = vmatpush3.bf16.msra.mxu1 %v1508_v43 }
  0x62   :  { %1055 = vmatmul.mubr.bf16.vlgmr.msra.gmra.mrb[8].mxu0 %v1156_v46 }
  0x63   :  { %1396 = vmatpush3.bf16.msra.mxu0 %v1513_v50  ;;  %1399 = vmatprep.mubr.msk.bf16.mxu0 %vm1517_vm0, %v1516_v51 }
  0x64   :  { %1095 = vmatmul.mubr.bf16.vlgmr.msra.gmra.mrb[8].mxu1 %v1158_v48  ;;  %1397 = vmatprep.subr.bf16.mxu0 %v1516_v51 }
  0x67   :  { %1398 = vmatpush3.bf16.msra.mxu0 %v1514_v52 }
  0x6a   :  { %1400 = vmatmul.mubr.msk.bf16.vlgmr.msra.gmra.mrb[12].mxu0 %vm858_vm1, %v1515_v53 }
  0xf5   :  { %v1276_v54 = vpop.f32.mrb[0].mxu0 }
  0xf6   :  { %v1277_v56 = vpop.f32.mrb[1].mxu0 }
  0xf7   :  { %v1278_v57 = vadd.f32 %v1277_v56, %v1276_v54  ;;  %v1279_v58 = vpop.f32.mrb[2].mxu0  ;;  %v1298_v59 = vpop.f32.mrb[0].mxu1 }
  0xf8   :  { %v1280_v60 = vpop.f32.mrb[3].mxu0  ;;  %v1299_v61 = vpop.f32.mrb[1].mxu1 }
  0xf9   :  { %v897_v62 = vadd.f32 %v1278_v57, %v1147_v55  ;;  %v1300_v63 = vadd.f32 %v1299_v61, %v1298_v59  ;;  %v1301_v0 = vpop.f32.mrb[2].mxu1 }
  0xfa   :  { %v1302_v1 = vpop.f32.mrb[3].mxu1 }
  0xfb   :  { %v937_v2 = vadd.f32 %v1300_v63, %v897_v62 }
 0x115   :  { %v1320_v3 = vpop.f32.mrb[4].mxu0 }
 0x116   :  { %v1321_v4 = vpop.f32.mrb[5].mxu0 }
 0x117   :  { %v1322_v5 = vadd.f32 %v1321_v4, %v1320_v3  ;;  %v1323_v6 = vpop.f32.mrb[6].mxu0  ;;  %v1342_v7 = vpop.f32.mrb[4].mxu1 }
 0x118   :  { %v1324_v8 = vpop.f32.mrb[7].mxu0  ;;  %v1343_v9 = vpop.f32.mrb[5].mxu1 }
 0x119   :  { %v977_v10 = vadd.f32 %v1322_v5, %v937_v2  ;;  %v1344_v11 = vadd.f32 %v1343_v9, %v1342_v7  ;;  %v1345_v12 = vpop.f32.mrb[6].mxu1 }
 0x11a   :  { %v1346_v13 = vpop.f32.mrb[7].mxu1 }
 0x11b   :  { %v1017_v14 = vadd.f32 %v1344_v11, %v977_v10 }
 0x135   :  { %v1364_v15 = vpop.f32.mrb[8].mxu0 }
 0x136   :  { %v1365_v16 = vpop.f32.mrb[9].mxu0 }
 0x137   :  { %v1386_v17 = vpop.f32.mrb[8].mxu1  ;;  %v1366_v18 = vadd.f32 %v1365_v16, %v1364_v15  ;;  %v1367_v19 = vpop.f32.mrb[10].mxu0 }
 0x138   :  { %v1387_v20 = vpop.f32.mrb[9].mxu1  ;;  %v1368_v22 = vpop.f32.mrb[11].mxu0 }
 0x139   :  { %v1388_v21 = vadd.f32 %v1387_v20, %v1386_v17  ;;  %v1389_v23 = vpop.f32.mrb[10].mxu1  ;;  %v1057_v24 = vadd.f32 %v1366_v18, %v1017_v14 }
 0x13a   :  { %v1390_v25 = vpop.f32.mrb[11].mxu1 }
 0x13b   :  { %v1097_v26 = vadd.f32 %v1388_v21, %v1057_v24 }
 0x13d   :  { %v1136_v27 = vpop.f32.mrb[12].mxu0 }
 0x13e   :  { %v1137_v28 = vadd.f32 %v1136_v27, %v1097_v26  ;;  %v1401_v29 = vpop.f32.mrb[13].mxu0 }
 0x13f   :  { %v1139_v30 = vpop.f32.mrb[14].mxu0 }
 0x140   :  { %1142 = vst [vmem:[%s1862_s3] sm:$0xff] %v1137_v28  ;;  %v1402_v31 = vpop.f32.mrb[15].mxu0 }

</bundles_post_ra>
